<compile_context>
chip_gen: v5e
topology: v5e:2x2
jax: 0.10.0
libtpu: 0.0.40
codegen_flags: <defaults>
</compile_context>

<pallas_src>
import functools

import numpy as np
import jax
import jax.numpy as jnp
from jax.experimental import pallas as pl
from jax.experimental.pallas import tpu as pltpu

_BF16 = jnp.bfloat16
_F32 = jnp.float32


# ----------------------------------------------------------------------------
# Frozen MAE-style 2D sin-cos positional embedding (built host-side, numpy).
# ----------------------------------------------------------------------------
def _get_1d_sincos_pos_embed_from_grid(embed_dim, pos):
    omega = np.arange(embed_dim // 2, dtype=np.float64)
    omega /= embed_dim / 2.0
    omega = 1.0 / (10000.0 ** omega)
    pos = pos.reshape(-1)
    out = np.einsum("m,d->md", pos, omega)
    return np.concatenate([np.sin(out), np.cos(out)], axis=1)


def get_2d_sincos_pos_embed(embed_dim, grid_size):
    grid_h = np.arange(grid_size, dtype=np.float32)
    grid_w = np.arange(grid_size, dtype=np.float32)
    grid = np.meshgrid(grid_w, grid_h)  # w goes first (MAE convention)
    grid = np.stack(grid, axis=0).reshape([2, 1, grid_size, grid_size])
    emb_h = _get_1d_sincos_pos_embed_from_grid(embed_dim // 2, grid[0])
    emb_w = _get_1d_sincos_pos_embed_from_grid(embed_dim // 2, grid[1])
    return np.concatenate([emb_h, emb_w], axis=1).astype(np.float32)  # (N, D)


# ----------------------------------------------------------------------------
# In-kernel helpers.
# ----------------------------------------------------------------------------
def _layernorm(x, g, b, eps=1e-5):
    mu = jnp.mean(x, axis=-1, keepdims=True)
    var = jnp.mean(jnp.square(x - mu), axis=-1, keepdims=True)
    return (x - mu) * jax.lax.rsqrt(var + eps) * g + b


def _gelu(x):
    # tanh approximation (EUP-friendly).  PyTorch nn.GELU defaults to exact
    # erf; expect ~1e-3 deviations.
    c = 0.7978845608028654  # sqrt(2/pi)
    return 0.5 * x * (1.0 + jnp.tanh(c * (x + 0.044715 * x * x * x)))


def _vmem_limit_bytes():
    cap = 128 * 1024 * 1024
    try:
        info = pltpu.get_tpu_info()
        cap = int(getattr(info, "vmem_capacity_bytes", cap))
    except Exception:
        pass
    # ~25% headroom for Mosaic-internal scratch; 48 MiB on v7x, 96 MiB on
    # v5e/v6e.
    return int(max(32 * 1024 * 1024, min(cap * 3 // 4, 96 * 1024 * 1024)))


def _pick_batch_tile(batch):
    # Block must either equal the full batch dim or be sublane-friendly and
    # divide it; prefer 8 batch elements per grid step (weight-DMA amortization
    # and MXU fill) when the batch allows it.
    if batch <= 8:
        return batch
    for cand in (8, 16, 24, 32):
        if batch % cand == 0:
            return cand
    return batch


# ----------------------------------------------------------------------------
# Single fused kernel: embed + depth x (MHSA + MLP) + shortcut + LN + pool +
# classification head.  grid = (B // Bt, depth).
# ----------------------------------------------------------------------------
def _fused_forward_kernel(enc_ref, linw_ref, linb_ref, pos_ref,
                          ln1g_ref, ln1b_ref, qkvw_ref, qkvb_ref,
                          projw_ref, projb_ref, ln2g_ref, ln2b_ref,
                          w1_ref, b1_ref, w2_ref, b2_ref,
                          normg_ref, normb_ref, headw_ref, headb_ref,
                          o_ref,
                          x_s, skip_s, attn_s, pool_s,
                          *, num_heads, shortnum, bt, n_tokens):
    l = pl.program_id(1)
    depth = pl.num_programs(1)
    N = n_tokens
    D = x_s.shape[-1]
    hd = D // num_heads
    scale = 1.0 / float(hd) ** 0.5

    # --- layer 0: fused input Linear + pos-embed, init residual state -------
    @pl.when(l == 0)
    def _():
        for b in range(bt):                                    # static unroll
            e = enc_ref[b].astype(_BF16)                       # (N, Cin)
            x0 = jnp.dot(e, linw_ref[...], preferred_element_type=_F32)
            x_s[pl.ds(b * N, N), :] = x0 + linb_ref[...] + pos_ref[...]
        skip_s[...] = x_s[...]

    x = x_s[...]                                               # (Bt*N, D) f32

    # --- multi-head self-attention (pre-norm) --------------------------------
    h = _layernorm(x, ln1g_ref[0], ln1b_ref[0])
    qkv = jnp.dot(h.astype(_BF16), qkvw_ref[0],
                  preferred_element_type=_F32) + qkvb_ref[0]   # (Bt*N, 3D)
    q = qkv[:, 0:D]
    k = qkv[:, D:2 * D]
    v = qkv[:, 2 * D:3 * D]
    projw = projw_ref[0]                                       # (D, D) bf16

    for b in range(bt):                                        # static unroll
        r0, r1 = b * N, (b + 1) * N
        acc_b = jnp.zeros((N, D), _F32)
        for hi in range(num_heads):                            # static unroll
            c0, c1 = hi * hd, (hi + 1) * hd
            # fold 1/sqrt(hd) into q (N*hd muls instead of N*N on logits)
            qh = (q[r0:r1, c0:c1] * scale).astype(_BF16)
            kh = k[r0:r1, c0:c1].astype(_BF16)
            vh = v[r0:r1, c0:c1].astype(_BF16)
            a = jnp.dot(qh, kh.T, preferred_element_type=_F32)  # (N, N) f32
            a = a - jnp.max(a, axis=-1, keepdims=True)
            p = jnp.exp(a)
            p = p / jnp.sum(p, axis=-1, keepdims=True)          # exact softmax
            ho = jnp.dot(p.astype(_BF16), vh, preferred_element_type=_F32)
            # fold the output projection in per head (no head concatenate)
            acc_b = acc_b + jnp.dot(ho.astype(_BF16), projw[c0:c1, :],
                                    preferred_element_type=_F32)
        attn_s[pl.ds(b * N, N), :] = acc_b
    x = x + attn_s[...] + projb_ref[0]

    # --- MLP (pre-norm) ------------------------------------------------------
    h2 = _layernorm(x, ln2g_ref[0], ln2b_ref[0])
    m = jnp.dot(h2.astype(_BF16), w1_ref[0],
                preferred_element_type=_F32) + b1_ref[0]
    m = _gelu(m)
    m = jnp.dot(m.astype(_BF16), w2_ref[0],
                preferred_element_type=_F32) + b2_ref[0]
    x_s[...] = x + m

    # --- long residual shortcut every `shortnum` blocks ----------------------
    @pl.when((l + 1) % shortnum == 0)
    def _():
        xs = x_s[...] + skip_s[...]
        x_s[...] = xs
        skip_s[...] = xs

    # --- last layer: final LN + token-mean pool + classification head --------
    @pl.when(l == depth - 1)
    def _():
        xf = _layernorm(x_s[...], normg_ref[...], normb_ref[...])
        for b in range(bt):                                    # static unroll
            xb = xf[b * N:(b + 1) * N, :]
            pool_s[pl.ds(b, 1), :] = jnp.mean(xb, axis=0, keepdims=True)
        logits = jnp.dot(pool_s[...].astype(_BF16), headw_ref[...],
                         preferred_element_type=_F32) + headb_ref[...]
        o_ref[...] = logits                                    # (Bt, C_pad)


def mcmae_encoder_single(encodings, params, depth, shortnum, num_heads):
    """Full forward of MCMAE_Encoder_single. Returns (B, num_classes) logits."""
    B, N, Cin = encodings.shape
    D = params["lin_w"].shape[1]
    C = params["head_w"].shape[1]
    assert params["pos"].shape[1] == N
    assert D % num_heads == 0

    bt = _pick_batch_tile(B)
    assert B % bt == 0

    # lane-dense classifier output: pad classes up to a multiple of 128.
    c_pad = 128 * pl.cdiv(C, 128)
    head_w = jnp.zeros((D, c_pad), _BF16).at[:, :C].set(params["head_w"])
    head_b = jnp.zeros((1, c_pad), _F32).at[:, :C].set(params["head_b"])
    pos = params["pos"].reshape(N, D)

    blocks = params["blocks"]
    names = ["ln1_g", "ln1_b", "qkv_w", "qkv_b", "proj_w", "proj_b",
             "ln2_g", "ln2_b", "mlp_w1", "mlp_b1", "mlp_w2", "mlp_b2"]
    ws = [blocks[n] for n in names]

    def layer_spec(arr):   # per-layer stacked weights, indexed by layer coord
        return pl.BlockSpec((1,) + arr.shape[1:], lambda bi, l: (l, 0, 0))

    def const2d(arr):      # whole-array constants, resident across the grid
        return pl.BlockSpec(arr.shape, lambda bi, l: (0, 0))

    kernel = functools.partial(_fused_forward_kernel, num_heads=num_heads,
                               shortnum=shortnum, bt=bt, n_tokens=N)

    out = pl.pallas_call(
        kernel,
        out_shape=jax.ShapeDtypeStruct((B, c_pad), _F32),
        grid=(B // bt, depth),
        in_specs=[pl.BlockSpec((bt, N, Cin), lambda bi, l: (bi, 0, 0)),
                  const2d(params["lin_w"]),
                  const2d(params["lin_b"]),
                  const2d(pos)]
                 + [layer_spec(w) for w in ws]
                 + [const2d(params["norm_g"]), const2d(params["norm_b"]),
                    const2d(head_w), const2d(head_b)],
        out_specs=pl.BlockSpec((bt, c_pad), lambda bi, l: (bi, 0)),
        scratch_shapes=[pltpu.VMEM((bt * N, D), _F32),   # resident activation
                        pltpu.VMEM((bt * N, D), _F32),   # long-shortcut skip
                        pltpu.VMEM((bt * N, D), _F32),   # attention-proj acc
                        pltpu.VMEM((bt, D), _F32)],      # pooled tokens
        compiler_params=pltpu.CompilerParams(
            dimension_semantics=("parallel", "arbitrary"),
            vmem_limit_bytes=_vmem_limit_bytes()),
    )(encodings, params["lin_w"], params["lin_b"], pos,
      *ws, params["norm_g"], params["norm_b"], head_w, head_b)

    return out[:, :C]


# ----------------------------------------------------------------------------
# Parameter init (deterministic, synthetic).  Matmul weights stored in bf16,
# per-layer tensors stacked along a leading `depth` axis.
# ----------------------------------------------------------------------------
def init_params(key, io_dim, D, depth, num_classes, num_patches, num_heads):
    assert D % num_heads == 0, "encoder_dim must be divisible by num_heads"
    grid_size = int(round(num_patches ** 0.5))
    assert grid_size * grid_size == num_patches, "num_patches must be square"
    assert D % 4 == 0, "encoder_dim must be divisible by 4 for 2D sincos"

    keys = jax.random.split(key, 6)

    def w(k, shape):
        return (0.02 * jax.random.normal(k, shape, _F32)).astype(_BF16)

    params = {
        "lin_w": w(keys[0], (io_dim, D)),
        "lin_b": jnp.zeros((1, D), _F32),
        "pos": jnp.asarray(get_2d_sincos_pos_embed(D, grid_size))[None, :, :],
        "norm_g": jnp.ones((1, D), _F32),
        "norm_b": jnp.zeros((1, D), _F32),
        "head_w": w(keys[1], (D, num_classes)),
        "head_b": jnp.zeros((1, num_classes), _F32),
        "blocks": {
            "ln1_g": jnp.ones((depth, 1, D), _F32),
            "ln1_b": jnp.zeros((depth, 1, D), _F32),
            "qkv_w": w(keys[2], (depth, D, 3 * D)),
            "qkv_b": jnp.zeros((depth, 1, 3 * D), _F32),
            "proj_w": w(keys[3], (depth, D, D)),
            "proj_b": jnp.zeros((depth, 1, D), _F32),
            "ln2_g": jnp.ones((depth, 1, D), _F32),
            "ln2_b": jnp.zeros((depth, 1, D), _F32),
            "mlp_w1": w(keys[4], (depth, D, 4 * D)),
            "mlp_b1": jnp.zeros((depth, 1, 4 * D), _F32),
            "mlp_w2": w(keys[5], (depth, 4 * D, D)),
            "mlp_b2": jnp.zeros((depth, 1, D), _F32),
        },
    }
    return params


if __name__ == "__main__":
    # Small config consistent with the module's interface.
    B = 2
    num_patches = 16          # 4x4 grid for the 2D sin-cos pos embed
    io_dim = 8
    encoder_dim = 32
    encoder_depth = 4
    encoder_num_heads = 4
    shortnum = 2
    num_classes = 5

    key = jax.random.PRNGKey(0)
    kx, kp = jax.random.split(key)
    encodings = jax.random.normal(kx, (B, num_patches, io_dim), _F32)

    params = init_params(kp, io_dim, encoder_dim, encoder_depth,
                         num_classes, num_patches, encoder_num_heads)

    out = mcmae_encoder_single(encodings, params, encoder_depth, shortnum,
                               encoder_num_heads)
    out = jax.block_until_ready(out)
    assert out.shape == (B, num_classes), out.shape
    assert bool(jnp.all(jnp.isfinite(out)))
    print("KERNEL_OK")
</pallas_src>

<mosaic_0001>
module attributes {stable_mosaic.version = 11 : i64} {
  func.func @_fused_forward_kernel(%arg0: i32, %arg1: i32, %arg2: memref<2x16x8xf32, #tpu.memory_space<vmem>>, %arg3: memref<8x32xbf16, #tpu.memory_space<vmem>>, %arg4: memref<1x32xf32, #tpu.memory_space<vmem>>, %arg5: memref<16x32xf32, #tpu.memory_space<vmem>>, %arg6: memref<1x1x32xf32, #tpu.memory_space<vmem>>, %arg7: memref<1x1x32xf32, #tpu.memory_space<vmem>>, %arg8: memref<1x32x96xbf16, #tpu.memory_space<vmem>>, %arg9: memref<1x1x96xf32, #tpu.memory_space<vmem>>, %arg10: memref<1x32x32xbf16, #tpu.memory_space<vmem>>, %arg11: memref<1x1x32xf32, #tpu.memory_space<vmem>>, %arg12: memref<1x1x32xf32, #tpu.memory_space<vmem>>, %arg13: memref<1x1x32xf32, #tpu.memory_space<vmem>>, %arg14: memref<1x32x128xbf16, #tpu.memory_space<vmem>>, %arg15: memref<1x1x128xf32, #tpu.memory_space<vmem>>, %arg16: memref<1x128x32xbf16, #tpu.memory_space<vmem>>, %arg17: memref<1x1x32xf32, #tpu.memory_space<vmem>>, %arg18: memref<1x32xf32, #tpu.memory_space<vmem>>, %arg19: memref<1x32xf32, #tpu.memory_space<vmem>>, %arg20: memref<32x128xbf16, #tpu.memory_space<vmem>>, %arg21: memref<1x128xf32, #tpu.memory_space<vmem>>, %arg22: memref<2x128xf32, #tpu.memory_space<vmem>>, %arg23: memref<32x32xf32, #tpu.memory_space<vmem>>, %arg24: memref<32x32xf32, #tpu.memory_space<vmem>>, %arg25: memref<32x32xf32, #tpu.memory_space<vmem>>, %arg26: memref<2x32xf32, #tpu.memory_space<vmem>>) attributes {dimension_semantics = [#tpu.dimension_semantics<parallel>, #tpu.dimension_semantics<arbitrary>], iteration_bounds = array<i64: 1, 4>, scalar_prefetch = 0 : i64, scratch_operands = 4 : i64, tpu.core_type = #tpu.core_type<tc>, window_params = [{transform_indices = @transform_0, window_bounds = array<i64: 2, 16, 8>}, {pipeline_mode = #tpu.pipeline_mode<synchronous>, transform_indices = @transform_1, window_bounds = array<i64: 8, 32>}, {pipeline_mode = #tpu.pipeline_mode<synchronous>, transform_indices = @transform_2, window_bounds = array<i64: 1, 32>}, {pipeline_mode = #tpu.pipeline_mode<synchronous>, transform_indices = @transform_3, window_bounds = array<i64: 16, 32>}, {transform_indices = @transform_4, window_bounds = array<i64: 1, 1, 32>}, {transform_indices = @transform_5, window_bounds = array<i64: 1, 1, 32>}, {transform_indices = @transform_6, window_bounds = array<i64: 1, 32, 96>}, {transform_indices = @transform_7, window_bounds = array<i64: 1, 1, 96>}, {transform_indices = @transform_8, window_bounds = array<i64: 1, 32, 32>}, {transform_indices = @transform_9, window_bounds = array<i64: 1, 1, 32>}, {transform_indices = @transform_10, window_bounds = array<i64: 1, 1, 32>}, {transform_indices = @transform_11, window_bounds = array<i64: 1, 1, 32>}, {transform_indices = @transform_12, window_bounds = array<i64: 1, 32, 128>}, {transform_indices = @transform_13, window_bounds = array<i64: 1, 1, 128>}, {transform_indices = @transform_14, window_bounds = array<i64: 1, 128, 32>}, {transform_indices = @transform_15, window_bounds = array<i64: 1, 1, 32>}, {pipeline_mode = #tpu.pipeline_mode<synchronous>, transform_indices = @transform_16, window_bounds = array<i64: 1, 32>}, {pipeline_mode = #tpu.pipeline_mode<synchronous>, transform_indices = @transform_17, window_bounds = array<i64: 1, 32>}, {pipeline_mode = #tpu.pipeline_mode<synchronous>, transform_indices = @transform_18, window_bounds = array<i64: 32, 128>}, {pipeline_mode = #tpu.pipeline_mode<synchronous>, transform_indices = @transform_19, window_bounds = array<i64: 1, 128>}, {transform_indices = @transform_20, window_bounds = array<i64: 2, 128>}]} {
    %c0_i32 = arith.constant 0 : i32
    %0 = arith.cmpi eq, %arg1, %c0_i32 : i32
    %1 = arith.extui %0 : i1 to i32
    %c0_i32_0 = arith.constant 0 : i32
    %2 = arith.cmpi ne, %1, %c0_i32_0 : i32
    scf.if %2 {
      %c0_119 = arith.constant 0 : index
      %c0_120 = arith.constant 0 : index
      %c0_121 = arith.constant 0 : index
      %327 = vector.load %arg2[%c0_119, %c0_120, %c0_121] : memref<2x16x8xf32, #tpu.memory_space<vmem>>, vector<1x16x8xf32>
      %328 = vector.shape_cast %327 : vector<1x16x8xf32> to vector<16x8xf32>
      %329 = arith.truncf %328 : vector<16x8xf32> to vector<16x8xbf16>
      %c0_122 = arith.constant 0 : index
      %c0_123 = arith.constant 0 : index
      %330 = vector.load %arg3[%c0_122, %c0_123] : memref<8x32xbf16, #tpu.memory_space<vmem>>, vector<8x32xbf16>
      %cst_124 = arith.constant dense<0.000000e+00> : vector<16x32xf32>
      %331 = tpu.matmul %329, %330, %cst_124 {dimension_numbers = #tpu.dot_dimension_numbers<[1], [0], [0], [1], [0, 0, 1, 1], [], []>} : vector<16x8xbf16>, vector<8x32xbf16>, vector<16x32xf32> -> vector<16x32xf32>
      %c0_125 = arith.constant 0 : index
      %c0_126 = arith.constant 0 : index
      %332 = vector.load %arg4[%c0_125, %c0_126] : memref<1x32xf32, #tpu.memory_space<vmem>>, vector<1x32xf32>
      %333 = vector.broadcast %332 : vector<1x32xf32> to vector<16x32xf32>
      %334 = arith.addf %331, %333 : vector<16x32xf32>
      %c0_127 = arith.constant 0 : index
      %c0_128 = arith.constant 0 : index
      %335 = vector.load %arg5[%c0_127, %c0_128] : memref<16x32xf32, #tpu.memory_space<vmem>>, vector<16x32xf32>
      %336 = arith.addf %334, %335 : vector<16x32xf32>
      %c0_129 = arith.constant 0 : index
      %c0_130 = arith.constant 0 : index
      %337 = vector.load %arg23[%c0_129, %c0_130] : memref<32x32xf32, #tpu.memory_space<vmem>>, vector<16x32xf32>
      tpu.vector_store %arg23[%c0_129, %c0_130], %336 {strides = array<i32>} : memref<32x32xf32, #tpu.memory_space<vmem>>, vector<16x32xf32>,
      %c1 = arith.constant 1 : index
      %c0_131 = arith.constant 0 : index
      %c0_132 = arith.constant 0 : index
      %338 = vector.load %arg2[%c1, %c0_131, %c0_132] : memref<2x16x8xf32, #tpu.memory_space<vmem>>, vector<1x16x8xf32>
      %339 = vector.shape_cast %338 : vector<1x16x8xf32> to vector<16x8xf32>
      %340 = arith.truncf %339 : vector<16x8xf32> to vector<16x8xbf16>
      %c0_133 = arith.constant 0 : index
      %c0_134 = arith.constant 0 : index
      %341 = vector.load %arg3[%c0_133, %c0_134] : memref<8x32xbf16, #tpu.memory_space<vmem>>, vector<8x32xbf16>
      %cst_135 = arith.constant dense<0.000000e+00> : vector<16x32xf32>
      %342 = tpu.matmul %340, %341, %cst_135 {dimension_numbers = #tpu.dot_dimension_numbers<[1], [0], [0], [1], [0, 0, 1, 1], [], []>} : vector<16x8xbf16>, vector<8x32xbf16>, vector<16x32xf32> -> vector<16x32xf32>
      %c0_136 = arith.constant 0 : index
      %c0_137 = arith.constant 0 : index
      %343 = vector.load %arg4[%c0_136, %c0_137] : memref<1x32xf32, #tpu.memory_space<vmem>>, vector<1x32xf32>
      %344 = vector.broadcast %343 : vector<1x32xf32> to vector<16x32xf32>
      %345 = arith.addf %342, %344 : vector<16x32xf32>
      %c0_138 = arith.constant 0 : index
      %c0_139 = arith.constant 0 : index
      %346 = vector.load %arg5[%c0_138, %c0_139] : memref<16x32xf32, #tpu.memory_space<vmem>>, vector<16x32xf32>
      %347 = arith.addf %345, %346 : vector<16x32xf32>
      %c16_140 = arith.constant 16 : index
      %c0_141 = arith.constant 0 : index
      %348 = vector.load %arg23[%c16_140, %c0_141] : memref<32x32xf32, #tpu.memory_space<vmem>>, vector<16x32xf32>
      tpu.vector_store %arg23[%c16_140, %c0_141], %347 {strides = array<i32>} : memref<32x32xf32, #tpu.memory_space<vmem>>, vector<16x32xf32>,
      %c0_142 = arith.constant 0 : index
      %c0_143 = arith.constant 0 : index
      %349 = vector.load %arg23[%c0_142, %c0_143] : memref<32x32xf32, #tpu.memory_space<vmem>>, vector<32x32xf32>
      %c0_144 = arith.constant 0 : index
      %c0_145 = arith.constant 0 : index
      %350 = vector.load %arg24[%c0_144, %c0_145] : memref<32x32xf32, #tpu.memory_space<vmem>>, vector<32x32xf32>
      tpu.vector_store %arg24[%c0_144, %c0_145], %349 {strides = array<i32>} : memref<32x32xf32, #tpu.memory_space<vmem>>, vector<32x32xf32>,
    } else {
    }
    %c0 = arith.constant 0 : index
    %c0_1 = arith.constant 0 : index
    %3 = vector.load %arg23[%c0, %c0_1] : memref<32x32xf32, #tpu.memory_space<vmem>>, vector<32x32xf32>
    %c0_2 = arith.constant 0 : index
    %c0_3 = arith.constant 0 : index
    %c0_4 = arith.constant 0 : index
    %4 = vector.load %arg6[%c0_2, %c0_3, %c0_4] : memref<1x1x32xf32, #tpu.memory_space<vmem>>, vector<1x1x32xf32>
    %5 = vector.shape_cast %4 : vector<1x1x32xf32> to vector<1x32xf32>
    %c0_5 = arith.constant 0 : index
    %c0_6 = arith.constant 0 : index
    %c0_7 = arith.constant 0 : index
    %6 = vector.load %arg7[%c0_5, %c0_6, %c0_7] : memref<1x1x32xf32, #tpu.memory_space<vmem>>, vector<1x1x32xf32>
    %7 = vector.shape_cast %6 : vector<1x1x32xf32> to vector<1x32xf32>
    %cst = arith.constant dense<0.000000e+00> : vector<32xf32>
    %8 = vector.multi_reduction <add>, %3, %cst [1] : vector<32x32xf32> to vector<32xf32>
    %9 = vector.shape_cast %8 : vector<32xf32> to vector<32x1xf32>
    %cst_8 = arith.constant 3.200000e+01 : f32
    %10 = vector.broadcast %cst_8 : f32 to vector<32x1xf32>
    %11 = arith.divf %9, %10 : vector<32x1xf32>
    %12 = vector.broadcast %11 : vector<32x1xf32> to vector<32x32xf32>
    %13 = arith.subf %3, %12 : vector<32x32xf32>
    %14 = arith.mulf %13, %13 : vector<32x32xf32>
    %cst_9 = arith.constant dense<0.000000e+00> : vector<32xf32>
    %15 = vector.multi_reduction <add>, %14, %cst_9 [1] : vector<32x32xf32> to vector<32xf32>
    %16 = vector.shape_cast %15 : vector<32xf32> to vector<32x1xf32>
    %cst_10 = arith.constant 3.200000e+01 : f32
    %17 = vector.broadcast %cst_10 : f32 to vector<32x1xf32>
    %18 = arith.divf %16, %17 : vector<32x1xf32>
    %19 = vector.broadcast %11 : vector<32x1xf32> to vector<32x32xf32>
    %20 = arith.subf %3, %19 : vector<32x32xf32>
    %cst_11 = arith.constant 9.99999974E-6 : f32
    %21 = vector.broadcast %cst_11 : f32 to vector<32x1xf32>
    %22 = arith.addf %18, %21 : vector<32x1xf32>
    %23 = math.rsqrt %22 : vector<32x1xf32>
    %24 = vector.broadcast %23 : vector<32x1xf32> to vector<32x32xf32>
    %25 = arith.mulf %20, %24 : vector<32x32xf32>
    %26 = vector.broadcast %5 : vector<1x32xf32> to vector<32x32xf32>
    %27 = arith.mulf %25, %26 : vector<32x32xf32>
    %28 = vector.broadcast %7 : vector<1x32xf32> to vector<32x32xf32>
    %29 = arith.addf %27, %28 : vector<32x32xf32>
    %30 = arith.truncf %29 : vector<32x32xf32> to vector<32x32xbf16>
    %c0_12 = arith.constant 0 : index
    %c0_13 = arith.constant 0 : index
    %c0_14 = arith.constant 0 : index
    %31 = vector.load %arg8[%c0_12, %c0_13, %c0_14] : memref<1x32x96xbf16, #tpu.memory_space<vmem>>, vector<1x32x96xbf16>
    %32 = vector.shape_cast %31 : vector<1x32x96xbf16> to vector<32x96xbf16>
    %cst_15 = arith.constant dense<0.000000e+00> : vector<32x96xf32>
    %33 = tpu.matmul %30, %32, %cst_15 {dimension_numbers = #tpu.dot_dimension_numbers<[1], [0], [0], [1], [0, 0, 1, 1], [], []>} : vector<32x32xbf16>, vector<32x96xbf16>, vector<32x96xf32> -> vector<32x96xf32>
    %c0_16 = arith.constant 0 : index
    %c0_17 = arith.constant 0 : index
    %c0_18 = arith.constant 0 : index
    %34 = vector.load %arg9[%c0_16, %c0_17, %c0_18] : memref<1x1x96xf32, #tpu.memory_space<vmem>>, vector<1x1x96xf32>
    %35 = vector.shape_cast %34 : vector<1x1x96xf32> to vector<1x96xf32>
    %36 = vector.broadcast %35 : vector<1x96xf32> to vector<32x96xf32>
    %37 = arith.addf %33, %36 : vector<32x96xf32>
    %38 = vector.extract_strided_slice %37 {offsets = [0, 0], sizes = [32, 32], strides = [1, 1]} : vector<32x96xf32> to vector<32x32xf32>
    %39 = vector.extract_strided_slice %37 {offsets = [0, 32], sizes = [32, 32], strides = [1, 1]} : vector<32x96xf32> to vector<32x32xf32>
    %40 = vector.extract_strided_slice %37 {offsets = [0, 64], sizes = [32, 32], strides = [1, 1]} : vector<32x96xf32> to vector<32x32xf32>
    %c0_19 = arith.constant 0 : index
    %c0_20 = arith.constant 0 : index
    %c0_21 = arith.constant 0 : index
    %41 = vector.load %arg10[%c0_19, %c0_20, %c0_21] : memref<1x32x32xbf16, #tpu.memory_space<vmem>>, vector<1x32x32xbf16>
    %42 = vector.shape_cast %41 : vector<1x32x32xbf16> to vector<32x32xbf16>
    %cst_22 = arith.constant 0.000000e+00 : f32
    %43 = vector.broadcast %cst_22 : f32 to vector<16x32xf32>
    %44 = vector.extract_strided_slice %38 {offsets = [0, 0], sizes = [16, 8], strides = [1, 1]} : vector<32x32xf32> to vector<16x8xf32>
    %cst_23 = arith.constant 0.353553385 : f32
    %45 = vector.broadcast %cst_23 : f32 to vector<16x8xf32>
    %46 = arith.mulf %44, %45 : vector<16x8xf32>
    %47 = arith.truncf %46 : vector<16x8xf32> to vector<16x8xbf16>
    %48 = vector.extract_strided_slice %39 {offsets = [0, 0], sizes = [16, 8], strides = [1, 1]} : vector<32x32xf32> to vector<16x8xf32>
    %49 = arith.truncf %48 : vector<16x8xf32> to vector<16x8xbf16>
    %50 = vector.extract_strided_slice %40 {offsets = [0, 0], sizes = [16, 8], strides = [1, 1]} : vector<32x32xf32> to vector<16x8xf32>
    %51 = arith.truncf %50 : vector<16x8xf32> to vector<16x8xbf16>
    %52 = tpu.transpose %49, [1, 0] : vector<16x8xbf16> -> vector<8x16xbf16>
    %cst_24 = arith.constant dense<0.000000e+00> : vector<16x16xf32>
    %53 = tpu.matmul %47, %52, %cst_24 {dimension_numbers = #tpu.dot_dimension_numbers<[1], [0], [0], [1], [0, 0, 1, 1], [], []>} : vector<16x8xbf16>, vector<8x16xbf16>, vector<16x16xf32> -> vector<16x16xf32>
    %cst_25 = arith.constant dense<0xFF800000> : vector<16xf32>
    %54 = vector.multi_reduction <maximumf>, %53, %cst_25 [1] : vector<16x16xf32> to vector<16xf32>
    %55 = vector.shape_cast %54 : vector<16xf32> to vector<16x1xf32>
    %56 = vector.broadcast %55 : vector<16x1xf32> to vector<16x16xf32>
    %57 = arith.subf %53, %56 : vector<16x16xf32>
    %58 = math.exp %57 : vector<16x16xf32>
    %cst_26 = arith.constant dense<0.000000e+00> : vector<16xf32>
    %59 = vector.multi_reduction <add>, %58, %cst_26 [1] : vector<16x16xf32> to vector<16xf32>
    %60 = vector.shape_cast %59 : vector<16xf32> to vector<16x1xf32>
    %61 = vector.broadcast %60 : vector<16x1xf32> to vector<16x16xf32>
    %62 = arith.divf %58, %61 : vector<16x16xf32>
    %63 = arith.truncf %62 : vector<16x16xf32> to vector<16x16xbf16>
    %cst_27 = arith.constant dense<0.000000e+00> : vector<16x8xf32>
    %64 = tpu.matmul %63, %51, %cst_27 {dimension_numbers = #tpu.dot_dimension_numbers<[1], [0], [0], [1], [0, 0, 1, 1], [], []>} : vector<16x16xbf16>, vector<16x8xbf16>, vector<16x8xf32> -> vector<16x8xf32>
    %65 = arith.truncf %64 : vector<16x8xf32> to vector<16x8xbf16>
    %66 = vector.extract_strided_slice %42 {offsets = [0, 0], sizes = [8, 32], strides = [1, 1]} : vector<32x32xbf16> to vector<8x32xbf16>
    %cst_28 = arith.constant dense<0.000000e+00> : vector<16x32xf32>
    %67 = tpu.matmul %65, %66, %cst_28 {dimension_numbers = #tpu.dot_dimension_numbers<[1], [0], [0], [1], [0, 0, 1, 1], [], []>} : vector<16x8xbf16>, vector<8x32xbf16>, vector<16x32xf32> -> vector<16x32xf32>
    %68 = arith.addf %43, %67 : vector<16x32xf32>
    %69 = vector.extract_strided_slice %38 {offsets = [0, 8], sizes = [16, 8], strides = [1, 1]} : vector<32x32xf32> to vector<16x8xf32>
    %cst_29 = arith.constant 0.353553385 : f32
    %70 = vector.broadcast %cst_29 : f32 to vector<16x8xf32>
    %71 = arith.mulf %69, %70 : vector<16x8xf32>
    %72 = arith.truncf %71 : vector<16x8xf32> to vector<16x8xbf16>
    %73 = vector.extract_strided_slice %39 {offsets = [0, 8], sizes = [16, 8], strides = [1, 1]} : vector<32x32xf32> to vector<16x8xf32>
    %74 = arith.truncf %73 : vector<16x8xf32> to vector<16x8xbf16>
    %75 = vector.extract_strided_slice %40 {offsets = [0, 8], sizes = [16, 8], strides = [1, 1]} : vector<32x32xf32> to vector<16x8xf32>
    %76 = arith.truncf %75 : vector<16x8xf32> to vector<16x8xbf16>
    %77 = tpu.transpose %74, [1, 0] : vector<16x8xbf16> -> vector<8x16xbf16>
    %cst_30 = arith.constant dense<0.000000e+00> : vector<16x16xf32>
    %78 = tpu.matmul %72, %77, %cst_30 {dimension_numbers = #tpu.dot_dimension_numbers<[1], [0], [0], [1], [0, 0, 1, 1], [], []>} : vector<16x8xbf16>, vector<8x16xbf16>, vector<16x16xf32> -> vector<16x16xf32>
    %cst_31 = arith.constant dense<0xFF800000> : vector<16xf32>
    %79 = vector.multi_reduction <maximumf>, %78, %cst_31 [1] : vector<16x16xf32> to vector<16xf32>
    %80 = vector.shape_cast %79 : vector<16xf32> to vector<16x1xf32>
    %81 = vector.broadcast %80 : vector<16x1xf32> to vector<16x16xf32>
    %82 = arith.subf %78, %81 : vector<16x16xf32>
    %83 = math.exp %82 : vector<16x16xf32>
    %cst_32 = arith.constant dense<0.000000e+00> : vector<16xf32>
    %84 = vector.multi_reduction <add>, %83, %cst_32 [1] : vector<16x16xf32> to vector<16xf32>
    %85 = vector.shape_cast %84 : vector<16xf32> to vector<16x1xf32>
    %86 = vector.broadcast %85 : vector<16x1xf32> to vector<16x16xf32>
    %87 = arith.divf %83, %86 : vector<16x16xf32>
    %88 = arith.truncf %87 : vector<16x16xf32> to vector<16x16xbf16>
    %cst_33 = arith.constant dense<0.000000e+00> : vector<16x8xf32>
    %89 = tpu.matmul %88, %76, %cst_33 {dimension_numbers = #tpu.dot_dimension_numbers<[1], [0], [0], [1], [0, 0, 1, 1], [], []>} : vector<16x16xbf16>, vector<16x8xbf16>, vector<16x8xf32> -> vector<16x8xf32>
    %90 = arith.truncf %89 : vector<16x8xf32> to vector<16x8xbf16>
    %91 = vector.extract_strided_slice %42 {offsets = [8, 0], sizes = [8, 32], strides = [1, 1]} : vector<32x32xbf16> to vector<8x32xbf16>
    %cst_34 = arith.constant dense<0.000000e+00> : vector<16x32xf32>
    %92 = tpu.matmul %90, %91, %cst_34 {dimension_numbers = #tpu.dot_dimension_numbers<[1], [0], [0], [1], [0, 0, 1, 1], [], []>} : vector<16x8xbf16>, vector<8x32xbf16>, vector<16x32xf32> -> vector<16x32xf32>
    %93 = arith.addf %68, %92 : vector<16x32xf32>
    %94 = vector.extract_strided_slice %38 {offsets = [0, 16], sizes = [16, 8], strides = [1, 1]} : vector<32x32xf32> to vector<16x8xf32>
    %cst_35 = arith.constant 0.353553385 : f32
    %95 = vector.broadcast %cst_35 : f32 to vector<16x8xf32>
    %96 = arith.mulf %94, %95 : vector<16x8xf32>
    %97 = arith.truncf %96 : vector<16x8xf32> to vector<16x8xbf16>
    %98 = vector.extract_strided_slice %39 {offsets = [0, 16], sizes = [16, 8], strides = [1, 1]} : vector<32x32xf32> to vector<16x8xf32>
    %99 = arith.truncf %98 : vector<16x8xf32> to vector<16x8xbf16>
    %100 = vector.extract_strided_slice %40 {offsets = [0, 16], sizes = [16, 8], strides = [1, 1]} : vector<32x32xf32> to vector<16x8xf32>
    %101 = arith.truncf %100 : vector<16x8xf32> to vector<16x8xbf16>
    %102 = tpu.transpose %99, [1, 0] : vector<16x8xbf16> -> vector<8x16xbf16>
    %cst_36 = arith.constant dense<0.000000e+00> : vector<16x16xf32>
    %103 = tpu.matmul %97, %102, %cst_36 {dimension_numbers = #tpu.dot_dimension_numbers<[1], [0], [0], [1], [0, 0, 1, 1], [], []>} : vector<16x8xbf16>, vector<8x16xbf16>, vector<16x16xf32> -> vector<16x16xf32>
    %cst_37 = arith.constant dense<0xFF800000> : vector<16xf32>
    %104 = vector.multi_reduction <maximumf>, %103, %cst_37 [1] : vector<16x16xf32> to vector<16xf32>
    %105 = vector.shape_cast %104 : vector<16xf32> to vector<16x1xf32>
    %106 = vector.broadcast %105 : vector<16x1xf32> to vector<16x16xf32>
    %107 = arith.subf %103, %106 : vector<16x16xf32>
    %108 = math.exp %107 : vector<16x16xf32>
    %cst_38 = arith.constant dense<0.000000e+00> : vector<16xf32>
    %109 = vector.multi_reduction <add>, %108, %cst_38 [1] : vector<16x16xf32> to vector<16xf32>
    %110 = vector.shape_cast %109 : vector<16xf32> to vector<16x1xf32>
    %111 = vector.broadcast %110 : vector<16x1xf32> to vector<16x16xf32>
    %112 = arith.divf %108, %111 : vector<16x16xf32>
    %113 = arith.truncf %112 : vector<16x16xf32> to vector<16x16xbf16>
    %cst_39 = arith.constant dense<0.000000e+00> : vector<16x8xf32>
    %114 = tpu.matmul %113, %101, %cst_39 {dimension_numbers = #tpu.dot_dimension_numbers<[1], [0], [0], [1], [0, 0, 1, 1], [], []>} : vector<16x16xbf16>, vector<16x8xbf16>, vector<16x8xf32> -> vector<16x8xf32>
    %115 = arith.truncf %114 : vector<16x8xf32> to vector<16x8xbf16>
    %116 = vector.extract_strided_slice %42 {offsets = [16, 0], sizes = [8, 32], strides = [1, 1]} : vector<32x32xbf16> to vector<8x32xbf16>
    %cst_40 = arith.constant dense<0.000000e+00> : vector<16x32xf32>
    %117 = tpu.matmul %115, %116, %cst_40 {dimension_numbers = #tpu.dot_dimension_numbers<[1], [0], [0], [1], [0, 0, 1, 1], [], []>} : vector<16x8xbf16>, vector<8x32xbf16>, vector<16x32xf32> -> vector<16x32xf32>
    %118 = arith.addf %93, %117 : vector<16x32xf32>
    %119 = vector.extract_strided_slice %38 {offsets = [0, 24], sizes = [16, 8], strides = [1, 1]} : vector<32x32xf32> to vector<16x8xf32>
    %cst_41 = arith.constant 0.353553385 : f32
    %120 = vector.broadcast %cst_41 : f32 to vector<16x8xf32>
    %121 = arith.mulf %119, %120 : vector<16x8xf32>
    %122 = arith.truncf %121 : vector<16x8xf32> to vector<16x8xbf16>
    %123 = vector.extract_strided_slice %39 {offsets = [0, 24], sizes = [16, 8], strides = [1, 1]} : vector<32x32xf32> to vector<16x8xf32>
    %124 = arith.truncf %123 : vector<16x8xf32> to vector<16x8xbf16>
    %125 = vector.extract_strided_slice %40 {offsets = [0, 24], sizes = [16, 8], strides = [1, 1]} : vector<32x32xf32> to vector<16x8xf32>
    %126 = arith.truncf %125 : vector<16x8xf32> to vector<16x8xbf16>
    %127 = tpu.transpose %124, [1, 0] : vector<16x8xbf16> -> vector<8x16xbf16>
    %cst_42 = arith.constant dense<0.000000e+00> : vector<16x16xf32>
    %128 = tpu.matmul %122, %127, %cst_42 {dimension_numbers = #tpu.dot_dimension_numbers<[1], [0], [0], [1], [0, 0, 1, 1], [], []>} : vector<16x8xbf16>, vector<8x16xbf16>, vector<16x16xf32> -> vector<16x16xf32>
    %cst_43 = arith.constant dense<0xFF800000> : vector<16xf32>
    %129 = vector.multi_reduction <maximumf>, %128, %cst_43 [1] : vector<16x16xf32> to vector<16xf32>
    %130 = vector.shape_cast %129 : vector<16xf32> to vector<16x1xf32>
    %131 = vector.broadcast %130 : vector<16x1xf32> to vector<16x16xf32>
    %132 = arith.subf %128, %131 : vector<16x16xf32>
    %133 = math.exp %132 : vector<16x16xf32>
    %cst_44 = arith.constant dense<0.000000e+00> : vector<16xf32>
    %134 = vector.multi_reduction <add>, %133, %cst_44 [1] : vector<16x16xf32> to vector<16xf32>
    %135 = vector.shape_cast %134 : vector<16xf32> to vector<16x1xf32>
    %136 = vector.broadcast %135 : vector<16x1xf32> to vector<16x16xf32>
    %137 = arith.divf %133, %136 : vector<16x16xf32>
    %138 = arith.truncf %137 : vector<16x16xf32> to vector<16x16xbf16>
    %cst_45 = arith.constant dense<0.000000e+00> : vector<16x8xf32>
    %139 = tpu.matmul %138, %126, %cst_45 {dimension_numbers = #tpu.dot_dimension_numbers<[1], [0], [0], [1], [0, 0, 1, 1], [], []>} : vector<16x16xbf16>, vector<16x8xbf16>, vector<16x8xf32> -> vector<16x8xf32>
    %140 = arith.truncf %139 : vector<16x8xf32> to vector<16x8xbf16>
    %141 = vector.extract_strided_slice %42 {offsets = [24, 0], sizes = [8, 32], strides = [1, 1]} : vector<32x32xbf16> to vector<8x32xbf16>
    %cst_46 = arith.constant dense<0.000000e+00> : vector<16x32xf32>
    %142 = tpu.matmul %140, %141, %cst_46 {dimension_numbers = #tpu.dot_dimension_numbers<[1], [0], [0], [1], [0, 0, 1, 1], [], []>} : vector<16x8xbf16>, vector<8x32xbf16>, vector<16x32xf32> -> vector<16x32xf32>
    %143 = arith.addf %118, %142 : vector<16x32xf32>
    %c0_47 = arith.constant 0 : index
    %c0_48 = arith.constant 0 : index
    %144 = vector.load %arg25[%c0_47, %c0_48] : memref<32x32xf32, #tpu.memory_space<vmem>>, vector<16x32xf32>
    tpu.vector_store %arg25[%c0_47, %c0_48], %143 {strides = array<i32>} : memref<32x32xf32, #tpu.memory_space<vmem>>, vector<16x32xf32>,
    %cst_49 = arith.constant 0.000000e+00 : f32
    %145 = vector.broadcast %cst_49 : f32 to vector<16x32xf32>
    %146 = vector.extract_strided_slice %38 {offsets = [16, 0], sizes = [16, 8], strides = [1, 1]} : vector<32x32xf32> to vector<16x8xf32>
    %cst_50 = arith.constant 0.353553385 : f32
    %147 = vector.broadcast %cst_50 : f32 to vector<16x8xf32>
    %148 = arith.mulf %146, %147 : vector<16x8xf32>
    %149 = arith.truncf %148 : vector<16x8xf32> to vector<16x8xbf16>
    %150 = vector.extract_strided_slice %39 {offsets = [16, 0], sizes = [16, 8], strides = [1, 1]} : vector<32x32xf32> to vector<16x8xf32>
    %151 = arith.truncf %150 : vector<16x8xf32> to vector<16x8xbf16>
    %152 = vector.extract_strided_slice %40 {offsets = [16, 0], sizes = [16, 8], strides = [1, 1]} : vector<32x32xf32> to vector<16x8xf32>
    %153 = arith.truncf %152 : vector<16x8xf32> to vector<16x8xbf16>
    %154 = tpu.transpose %151, [1, 0] : vector<16x8xbf16> -> vector<8x16xbf16>
    %cst_51 = arith.constant dense<0.000000e+00> : vector<16x16xf32>
    %155 = tpu.matmul %149, %154, %cst_51 {dimension_numbers = #tpu.dot_dimension_numbers<[1], [0], [0], [1], [0, 0, 1, 1], [], []>} : vector<16x8xbf16>, vector<8x16xbf16>, vector<16x16xf32> -> vector<16x16xf32>
    %cst_52 = arith.constant dense<0xFF800000> : vector<16xf32>
    %156 = vector.multi_reduction <maximumf>, %155, %cst_52 [1] : vector<16x16xf32> to vector<16xf32>
    %157 = vector.shape_cast %156 : vector<16xf32> to vector<16x1xf32>
    %158 = vector.broadcast %157 : vector<16x1xf32> to vector<16x16xf32>
    %159 = arith.subf %155, %158 : vector<16x16xf32>
    %160 = math.exp %159 : vector<16x16xf32>
    %cst_53 = arith.constant dense<0.000000e+00> : vector<16xf32>
    %161 = vector.multi_reduction <add>, %160, %cst_53 [1] : vector<16x16xf32> to vector<16xf32>
    %162 = vector.shape_cast %161 : vector<16xf32> to vector<16x1xf32>
    %163 = vector.broadcast %162 : vector<16x1xf32> to vector<16x16xf32>
    %164 = arith.divf %160, %163 : vector<16x16xf32>
    %165 = arith.truncf %164 : vector<16x16xf32> to vector<16x16xbf16>
    %cst_54 = arith.constant dense<0.000000e+00> : vector<16x8xf32>
    %166 = tpu.matmul %165, %153, %cst_54 {dimension_numbers = #tpu.dot_dimension_numbers<[1], [0], [0], [1], [0, 0, 1, 1], [], []>} : vector<16x16xbf16>, vector<16x8xbf16>, vector<16x8xf32> -> vector<16x8xf32>
    %167 = arith.truncf %166 : vector<16x8xf32> to vector<16x8xbf16>
    %168 = vector.extract_strided_slice %42 {offsets = [0, 0], sizes = [8, 32], strides = [1, 1]} : vector<32x32xbf16> to vector<8x32xbf16>
    %cst_55 = arith.constant dense<0.000000e+00> : vector<16x32xf32>
    %169 = tpu.matmul %167, %168, %cst_55 {dimension_numbers = #tpu.dot_dimension_numbers<[1], [0], [0], [1], [0, 0, 1, 1], [], []>} : vector<16x8xbf16>, vector<8x32xbf16>, vector<16x32xf32> -> vector<16x32xf32>
    %170 = arith.addf %145, %169 : vector<16x32xf32>
    %171 = vector.extract_strided_slice %38 {offsets = [16, 8], sizes = [16, 8], strides = [1, 1]} : vector<32x32xf32> to vector<16x8xf32>
    %cst_56 = arith.constant 0.353553385 : f32
    %172 = vector.broadcast %cst_56 : f32 to vector<16x8xf32>
    %173 = arith.mulf %171, %172 : vector<16x8xf32>
    %174 = arith.truncf %173 : vector<16x8xf32> to vector<16x8xbf16>
    %175 = vector.extract_strided_slice %39 {offsets = [16, 8], sizes = [16, 8], strides = [1, 1]} : vector<32x32xf32> to vector<16x8xf32>
    %176 = arith.truncf %175 : vector<16x8xf32> to vector<16x8xbf16>
    %177 = vector.extract_strided_slice %40 {offsets = [16, 8], sizes = [16, 8], strides = [1, 1]} : vector<32x32xf32> to vector<16x8xf32>
    %178 = arith.truncf %177 : vector<16x8xf32> to vector<16x8xbf16>
    %179 = tpu.transpose %176, [1, 0] : vector<16x8xbf16> -> vector<8x16xbf16>
    %cst_57 = arith.constant dense<0.000000e+00> : vector<16x16xf32>
    %180 = tpu.matmul %174, %179, %cst_57 {dimension_numbers = #tpu.dot_dimension_numbers<[1], [0], [0], [1], [0, 0, 1, 1], [], []>} : vector<16x8xbf16>, vector<8x16xbf16>, vector<16x16xf32> -> vector<16x16xf32>
    %cst_58 = arith.constant dense<0xFF800000> : vector<16xf32>
    %181 = vector.multi_reduction <maximumf>, %180, %cst_58 [1] : vector<16x16xf32> to vector<16xf32>
    %182 = vector.shape_cast %181 : vector<16xf32> to vector<16x1xf32>
    %183 = vector.broadcast %182 : vector<16x1xf32> to vector<16x16xf32>
    %184 = arith.subf %180, %183 : vector<16x16xf32>
    %185 = math.exp %184 : vector<16x16xf32>
    %cst_59 = arith.constant dense<0.000000e+00> : vector<16xf32>
    %186 = vector.multi_reduction <add>, %185, %cst_59 [1] : vector<16x16xf32> to vector<16xf32>
    %187 = vector.shape_cast %186 : vector<16xf32> to vector<16x1xf32>
    %188 = vector.broadcast %187 : vector<16x1xf32> to vector<16x16xf32>
    %189 = arith.divf %185, %188 : vector<16x16xf32>
    %190 = arith.truncf %189 : vector<16x16xf32> to vector<16x16xbf16>
    %cst_60 = arith.constant dense<0.000000e+00> : vector<16x8xf32>
    %191 = tpu.matmul %190, %178, %cst_60 {dimension_numbers = #tpu.dot_dimension_numbers<[1], [0], [0], [1], [0, 0, 1, 1], [], []>} : vector<16x16xbf16>, vector<16x8xbf16>, vector<16x8xf32> -> vector<16x8xf32>
    %192 = arith.truncf %191 : vector<16x8xf32> to vector<16x8xbf16>
    %193 = vector.extract_strided_slice %42 {offsets = [8, 0], sizes = [8, 32], strides = [1, 1]} : vector<32x32xbf16> to vector<8x32xbf16>
    %cst_61 = arith.constant dense<0.000000e+00> : vector<16x32xf32>
    %194 = tpu.matmul %192, %193, %cst_61 {dimension_numbers = #tpu.dot_dimension_numbers<[1], [0], [0], [1], [0, 0, 1, 1], [], []>} : vector<16x8xbf16>, vector<8x32xbf16>, vector<16x32xf32> -> vector<16x32xf32>
    %195 = arith.addf %170, %194 : vector<16x32xf32>
    %196 = vector.extract_strided_slice %38 {offsets = [16, 16], sizes = [16, 8], strides = [1, 1]} : vector<32x32xf32> to vector<16x8xf32>
    %cst_62 = arith.constant 0.353553385 : f32
    %197 = vector.broadcast %cst_62 : f32 to vector<16x8xf32>
    %198 = arith.mulf %196, %197 : vector<16x8xf32>
    %199 = arith.truncf %198 : vector<16x8xf32> to vector<16x8xbf16>
    %200 = vector.extract_strided_slice %39 {offsets = [16, 16], sizes = [16, 8], strides = [1, 1]} : vector<32x32xf32> to vector<16x8xf32>
    %201 = arith.truncf %200 : vector<16x8xf32> to vector<16x8xbf16>
    %202 = vector.extract_strided_slice %40 {offsets = [16, 16], sizes = [16, 8], strides = [1, 1]} : vector<32x32xf32> to vector<16x8xf32>
    %203 = arith.truncf %202 : vector<16x8xf32> to vector<16x8xbf16>
    %204 = tpu.transpose %201, [1, 0] : vector<16x8xbf16> -> vector<8x16xbf16>
    %cst_63 = arith.constant dense<0.000000e+00> : vector<16x16xf32>
    %205 = tpu.matmul %199, %204, %cst_63 {dimension_numbers = #tpu.dot_dimension_numbers<[1], [0], [0], [1], [0, 0, 1, 1], [], []>} : vector<16x8xbf16>, vector<8x16xbf16>, vector<16x16xf32> -> vector<16x16xf32>
    %cst_64 = arith.constant dense<0xFF800000> : vector<16xf32>
    %206 = vector.multi_reduction <maximumf>, %205, %cst_64 [1] : vector<16x16xf32> to vector<16xf32>
    %207 = vector.shape_cast %206 : vector<16xf32> to vector<16x1xf32>
    %208 = vector.broadcast %207 : vector<16x1xf32> to vector<16x16xf32>
    %209 = arith.subf %205, %208 : vector<16x16xf32>
    %210 = math.exp %209 : vector<16x16xf32>
    %cst_65 = arith.constant dense<0.000000e+00> : vector<16xf32>
    %211 = vector.multi_reduction <add>, %210, %cst_65 [1] : vector<16x16xf32> to vector<16xf32>
    %212 = vector.shape_cast %211 : vector<16xf32> to vector<16x1xf32>
    %213 = vector.broadcast %212 : vector<16x1xf32> to vector<16x16xf32>
    %214 = arith.divf %210, %213 : vector<16x16xf32>
    %215 = arith.truncf %214 : vector<16x16xf32> to vector<16x16xbf16>
    %cst_66 = arith.constant dense<0.000000e+00> : vector<16x8xf32>
    %216 = tpu.matmul %215, %203, %cst_66 {dimension_numbers = #tpu.dot_dimension_numbers<[1], [0], [0], [1], [0, 0, 1, 1], [], []>} : vector<16x16xbf16>, vector<16x8xbf16>, vector<16x8xf32> -> vector<16x8xf32>
    %217 = arith.truncf %216 : vector<16x8xf32> to vector<16x8xbf16>
    %218 = vector.extract_strided_slice %42 {offsets = [16, 0], sizes = [8, 32], strides = [1, 1]} : vector<32x32xbf16> to vector<8x32xbf16>
    %cst_67 = arith.constant dense<0.000000e+00> : vector<16x32xf32>
    %219 = tpu.matmul %217, %218, %cst_67 {dimension_numbers = #tpu.dot_dimension_numbers<[1], [0], [0], [1], [0, 0, 1, 1], [], []>} : vector<16x8xbf16>, vector<8x32xbf16>, vector<16x32xf32> -> vector<16x32xf32>
    %220 = arith.addf %195, %219 : vector<16x32xf32>
    %221 = vector.extract_strided_slice %38 {offsets = [16, 24], sizes = [16, 8], strides = [1, 1]} : vector<32x32xf32> to vector<16x8xf32>
    %cst_68 = arith.constant 0.353553385 : f32
    %222 = vector.broadcast %cst_68 : f32 to vector<16x8xf32>
    %223 = arith.mulf %221, %222 : vector<16x8xf32>
    %224 = arith.truncf %223 : vector<16x8xf32> to vector<16x8xbf16>
    %225 = vector.extract_strided_slice %39 {offsets = [16, 24], sizes = [16, 8], strides = [1, 1]} : vector<32x32xf32> to vector<16x8xf32>
    %226 = arith.truncf %225 : vector<16x8xf32> to vector<16x8xbf16>
    %227 = vector.extract_strided_slice %40 {offsets = [16, 24], sizes = [16, 8], strides = [1, 1]} : vector<32x32xf32> to vector<16x8xf32>
    %228 = arith.truncf %227 : vector<16x8xf32> to vector<16x8xbf16>
    %229 = tpu.transpose %226, [1, 0] : vector<16x8xbf16> -> vector<8x16xbf16>
    %cst_69 = arith.constant dense<0.000000e+00> : vector<16x16xf32>
    %230 = tpu.matmul %224, %229, %cst_69 {dimension_numbers = #tpu.dot_dimension_numbers<[1], [0], [0], [1], [0, 0, 1, 1], [], []>} : vector<16x8xbf16>, vector<8x16xbf16>, vector<16x16xf32> -> vector<16x16xf32>
    %cst_70 = arith.constant dense<0xFF800000> : vector<16xf32>
    %231 = vector.multi_reduction <maximumf>, %230, %cst_70 [1] : vector<16x16xf32> to vector<16xf32>
    %232 = vector.shape_cast %231 : vector<16xf32> to vector<16x1xf32>
    %233 = vector.broadcast %232 : vector<16x1xf32> to vector<16x16xf32>
    %234 = arith.subf %230, %233 : vector<16x16xf32>
    %235 = math.exp %234 : vector<16x16xf32>
    %cst_71 = arith.constant dense<0.000000e+00> : vector<16xf32>
    %236 = vector.multi_reduction <add>, %235, %cst_71 [1] : vector<16x16xf32> to vector<16xf32>
    %237 = vector.shape_cast %236 : vector<16xf32> to vector<16x1xf32>
    %238 = vector.broadcast %237 : vector<16x1xf32> to vector<16x16xf32>
    %239 = arith.divf %235, %238 : vector<16x16xf32>
    %240 = arith.truncf %239 : vector<16x16xf32> to vector<16x16xbf16>
    %cst_72 = arith.constant dense<0.000000e+00> : vector<16x8xf32>
    %241 = tpu.matmul %240, %228, %cst_72 {dimension_numbers = #tpu.dot_dimension_numbers<[1], [0], [0], [1], [0, 0, 1, 1], [], []>} : vector<16x16xbf16>, vector<16x8xbf16>, vector<16x8xf32> -> vector<16x8xf32>
    %242 = arith.truncf %241 : vector<16x8xf32> to vector<16x8xbf16>
    %243 = vector.extract_strided_slice %42 {offsets = [24, 0], sizes = [8, 32], strides = [1, 1]} : vector<32x32xbf16> to vector<8x32xbf16>
    %cst_73 = arith.constant dense<0.000000e+00> : vector<16x32xf32>
    %244 = tpu.matmul %242, %243, %cst_73 {dimension_numbers = #tpu.dot_dimension_numbers<[1], [0], [0], [1], [0, 0, 1, 1], [], []>} : vector<16x8xbf16>, vector<8x32xbf16>, vector<16x32xf32> -> vector<16x32xf32>
    %245 = arith.addf %220, %244 : vector<16x32xf32>
    %c16 = arith.constant 16 : index
    %c0_74 = arith.constant 0 : index
    %246 = vector.load %arg25[%c16, %c0_74] : memref<32x32xf32, #tpu.memory_space<vmem>>, vector<16x32xf32>
    tpu.vector_store %arg25[%c16, %c0_74], %245 {strides = array<i32>} : memref<32x32xf32, #tpu.memory_space<vmem>>, vector<16x32xf32>,
    %c0_75 = arith.constant 0 : index
    %c0_76 = arith.constant 0 : index
    %247 = vector.load %arg25[%c0_75, %c0_76] : memref<32x32xf32, #tpu.memory_space<vmem>>, vector<32x32xf32>
    %248 = arith.addf %3, %247 : vector<32x32xf32>
    %c0_77 = arith.constant 0 : index
    %c0_78 = arith.constant 0 : index
    %c0_79 = arith.constant 0 : index
    %249 = vector.load %arg11[%c0_77, %c0_78, %c0_79] : memref<1x1x32xf32, #tpu.memory_space<vmem>>, vector<1x1x32xf32>
    %250 = vector.shape_cast %249 : vector<1x1x32xf32> to vector<1x32xf32>
    %251 = vector.broadcast %250 : vector<1x32xf32> to vector<32x32xf32>
    %252 = arith.addf %248, %251 : vector<32x32xf32>
    %c0_80 = arith.constant 0 : index
    %c0_81 = arith.constant 0 : index
    %c0_82 = arith.constant 0 : index
    %253 = vector.load %arg12[%c0_80, %c0_81, %c0_82] : memref<1x1x32xf32, #tpu.memory_space<vmem>>, vector<1x1x32xf32>
    %254 = vector.shape_cast %253 : vector<1x1x32xf32> to vector<1x32xf32>
    %c0_83 = arith.constant 0 : index
    %c0_84 = arith.constant 0 : index
    %c0_85 = arith.constant 0 : index
    %255 = vector.load %arg13[%c0_83, %c0_84, %c0_85] : memref<1x1x32xf32, #tpu.memory_space<vmem>>, vector<1x1x32xf32>
    %256 = vector.shape_cast %255 : vector<1x1x32xf32> to vector<1x32xf32>
    %cst_86 = arith.constant dense<0.000000e+00> : vector<32xf32>
    %257 = vector.multi_reduction <add>, %252, %cst_86 [1] : vector<32x32xf32> to vector<32xf32>
    %258 = vector.shape_cast %257 : vector<32xf32> to vector<32x1xf32>
    %cst_87 = arith.constant 3.200000e+01 : f32
    %259 = vector.broadcast %cst_87 : f32 to vector<32x1xf32>
    %260 = arith.divf %258, %259 : vector<32x1xf32>
    %261 = vector.broadcast %260 : vector<32x1xf32> to vector<32x32xf32>
    %262 = arith.subf %252, %261 : vector<32x32xf32>
    %263 = arith.mulf %262, %262 : vector<32x32xf32>
    %cst_88 = arith.constant dense<0.000000e+00> : vector<32xf32>
    %264 = vector.multi_reduction <add>, %263, %cst_88 [1] : vector<32x32xf32> to vector<32xf32>
    %265 = vector.shape_cast %264 : vector<32xf32> to vector<32x1xf32>
    %cst_89 = arith.constant 3.200000e+01 : f32
    %266 = vector.broadcast %cst_89 : f32 to vector<32x1xf32>
    %267 = arith.divf %265, %266 : vector<32x1xf32>
    %268 = vector.broadcast %260 : vector<32x1xf32> to vector<32x32xf32>
    %269 = arith.subf %252, %268 : vector<32x32xf32>
    %cst_90 = arith.constant 9.99999974E-6 : f32
    %270 = vector.broadcast %cst_90 : f32 to vector<32x1xf32>
    %271 = arith.addf %267, %270 : vector<32x1xf32>
    %272 = math.rsqrt %271 : vector<32x1xf32>
    %273 = vector.broadcast %272 : vector<32x1xf32> to vector<32x32xf32>
    %274 = arith.mulf %269, %273 : vector<32x32xf32>
    %275 = vector.broadcast %254 : vector<1x32xf32> to vector<32x32xf32>
    %276 = arith.mulf %274, %275 : vector<32x32xf32>
    %277 = vector.broadcast %256 : vector<1x32xf32> to vector<32x32xf32>
    %278 = arith.addf %276, %277 : vector<32x32xf32>
    %279 = arith.truncf %278 : vector<32x32xf32> to vector<32x32xbf16>
    %c0_91 = arith.constant 0 : index
    %c0_92 = arith.constant 0 : index
    %c0_93 = arith.constant 0 : index
    %280 = vector.load %arg14[%c0_91, %c0_92, %c0_93] : memref<1x32x128xbf16, #tpu.memory_space<vmem>>, vector<1x32x128xbf16>
    %281 = vector.shape_cast %280 : vector<1x32x128xbf16> to vector<32x128xbf16>
    %cst_94 = arith.constant dense<0.000000e+00> : vector<32x128xf32>
    %282 = tpu.matmul %279, %281, %cst_94 {dimension_numbers = #tpu.dot_dimension_numbers<[1], [0], [0], [1], [0, 0, 1, 1], [], []>} : vector<32x32xbf16>, vector<32x128xbf16>, vector<32x128xf32> -> vector<32x128xf32>
    %c0_95 = arith.constant 0 : index
    %c0_96 = arith.constant 0 : index
    %c0_97 = arith.constant 0 : index
    %283 = vector.load %arg15[%c0_95, %c0_96, %c0_97] : memref<1x1x128xf32, #tpu.memory_space<vmem>>, vector<1x1x128xf32>
    %284 = vector.shape_cast %283 : vector<1x1x128xf32> to vector<1x128xf32>
    %285 = vector.broadcast %284 : vector<1x128xf32> to vector<32x128xf32>
    %286 = arith.addf %282, %285 : vector<32x128xf32>
    %cst_98 = arith.constant 5.000000e-01 : f32
    %287 = vector.broadcast %cst_98 : f32 to vector<32x128xf32>
    %288 = arith.mulf %287, %286 : vector<32x128xf32>
    %cst_99 = arith.constant 4.471500e-02 : f32
    %289 = vector.broadcast %cst_99 : f32 to vector<32x128xf32>
    %290 = arith.mulf %289, %286 : vector<32x128xf32>
    %291 = arith.mulf %290, %286 : vector<32x128xf32>
    %292 = arith.mulf %291, %286 : vector<32x128xf32>
    %293 = arith.addf %286, %292 : vector<32x128xf32>
    %cst_100 = arith.constant 0.797884583 : f32
    %294 = vector.broadcast %cst_100 : f32 to vector<32x128xf32>
    %295 = arith.mulf %294, %293 : vector<32x128xf32>
    %296 = math.tanh %295 : vector<32x128xf32>
    %cst_101 = arith.constant 1.000000e+00 : f32
    %297 = vector.broadcast %cst_101 : f32 to vector<32x128xf32>
    %298 = arith.addf %297, %296 : vector<32x128xf32>
    %299 = arith.mulf %288, %298 : vector<32x128xf32>
    %300 = arith.truncf %299 : vector<32x128xf32> to vector<32x128xbf16>
    %c0_102 = arith.constant 0 : index
    %c0_103 = arith.constant 0 : index
    %c0_104 = arith.constant 0 : index
    %301 = vector.load %arg16[%c0_102, %c0_103, %c0_104] : memref<1x128x32xbf16, #tpu.memory_space<vmem>>, vector<1x128x32xbf16>
    %302 = vector.shape_cast %301 : vector<1x128x32xbf16> to vector<128x32xbf16>
    %cst_105 = arith.constant dense<0.000000e+00> : vector<32x32xf32>
    %303 = tpu.matmul %300, %302, %cst_105 {dimension_numbers = #tpu.dot_dimension_numbers<[1], [0], [0], [1], [0, 0, 1, 1], [], []>} : vector<32x128xbf16>, vector<128x32xbf16>, vector<32x32xf32> -> vector<32x32xf32>
    %c0_106 = arith.constant 0 : index
    %c0_107 = arith.constant 0 : index
    %c0_108 = arith.constant 0 : index
    %304 = vector.load %arg17[%c0_106, %c0_107, %c0_108] : memref<1x1x32xf32, #tpu.memory_space<vmem>>, vector<1x1x32xf32>
    %305 = vector.shape_cast %304 : vector<1x1x32xf32> to vector<1x32xf32>
    %306 = vector.broadcast %305 : vector<1x32xf32> to vector<32x32xf32>
    %307 = arith.addf %303, %306 : vector<32x32xf32>
    %308 = arith.addf %252, %307 : vector<32x32xf32>
    %c0_109 = arith.constant 0 : index
    %c0_110 = arith.constant 0 : index
    %309 = vector.load %arg23[%c0_109, %c0_110] : memref<32x32xf32, #tpu.memory_space<vmem>>, vector<32x32xf32>
    tpu.vector_store %arg23[%c0_109, %c0_110], %308 {strides = array<i32>} : memref<32x32xf32, #tpu.memory_space<vmem>>, vector<32x32xf32>,
    %c1_i32 = arith.constant 1 : i32
    %310 = arith.addi %arg1, %c1_i32 : i32
    %c2_i32 = arith.constant 2 : i32
    %c0_i32_111 = arith.constant 0 : i32
    %311 = arith.cmpi eq, %c2_i32, %c0_i32_111 : i32
    %c1_i32_112 = arith.constant 1 : i32
    %312 = arith.select %311, %c1_i32_112, %c2_i32 : i32
    %313 = arith.remsi %310, %312 : i32
    %c0_i32_113 = arith.constant 0 : i32
    %314 = arith.cmpi ne, %313, %c0_i32_113 : i32
    %c0_i32_114 = arith.constant 0 : i32
    %315 = arith.cmpi slt, %313, %c0_i32_114 : i32
    %c0_i32_115 = arith.constant 0 : i32
    %316 = arith.cmpi slt, %312, %c0_i32_115 : i32
    %317 = arith.xori %315, %316 : i1
    %318 = arith.andi %317, %314 : i1
    %319 = arith.addi %313, %312 : i32
    %320 = arith.select %318, %319, %313 : i32
    %c0_i32_116 = arith.constant 0 : i32
    %321 = arith.cmpi eq, %320, %c0_i32_116 : i32
    %322 = arith.extui %321 : i1 to i32
    %c0_i32_117 = arith.constant 0 : i32
    %323 = arith.cmpi ne, %322, %c0_i32_117 : i32
    scf.if %323 {
      %c0_119 = arith.constant 0 : index
      %c0_120 = arith.constant 0 : index
      %327 = vector.load %arg23[%c0_119, %c0_120] : memref<32x32xf32, #tpu.memory_space<vmem>>, vector<32x32xf32>
      %c0_121 = arith.constant 0 : index
      %c0_122 = arith.constant 0 : index
      %328 = vector.load %arg24[%c0_121, %c0_122] : memref<32x32xf32, #tpu.memory_space<vmem>>, vector<32x32xf32>
      %329 = arith.addf %327, %328 : vector<32x32xf32>
      %c0_123 = arith.constant 0 : index
      %c0_124 = arith.constant 0 : index
      %330 = vector.load %arg23[%c0_123, %c0_124] : memref<32x32xf32, #tpu.memory_space<vmem>>, vector<32x32xf32>
      tpu.vector_store %arg23[%c0_123, %c0_124], %329 {strides = array<i32>} : memref<32x32xf32, #tpu.memory_space<vmem>>, vector<32x32xf32>,
      %c0_125 = arith.constant 0 : index
      %c0_126 = arith.constant 0 : index
      %331 = vector.load %arg24[%c0_125, %c0_126] : memref<32x32xf32, #tpu.memory_space<vmem>>, vector<32x32xf32>
      tpu.vector_store %arg24[%c0_125, %c0_126], %329 {strides = array<i32>} : memref<32x32xf32, #tpu.memory_space<vmem>>, vector<32x32xf32>,
    } else {
    }
    %c3_i32 = arith.constant 3 : i32
    %324 = arith.cmpi eq, %arg1, %c3_i32 : i32
    %325 = arith.extui %324 : i1 to i32
    %c0_i32_118 = arith.constant 0 : i32
    %326 = arith.cmpi ne, %325, %c0_i32_118 : i32
    scf.if %326 {
      %c0_119 = arith.constant 0 : index
      %c0_120 = arith.constant 0 : index
      %327 = vector.load %arg23[%c0_119, %c0_120] : memref<32x32xf32, #tpu.memory_space<vmem>>, vector<32x32xf32>
      %c0_121 = arith.constant 0 : index
      %c0_122 = arith.constant 0 : index
      %328 = vector.load %arg18[%c0_121, %c0_122] : memref<1x32xf32, #tpu.memory_space<vmem>>, vector<1x32xf32>
      %c0_123 = arith.constant 0 : index
      %c0_124 = arith.constant 0 : index
      %329 = vector.load %arg19[%c0_123, %c0_124] : memref<1x32xf32, #tpu.memory_space<vmem>>, vector<1x32xf32>
      %cst_125 = arith.constant dense<0.000000e+00> : vector<32xf32>
      %330 = vector.multi_reduction <add>, %327, %cst_125 [1] : vector<32x32xf32> to vector<32xf32>
      %331 = vector.shape_cast %330 : vector<32xf32> to vector<32x1xf32>
      %cst_126 = arith.constant 3.200000e+01 : f32
      %332 = vector.broadcast %cst_126 : f32 to vector<32x1xf32>
      %333 = arith.divf %331, %332 : vector<32x1xf32>
      %334 = vector.broadcast %333 : vector<32x1xf32> to vector<32x32xf32>
      %335 = arith.subf %327, %334 : vector<32x32xf32>
      %336 = arith.mulf %335, %335 : vector<32x32xf32>
      %cst_127 = arith.constant dense<0.000000e+00> : vector<32xf32>
      %337 = vector.multi_reduction <add>, %336, %cst_127 [1] : vector<32x32xf32> to vector<32xf32>
      %338 = vector.shape_cast %337 : vector<32xf32> to vector<32x1xf32>
      %cst_128 = arith.constant 3.200000e+01 : f32
      %339 = vector.broadcast %cst_128 : f32 to vector<32x1xf32>
      %340 = arith.divf %338, %339 : vector<32x1xf32>
      %341 = vector.broadcast %333 : vector<32x1xf32> to vector<32x32xf32>
      %342 = arith.subf %327, %341 : vector<32x32xf32>
      %cst_129 = arith.constant 9.99999974E-6 : f32
      %343 = vector.broadcast %cst_129 : f32 to vector<32x1xf32>
      %344 = arith.addf %340, %343 : vector<32x1xf32>
      %345 = math.rsqrt %344 : vector<32x1xf32>
      %346 = vector.broadcast %345 : vector<32x1xf32> to vector<32x32xf32>
      %347 = arith.mulf %342, %346 : vector<32x32xf32>
      %348 = vector.broadcast %328 : vector<1x32xf32> to vector<32x32xf32>
      %349 = arith.mulf %347, %348 : vector<32x32xf32>
      %350 = vector.broadcast %329 : vector<1x32xf32> to vector<32x32xf32>
      %351 = arith.addf %349, %350 : vector<32x32xf32>
      %352 = vector.extract_strided_slice %351 {offsets = [0, 0], sizes = [16, 32], strides = [1, 1]} : vector<32x32xf32> to vector<16x32xf32>
      %cst_130 = arith.constant dense<0.000000e+00> : vector<32xf32>
      %353 = vector.multi_reduction <add>, %352, %cst_130 [0] : vector<16x32xf32> to vector<32xf32>
      %354 = vector.shape_cast %353 : vector<32xf32> to vector<1x32xf32>
      %cst_131 = arith.constant 1.600000e+01 : f32
      %355 = vector.broadcast %cst_131 : f32 to vector<1x32xf32>
      %356 = arith.divf %354, %355 : vector<1x32xf32>
      %c0_132 = arith.constant 0 : index
      %c0_133 = arith.constant 0 : index
      %357 = vector.load %arg26[%c0_132, %c0_133] : memref<2x32xf32, #tpu.memory_space<vmem>>, vector<1x32xf32>
      tpu.vector_store %arg26[%c0_132, %c0_133], %356 {strides = array<i32>} : memref<2x32xf32, #tpu.memory_space<vmem>>, vector<1x32xf32>,
      %358 = vector.extract_strided_slice %351 {offsets = [16, 0], sizes = [16, 32], strides = [1, 1]} : vector<32x32xf32> to vector<16x32xf32>
      %cst_134 = arith.constant dense<0.000000e+00> : vector<32xf32>
      %359 = vector.multi_reduction <add>, %358, %cst_134 [0] : vector<16x32xf32> to vector<32xf32>
      %360 = vector.shape_cast %359 : vector<32xf32> to vector<1x32xf32>
      %cst_135 = arith.constant 1.600000e+01 : f32
      %361 = vector.broadcast %cst_135 : f32 to vector<1x32xf32>
      %362 = arith.divf %360, %361 : vector<1x32xf32>
      %c1 = arith.constant 1 : index
      %c0_136 = arith.constant 0 : index
      %363 = vector.load %arg26[%c1, %c0_136] : memref<2x32xf32, #tpu.memory_space<vmem>>, vector<1x32xf32>
      tpu.vector_store %arg26[%c1, %c0_136], %362 {strides = array<i32>} : memref<2x32xf32, #tpu.memory_space<vmem>>, vector<1x32xf32>,
      %c0_137 = arith.constant 0 : index
      %c0_138 = arith.constant 0 : index
      %364 = vector.load %arg26[%c0_137, %c0_138] : memref<2x32xf32, #tpu.memory_space<vmem>>, vector<2x32xf32>
      %365 = arith.truncf %364 : vector<2x32xf32> to vector<2x32xbf16>
      %c0_139 = arith.constant 0 : index
      %c0_140 = arith.constant 0 : index
      %366 = vector.load %arg20[%c0_139, %c0_140] : memref<32x128xbf16, #tpu.memory_space<vmem>>, vector<32x128xbf16>
      %cst_141 = arith.constant dense<0.000000e+00> : vector<2x128xf32>
      %367 = tpu.matmul %365, %366, %cst_141 {dimension_numbers = #tpu.dot_dimension_numbers<[1], [0], [0], [1], [0, 0, 1, 1], [], []>} : vector<2x32xbf16>, vector<32x128xbf16>, vector<2x128xf32> -> vector<2x128xf32>
      %c0_142 = arith.constant 0 : index
      %c0_143 = arith.constant 0 : index
      %368 = vector.load %arg21[%c0_142, %c0_143] : memref<1x128xf32, #tpu.memory_space<vmem>>, vector<1x128xf32>
      %369 = vector.broadcast %368 : vector<1x128xf32> to vector<2x128xf32>
      %370 = arith.addf %367, %369 : vector<2x128xf32>
      %c0_144 = arith.constant 0 : index
      %c0_145 = arith.constant 0 : index
      %371 = vector.load %arg22[%c0_144, %c0_145] : memref<2x128xf32, #tpu.memory_space<vmem>>, vector<2x128xf32>
      tpu.vector_store %arg22[%c0_144, %c0_145], %370 {strides = array<i32>} : memref<2x128xf32, #tpu.memory_space<vmem>>, vector<2x128xf32>,
    } else {
    }
    return
  }
  func.func @transform_0(%arg0: i32, %arg1: i32) -> (i32, i32, i32) {
    %c0_i32 = arith.constant 0 : i32
    %c0_i32_0 = arith.constant 0 : i32
    %c0_i32_1 = arith.constant 0 : i32
    return %arg0, %c0_i32, %c0_i32_0 : i32, i32, i32
  }
  func.func @transform_1(%arg0: i32, %arg1: i32) -> (i32, i32) {
    %c0_i32 = arith.constant 0 : i32
    %c0_i32_0 = arith.constant 0 : i32
    %c0_i32_1 = arith.constant 0 : i32
    return %c0_i32, %c0_i32_0 : i32, i32
  }
  func.func @transform_2(%arg0: i32, %arg1: i32) -> (i32, i32) {
    %c0_i32 = arith.constant 0 : i32
    %c0_i32_0 = arith.constant 0 : i32
    %c0_i32_1 = arith.constant 0 : i32
    return %c0_i32, %c0_i32_0 : i32, i32
  }
  func.func @transform_3(%arg0: i32, %arg1: i32) -> (i32, i32) {
    %c0_i32 = arith.constant 0 : i32
    %c0_i32_0 = arith.constant 0 : i32
    %c0_i32_1 = arith.constant 0 : i32
    return %c0_i32, %c0_i32_0 : i32, i32
  }
  func.func @transform_4(%arg0: i32, %arg1: i32) -> (i32, i32, i32) {
    %c0_i32 = arith.constant 0 : i32
    %c0_i32_0 = arith.constant 0 : i32
    %c0_i32_1 = arith.constant 0 : i32
    return %arg1, %c0_i32, %c0_i32_0 : i32, i32, i32
  }
  func.func @transform_5(%arg0: i32, %arg1: i32) -> (i32, i32, i32) {
    %c0_i32 = arith.constant 0 : i32
    %c0_i32_0 = arith.constant 0 : i32
    %c0_i32_1 = arith.constant 0 : i32
    return %arg1, %c0_i32, %c0_i32_0 : i32, i32, i32
  }
  func.func @transform_6(%arg0: i32, %arg1: i32) -> (i32, i32, i32) {
    %c0_i32 = arith.constant 0 : i32
    %c0_i32_0 = arith.constant 0 : i32
    %c0_i32_1 = arith.constant 0 : i32
    return %arg1, %c0_i32, %c0_i32_0 : i32, i32, i32
  }
  func.func @transform_7(%arg0: i32, %arg1: i32) -> (i32, i32, i32) {
    %c0_i32 = arith.constant 0 : i32
    %c0_i32_0 = arith.constant 0 : i32
    %c0_i32_1 = arith.constant 0 : i32
    return %arg1, %c0_i32, %c0_i32_0 : i32, i32, i32
  }
  func.func @transform_8(%arg0: i32, %arg1: i32) -> (i32, i32, i32) {
    %c0_i32 = arith.constant 0 : i32
    %c0_i32_0 = arith.constant 0 : i32
    %c0_i32_1 = arith.constant 0 : i32
    return %arg1, %c0_i32, %c0_i32_0 : i32, i32, i32
  }
  func.func @transform_9(%arg0: i32, %arg1: i32) -> (i32, i32, i32) {
    %c0_i32 = arith.constant 0 : i32
    %c0_i32_0 = arith.constant 0 : i32
    %c0_i32_1 = arith.constant 0 : i32
    return %arg1, %c0_i32, %c0_i32_0 : i32, i32, i32
  }
  func.func @transform_10(%arg0: i32, %arg1: i32) -> (i32, i32, i32) {
    %c0_i32 = arith.constant 0 : i32
    %c0_i32_0 = arith.constant 0 : i32
    %c0_i32_1 = arith.constant 0 : i32
    return %arg1, %c0_i32, %c0_i32_0 : i32, i32, i32
  }
  func.func @transform_11(%arg0: i32, %arg1: i32) -> (i32, i32, i32) {
    %c0_i32 = arith.constant 0 : i32
    %c0_i32_0 = arith.constant 0 : i32
    %c0_i32_1 = arith.constant 0 : i32
    return %arg1, %c0_i32, %c0_i32_0 : i32, i32, i32
  }
  func.func @transform_12(%arg0: i32, %arg1: i32) -> (i32, i32, i32) {
    %c0_i32 = arith.constant 0 : i32
    %c0_i32_0 = arith.constant 0 : i32
    %c0_i32_1 = arith.constant 0 : i32
    return %arg1, %c0_i32, %c0_i32_0 : i32, i32, i32
  }
  func.func @transform_13(%arg0: i32, %arg1: i32) -> (i32, i32, i32) {
    %c0_i32 = arith.constant 0 : i32
    %c0_i32_0 = arith.constant 0 : i32
    %c0_i32_1 = arith.constant 0 : i32
    return %arg1, %c0_i32, %c0_i32_0 : i32, i32, i32
  }
  func.func @transform_14(%arg0: i32, %arg1: i32) -> (i32, i32, i32) {
    %c0_i32 = arith.constant 0 : i32
    %c0_i32_0 = arith.constant 0 : i32
    %c0_i32_1 = arith.constant 0 : i32
    return %arg1, %c0_i32, %c0_i32_0 : i32, i32, i32
  }
  func.func @transform_15(%arg0: i32, %arg1: i32) -> (i32, i32, i32) {
    %c0_i32 = arith.constant 0 : i32
    %c0_i32_0 = arith.constant 0 : i32
    %c0_i32_1 = arith.constant 0 : i32
    return %arg1, %c0_i32, %c0_i32_0 : i32, i32, i32
  }
  func.func @transform_16(%arg0: i32, %arg1: i32) -> (i32, i32) {
    %c0_i32 = arith.constant 0 : i32
    %c0_i32_0 = arith.constant 0 : i32
    %c0_i32_1 = arith.constant 0 : i32
    return %c0_i32, %c0_i32_0 : i32, i32
  }
  func.func @transform_17(%arg0: i32, %arg1: i32) -> (i32, i32) {
    %c0_i32 = arith.constant 0 : i32
    %c0_i32_0 = arith.constant 0 : i32
    %c0_i32_1 = arith.constant 0 : i32
    return %c0_i32, %c0_i32_0 : i32, i32
  }
  func.func @transform_18(%arg0: i32, %arg1: i32) -> (i32, i32) {
    %c0_i32 = arith.constant 0 : i32
    %c0_i32_0 = arith.constant 0 : i32
    %c0_i32_1 = arith.constant 0 : i32
    return %c0_i32, %c0_i32_0 : i32, i32
  }
  func.func @transform_19(%arg0: i32, %arg1: i32) -> (i32, i32) {
    %c0_i32 = arith.constant 0 : i32
    %c0_i32_0 = arith.constant 0 : i32
    %c0_i32_1 = arith.constant 0 : i32
    return %c0_i32, %c0_i32_0 : i32, i32
  }
  func.func @transform_20(%arg0: i32, %arg1: i32) -> (i32, i32) {
    %c0_i32 = arith.constant 0 : i32
    %c0_i32_0 = arith.constant 0 : i32
    return %arg0, %c0_i32 : i32, i32
  }
}

</mosaic_0001>

<bundles_post_ra>
// kernel: tpu_custom_call.1
= control target key start
LH: loop header
LB: loop body
LE: loop exit
PB: predicated region body
PF: predicated region fallthrough
CT: control target
= control target key end

     0   :  { %s3790_s0 = inlined_call_operand.vmem [shape: f32[2,16,8], index: 0, kind: input, shape index: {}]   ;;  %s3791_s1 = inlined_call_operand.vmem [shape: bf16[8,32], index: 1, kind: input, shape index: {}]   ;;  %s3792_s2 = inlined_call_operand.vmem [shape: f32[1,32], index: 2, kind: input, shape index: {}]   ;;  %s3793_s3 = inlined_call_operand.vmem [shape: f32[16,32], index: 3, kind: input, shape index: {}]   ;;  %s3794_s4 = inlined_call_operand.vmem [shape: f32[4,1,32], index: 4, kind: input, shape index: {}]   ;;  %s3795_s5 = inlined_call_operand.vmem [shape: f32[4,1,32], index: 5, kind: input, shape index: {}]   ;;  %s3796_s6 = inlined_call_operand.vmem [shape: bf16[4,32,96], index: 6, kind: input, shape index: {}]   ;;  %s3797_s7 = inlined_call_operand.vmem [shape: f32[4,1,96], index: 7, kind: input, shape index: {}]   ;;  %s3798_s8 = inlined_call_operand.vmem [shape: bf16[4,32,32], index: 8, kind: input, shape index: {}]   ;;  %s3799_s9 = inlined_call_operand.vmem [shape: f32[4,1,32], index: 9, kind: input, shape index: {}]   ;;  %s3800_s10 = inlined_call_operand.vmem [shape: f32[4,1,32], index: 10, kind: input, shape index: {}]   ;;  %s3801_s11 = inlined_call_operand.vmem [shape: f32[4,1,32], index: 11, kind: input, shape index: {}]   ;;  %s3802_s12 = inlined_call_operand.vmem [shape: bf16[4,32,128], index: 12, kind: input, shape index: {}]   ;;  %s3803_s13 = inlined_call_operand.vmem [shape: f32[4,1,128], index: 13, kind: input, shape index: {}]   ;;  %s3804_s14 = inlined_call_operand.vmem [shape: bf16[4,128,32], index: 14, kind: input, shape index: {}]   ;;  %s3805_s15 = inlined_call_operand.vmem [shape: f32[4,1,32], index: 15, kind: input, shape index: {}]   ;;  %s3806_s16 = inlined_call_operand.vmem [shape: f32[1,32], index: 16, kind: input, shape index: {}]   ;;  %s3807_s17 = inlined_call_operand.vmem [shape: f32[1,32], index: 17, kind: input, shape index: {}]   ;;  %s3808_s18 = inlined_call_operand.vmem [shape: bf16[32,128], index: 18, kind: input, shape index: {}]   ;;  %s3809_s19 = inlined_call_operand.vmem [shape: f32[1,128], index: 19, kind: input, shape index: {}]   ;;  %s3810_s20 = inlined_call_operand.hbm [shape: f32[2,128], index: 20, kind: output, shape index: {}]  }
   0x1   :  { %3817 = sst [smem:[#allocation12_spill]] %s3790_s0 }
   0x2   :  { %3818 = sst [smem:[#allocation13_spill]] %s3791_s1 }
   0x3   :  { %3819 = sst [smem:[#allocation14_spill]] %s3792_s2 }
   0x4   :  { %3820 = sst [smem:[#allocation15_spill]] %s3793_s3 }
   0x5   :  { %3821 = sst [smem:[#allocation16_spill]] %s3794_s4 }
   0x6   :  { %3822 = sst [smem:[#allocation17_spill]] %s3796_s6 }
   0x7   :  { %3823 = sst [smem:[#allocation18_spill]] %s3798_s8 }
   0x8   :  { %3824 = sst [smem:[#allocation19_spill]] %s3806_s16 }
   0x9   :  { %3825 = sst [smem:[#allocation20_spill]] %s3807_s17 }
   0xa   :  { %3826 = sst [smem:[#allocation21_spill]] %s3809_s19 }
   0xb   :  { %3827 = sst [smem:[#allocation22_spill]] %s3810_s20 }
   0xc   :  { %25 = vsyncpa [#allocation7], 0  ;;  %s3173_s1 = smov 0   ;;  %s3175_s22 = smov 0  }
   0xd   :  { %s3177_s23 = smov 0  }
   0xe LB: > { %3828 = sst [smem:[#allocation9_spill]] %s3048_s22  ;;  %s40_s2 = sadd.s32 1, %s3048_s22  ;;  %s3052_s23 = sphi %s3177_s23, %s31_s23   ;;  %s3048_s22 = sphi %s3175_s22, %s3864_s22   ;;  %s3044_s1 = sphi %s3173_s1, %s3863_s1  }
   0xf   : > { %3829 = sst [smem:[#allocation10_spill]] %s3052_s23  ;;  %p41_p0 = scmp.ge.s32.totalorder %s40_s2, 4 }
  0x10   : > { %p2711_p1 = scmp.ge.s32.totalorder %s3052_s23, 1  ;;  %p681_p2 = scmp.lt.s32.totalorder %s3052_s23, 5 }
  0x11   : > { %s3866_s2 = smov (%p41_p0, %s40_s2), 0 }
  0x12   : > { %3830 = sst [smem:[#allocation11_spill]] %s3866_s2  ;;  %p682_p3 = pnand %p2711_p1, %p681_p2 }
  0x13   : > { %p786_p4 = scmp.lt.s32.totalorder (!%p682_p3), %s3044_s1, 3  ;;  %s3832_s6 = sld [smem:[#allocation17_spill]] (!%p682_p3) }
  0x14   : > { %685 = sbr.rel (%p682_p3) target bundleno = 4419 (0x1143), region = 100  ;;  %s3833_s8 = sld [smem:[#allocation18_spill]] (!%p682_p3) }
  0x15   : > { %p2720_p5 = scmp.ne.s32.totalorder (!%p682_p3), %s3044_s1, 0 }
  0x19   : > { %s3196_s25 = scalar_select %p786_p4, %s3044_s1, 3 }
  0x1a   : > { %s3834_s3 = sld [smem:[#allocation13_spill]] (!%p2720_p5) }
  0x1b   : > { %s2819_s0 = sshll.u32 %s3196_s25, 4  ;;  %s810_s17 = scalar_lea.vmem %s3800_s10, %s3196_s25 }
  0x1c   : > { %s3214_s22 = scalar_lea.vmem %s3832_s6, %s2819_s0  ;;  %s3219_s19 = scalar_lea.vmem %s3833_s8, %s2819_s0 }
  0x1d   : > { %s813_s2 = scalar_lea.vmem %s3801_s11, %s3196_s25  ;;  %s3236_s6 = scalar_lea.vmem %s3802_s12, %s2819_s0 }
  0x1e   : > { %s2822_s16 = sshll.u32 %s3196_s25, 6  ;;  %834 = sbr.rel (%p2720_p5) target bundleno = 190 (0xbe), region = 104 }
  0x1f   : > { %s3246_s4 = scalar_lea.vmem %s3804_s14, %s2822_s16  ;;  %s3835_s16 = sld [smem:[#allocation12_spill]] (!%p2720_p5) }
  0x20   : > { %s3836_s23 = sld [smem:[#allocation14_spill]] (!%p2720_p5) }
  0x21   : > { %s3838_s21 = sld [smem:[#allocation15_spill]] (!%p2720_p5) }
  0x23   : > { %v838_v0 = vld [vmem:[%s3834_s3] sm:$0xf]  ;;  %vm847_vm0 = vcmask 1043456   ;;  %vm843_vm1 = vcmask 64512   ;;  %vm869_vm2 = vcmask 261120  }
  0x24   : > { %v876_v1 = vld [vmem:[%s3834_s3] sm:$0xf]  ;;  %v849_v3 = vsel %vm847_vm0, %v838_v0, 0 }
  0x25   : > { %v835_v2 = vld [vmem:[%s3835_s16] sm:$0xff]  ;;  %v885_v4 = vsel %vm847_vm0, %v876_v1, 0  ;;  %v836_v5 = vld [vmem:[%s3835_s16 + $0x8] sm:$0xff]  ;;  %v2722_v6 = vld [vmem:[%s3835_s16 + $0x10] sm:$0xff]  ;;  %858 = vmatpush.bf16.msra.mxu0 %v849_v3 }
  0x26   : > { %v2723_v7 = vld [vmem:[%s3835_s16 + $0x18] sm:$0xff]  ;;  %894 = vmatpush.bf16.msra.mxu1 %v885_v4  ;;  %v837_v8 = vpack.c.bf16 %v836_v5, %v835_v2  ;;  %s3837_s28 = smov %s3836_s23  ;;  %v2881_v10 = vld [vmem:[%s3836_s23] ss:$0 sm:$0xff] }
  0x27   : > { %v875_v9 = vpack.c.bf16 %v2723_v7, %v2722_v6  ;;  %v2882_v11 = vld [vmem:[%s3837_s28] ss:$0 sm:$0xff]  ;;  %v866_v20 = vld [vmem:[%s3838_s21 + $0x8] sm:$0xff] }
  0x28   : > { %2721 = vmatmul.msk.bf16.vlgmr.msra.gmra.mxu0 %vm843_vm1, %v837_v8  ;;  %v865_v13 = vld [vmem:[%s3838_s21] sm:$0xff] }
  0x29   : > { %2724 = vmatmul.msk.bf16.vlgmr.msra.gmra.mxu1 %vm843_vm1, %v875_v9 }
  0xa5   : > { %v860_v12 = vpop.f32.mrf.mxu0 }
  0xa6   : > { %v896_v14 = vpop.f32.mrf.mxu1  ;;  %v861_v15 = vadd.f32 %v2881_v10, %v860_v12 }
  0xa7   : > { %v897_v16 = vadd.f32 %v2882_v11, %v896_v14 }
  0xa8   : > { %v867_v17 = vadd.f32 %v865_v13, %v861_v15 }
  0xa9   : > { %v903_v18 = vadd.f32 %v897_v16, %v865_v13 }
  0xaa   : > { %870 = vst.msk [vmem:[#allocation2] sm:$0xff] %vm869_vm2, %v867_v17 }
  0xab   : > { %905 = vst.msk [vmem:[#allocation2 + $0x10] sm:$0xff] %vm869_vm2, %v903_v18 }
  0xad   : > { %v862_v19 = vpop.f32.mrf.mxu0 }
  0xae   : > { %v898_v21 = vpop.f32.mrf.mxu1  ;;  %v863_v22 = vadd.f32 %v2881_v10, %v862_v19 }
  0xaf   : > { %v899_v23 = vadd.f32 %v2882_v11, %v898_v21 }
  0xb0   : > { %v868_v24 = vadd.f32 %v866_v20, %v863_v22 }
  0xb1   : > { %v907_v25 = vld [vmem:[#allocation2] sm:$0xff]  ;;  %v904_v26 = vadd.f32 %v899_v23, %v866_v20 }
  0xb2   : > { %911 = vst.msk [vmem:[#allocation3] sm:$0xff] %vm869_vm2, %v907_v25  ;;  %v909_v27 = vld [vmem:[#allocation2 + $0x10] sm:$0xff] }
  0xb3   : > { %913 = vst.msk [vmem:[#allocation3 + $0x10] sm:$0xff] %vm869_vm2, %v909_v27 }
  0xb4   : > { %871 = vst.msk [vmem:[#allocation2 + $0x8] sm:$0xff] %vm869_vm2, %v868_v24 }
  0xb5   : > { %906 = vst.msk [vmem:[#allocation2 + $0x18] sm:$0xff] %vm869_vm2, %v904_v26 }
  0xbb   : > { %v908_v28 = vld [vmem:[#allocation2 + $0x8] sm:$0xff] }
  0xbc   : > { %912 = vst.msk [vmem:[#allocation3 + $0x8] sm:$0xff] %vm869_vm2, %v908_v28  ;;  %v910_v29 = vld [vmem:[#allocation2 + $0x18] sm:$0xff] }
  0xbd   : > { %914 = vst.msk [vmem:[#allocation3 + $0x18] sm:$0xff] %vm869_vm2, %v910_v29 }
  0xbe PF: > { %v915_v30 = vld [vmem:[#allocation2] sm:$0xff]  ;;  %vm921_vm3 = vcmask 261120   ;;  %v916_v32 = vld [vmem:[#allocation2 + $0x8] sm:$0xff]  ;;  %v3054_v34 = vmov 32.0   ;;  %s3839_s23 = sld [smem:[#allocation16_spill]]  ;;  %s3841_s29 = scalar_lea.vmem %s3795_s5, %s3196_s25  ;;  %vm1089_vm11 = vcmask 64512  }
  0xbf   : > { %v922_v31 = vsel %vm921_vm3, %v915_v30, 0.0  ;;  %v925_v33 = vsel %vm921_vm3, %v916_v32, 0.0  ;;  %2891 = vrcp.f32 %v3054_v34  ;;  %v2824_v51 = vld [vmem:[%s3214_s22 + $0x8] sm:$0xff]  ;;  %v2823_v53 = vld [vmem:[%s3214_s22] sm:$0xff]  ;;  %s3842_s22 = scalar_lea.vmem %s3797_s7, %s3196_s25  ;;  %s3055_s20 = smov 64   ;;  %vm1110_vm12 = vcmask 130048  }
  0xc0   : > { %923 = vadd.xlane.f32.xlu0 %v922_v31  ;;  %1065 = vmatpush.bf16.msra.mxu0 %v2824_v51  ;;  %v3316_v13 = vld [vmem:[%s3841_s29] ss:$0 sm:$0xff]  ;;  %s3058_s30 = smov 88   ;;  %s3059_s24 = smov 56  }
  0xc1   : > { %v3327_v19 = vld [vmem:[%s3842_s22] ss:$0 sm:$0xff]  ;;  %s3060_s29 = smov 112   ;;  %s3061_s0 = smov 80  }
  0xc2   : > { %s3062_s26 = smov 72   ;;  %s3063_s22 = smov 48  }
  0xc3   : > { %s3064_s8 = smov 104  }
  0xc4   : > { %1066 = vmatpush.bf16.msra.mxu0 %v2823_v53  ;;  %s3840_s27 = scalar_lea.vmem %s3839_s23, %s3196_s25  ;;  %s3056_s23 = smov 96  }
  0xc5   : > { %v2892_v35 = vpop.eup %2891  ;;  %v3308_v8 = vld [vmem:[%s3840_s27] ss:$0 sm:$0xff]  ;;  %s3057_s27 = smov 120  }
  0xc6   : > { %v935_v36 = vmul.f32 32.0, %v2892_v35  ;;  %vm939_vm4 = vweird.f32 %v2892_v35 }
  0xc8   : > { %926 = vadd.xlane.f32.xlu0 %v925_v33  ;;  %v936_v37 = vsub.f32 1.0, %v935_v36 }
  0xca   : > { %v937_v38 = vmul.f32 %v2892_v35, %v936_v37 }
  0xcc   : > { %v938_v39 = vadd.f32 %v2892_v35, %v937_v38 }
  0xce   : > { %v3293_v40 = vsel %vm939_vm4, %v2892_v35, %v938_v39 }
 0x133   : > { %v924_v41 = vpop.xlane.xlu0 %923 }
 0x134   : > { %v941_v42 = vmul.f32 %v3293_v40, %v924_v41 }
 0x136   : > { %v945_v43 = vsub.f32 %v915_v30, %v941_v42 }
 0x138   : > { %v949_v44 = vmul.f32 %v945_v43, %v945_v43 }
 0x13a   : > { %v953_v45 = vsel %vm921_vm3, %v949_v44, 0.0 }
 0x13b   : > { %954 = vadd.xlane.f32.xlu1 %v953_v45  ;;  %v927_v46 = vpop.xlane.xlu0 %926 }
 0x13c   : > { %v942_v47 = vmul.f32 %v3293_v40, %v927_v46 }
 0x13e   : > { %v946_v48 = vsub.f32 %v916_v32, %v942_v47 }
 0x140   : > { %v950_v49 = vmul.f32 %v946_v48, %v946_v48 }
 0x142   : > { %v956_v50 = vsel %vm921_vm3, %v950_v49, 0.0 }
 0x143   : > { %957 = vadd.xlane.f32.xlu1 %v956_v50 }
 0x1ae   : > { %v955_v52 = vpop.xlane.xlu1 %954 }
 0x1af   : > { %v965_v54 = vmul.f32 %v955_v52, %v3293_v40 }
 0x1b1   : > { %v969_v55 = vadd.f32 1e-05, %v965_v54 }
 0x1b3   : > { %2893 = vrsqrt.f32 %v969_v55  ;;  %vm979_vm6 = vweird.f32 %v969_v55 }
 0x1b6   : > { %v958_v56 = vpop.xlane.xlu1 %957 }
 0x1b7   : > { %v966_v57 = vmul.f32 %v958_v56, %v3293_v40 }
 0x1b9   : > { %v2894_v58 = vpop.eup %2893  ;;  %v970_v59 = vadd.f32 1e-05, %v966_v57 }
 0x1ba   : > { %v974_v60 = vmul.f32 %v2894_v58, %v969_v55  ;;  %vm980_vm5 = vweird.f32 %v2894_v58 }
 0x1bb   : > { %2895 = vrsqrt.f32 %v970_v59  ;;  %vm981_vm7 = vmor %vm979_vm6, %vm980_vm5  ;;  %vm989_vm9 = vweird.f32 %v970_v59  ;;  %vm1279_vm6 = vcmask 1043456  }
 0x1bc   : > { %v975_v61 = vmul.f32 %v2894_v58, %v974_v60 }
 0x1be   : > { %v976_v62 = vmul.f32 0.5, %v975_v61 }
 0x1c0   : > { %v977_v63 = vsub.f32 1.5, %v976_v62 }
 0x1c1   : > { %v2896_v0 = vpop.eup %2895 }
 0x1c2   : > { %v978_v1 = vmul.f32 %v2894_v58, %v977_v63  ;;  %v984_v2 = vmul.f32 %v2896_v0, %v970_v59  ;;  %vm990_vm8 = vweird.f32 %v2896_v0 }
 0x1c3   : > { %vm991_vm10 = vmor %vm989_vm9, %vm990_vm8 }
 0x1c4   : > { %v985_v3 = vmul.f32 %v2896_v0, %v984_v2  ;;  %v982_v4 = vsel %vm981_vm7, %v2894_v58, %v978_v1 }
 0x1c5   : > { %v1013_v7 = vmul.f32 %v982_v4, %v945_v43 }
 0x1c6   : > { %v986_v5 = vmul.f32 0.5, %v985_v3 }
 0x1c7   : > { %v1020_v12 = vmul.f32 %v3308_v8, %v1013_v7 }
 0x1c8   : > { %v987_v6 = vsub.f32 1.5, %v986_v5 }
 0x1c9   : > { %v1027_v15 = vadd.f32 %v3316_v13, %v1020_v12 }
 0x1ca   : > { %v988_v9 = vmul.f32 %v2896_v0, %v987_v6 }
 0x1cc   : > { %v992_v10 = vsel %vm991_vm10, %v2896_v0, %v988_v9 }
 0x1cd   : > { %v1014_v11 = vmul.f32 %v992_v10, %v946_v48  ;;  %v1078_v10 = vld [vmem:[%s3219_s19] sm:$0xf] }
 0x1cf   : > { %v1021_v14 = vmul.f32 %v3308_v8, %v1014_v11  ;;  %v3355_v11 = vsel %vm1279_vm6, %v1078_v10, 0 }
 0x1d0   : > { %1310 = vmatpush.bf16.msra.mxu3 %v3355_v11 }
 0x1d1   : > { %v1028_v16 = vadd.f32 %v3316_v13, %v1021_v14 }
 0x1d3   : > { %v1031_v17 = vpack.c.bf16 %v1028_v16, %v1027_v15 }
 0x1d5   : > { %2733 = vmatmul.msk.bf16.vlgmr.msra.gmra.mxu0 %vm921_vm3, %v1031_v17 }
 0x252   : > { %v1068_v18 = vpop.f32.mrf.mxu0 }
 0x253   : > { %v1069_v20 = vadd.f32 %v3327_v19, %v1068_v18 }
 0x255   : > { %v1082_v23 = vmul.f32 0.35355338, %v1069_v20 }
 0x25a   : > { %v1070_v21 = vpop.f32.mrf.mxu0 }
 0x25b   : > { %v1071_v22 = vadd.f32 %v3327_v19, %v1070_v21 }
 0x25d   : > { %v1083_v24 = vmul.f32 0.35355338, %v1071_v22  ;;  %v3331_v25 = vpack.c.bf16 %v1071_v22, %v1069_v20 }
 0x25f   : > { %v3333_v26 = vpack.c.bf16 %v1083_v24, %v1082_v23  ;;  %1160 = vrot.lane.b32.xlu1 %v3331_v25, %s3055_s20  ;;  %1087 = vrot.lane.b32.xlu2 %v3331_v25, %s3056_s23 }
 0x2b9   : > { %v1088_v27 = vpop.permute.xlu2 %1087 }
 0x2ba   : > { %v1094_v28 = vsel %vm1089_vm11, %v1088_v27, 0 }
 0x2bb   : > { %1103 = vmatpush.bf16.xpose.msra.mxu1 %v1094_v28 }
 0x2c2   : > { %2735 = vmatmul.msk.bf16.vlgmr.msra.gmra.mxu1 %vm1089_vm11, %v3333_v26 }
 0x2d1   : > { %v1161_v29 = vpop.permute.xlu1 %1160 }
 0x2d2   : > { %1173 = vmatpush.bf16.msra.mxu2 %v1161_v29 }
 0x33f   : > { %v1105_v30 = vpop.f32.mrf.mxu1 }
 0x340   : > { %v1111_v31 = vsel %vm1110_vm12, %v1105_v30, -inf }
 0x341   : > { %1112 = vmax.xlane.f32.xlu2 %v1111_v31 }
 0x347   : > { %v1107_v32 = vpop.f32.mrf.mxu1 }
 0x348   : > { %v1114_v33 = vsel %vm1110_vm12, %v1107_v32, -inf }
 0x349   : > { %1115 = vmax.xlane.f32.xlu0 %v1114_v33 }
 0x3b4   : > { %v1113_v34 = vpop.xlane.xlu2 %1112 }
 0x3b5   : > { %v1117_v35 = vsub.f32 %v1105_v30, %v1113_v34 }
 0x3b7   : > { %v1119_v36 = vmul.f32 1.442695, %v1117_v35 }
 0x3b9   : > { %2897 = vpow2.f32 %v1119_v36 }
 0x3bc   : > { %v1116_v37 = vpop.xlane.xlu0 %1115 }
 0x3bd   : > { %v1118_v38 = vsub.f32 %v1107_v32, %v1116_v37 }
 0x3bf   : > { %v2898_v39 = vpop.eup %2897  ;;  %v1121_v41 = vmul.f32 1.442695, %v1118_v38 }
 0x3c0   : > { %v1123_v42 = vsel %vm1110_vm12, %v2898_v39, 0.0 }
 0x3c1   : > { %2899 = vpow2.f32 %v1121_v41  ;;  %1124 = vadd.xlane.f32.xlu1 %v1123_v42  ;;  %v917_v41 = vld [vmem:[#allocation2 + $0x10] sm:$0xff]  ;;  %v918_v42 = vld [vmem:[#allocation2 + $0x18] sm:$0xff] }
 0x3c7   : > { %v2900_v43 = vpop.eup %2899 }
 0x3c8   : > { %v1126_v44 = vsel %vm1110_vm12, %v2900_v43, 0.0 }
 0x3c9   : > { %1127 = vadd.xlane.f32.xlu0 %v1126_v44  ;;  %v928_v44 = vsel %vm921_vm3, %v917_v41, 0.0 }
 0x3da   : > { %1182 = vrot.lane.b32.xlu1 %v3333_v26, %s3057_s27 }
 0x3dd   : > { %1184 = vrot.lane.b32.xlu0 %v3331_v25, %s3058_s30 }
 0x434   : > { %v1125_v45 = vpop.xlane.xlu1 %1124 }
 0x435   : > { %2901 = vrcp.f32 %v1125_v45  ;;  %v1140_v54 = vand.u32 2147483648, %v1125_v45  ;;  %vm1134_vm14 = vweird.f32 %v1125_v45  ;;  %v1138_v55 = vand.u32 2147483647, %v1125_v45 }
 0x437   : > { %v1141_v61 = vor.u32 1.1754944e-38, %v1140_v54  ;;  %vm1139_vm1 = vcmp.eq.f32.partialorder %v1138_v55, 8.507059e+37 }
 0x43b   : > { %v2902_v46 = vpop.eup %2901 }
 0x43c   : > { %v1130_v47 = vmul.f32 %v2902_v46, %v1125_v45  ;;  %v1128_v48 = vpop.xlane.xlu0 %1127  ;;  %vm1135_vm13 = vweird.f32 %v2902_v46  ;;  %v931_v45 = vsel %vm921_vm3, %v918_v42, 0.0 }
 0x43d   : > { %2903 = vrcp.f32 %v1128_v48  ;;  %vm1136_vm15 = vmor %vm1134_vm14, %vm1135_vm13  ;;  %v1155_v57 = vand.u32 2147483648, %v1128_v48  ;;  %v1153_v59 = vand.u32 2147483647, %v1128_v48  ;;  %vm1149_vm2 = vweird.f32 %v1128_v48 }
 0x43e   : > { %v1131_v49 = vsub.f32 1.0, %v1130_v47 }
 0x43f   : > { %v1156_v63 = vor.u32 1.1754944e-38, %v1155_v57  ;;  %vm1154_vm5 = vcmp.eq.f32.partialorder %v1153_v59, 8.507059e+37 }
 0x440   : > { %v1132_v50 = vmul.f32 %v2902_v46, %v1131_v49 }
 0x442   : > { %v1133_v52 = vadd.f32 %v2902_v46, %v1132_v50 }
 0x443   : > { %v2904_v51 = vpop.eup %2903 }
 0x444   : > { %v1145_v53 = vmul.f32 %v2904_v51, %v1128_v48  ;;  %vm1150_vm0 = vweird.f32 %v2904_v51  ;;  %v1137_v60 = vsel %vm1136_vm15, %v2902_v46, %v1133_v52 }
 0x445   : > { %vm1151_vm4 = vmor %vm1149_vm2, %vm1150_vm0  ;;  %v1142_v0 = vsel %vm1139_vm1, %v1141_v61, %v1137_v60 }
 0x446   : > { %v1146_v56 = vsub.f32 1.0, %v1145_v53  ;;  %v1143_v3 = vmul.f32 %v2898_v39, %v1142_v0 }
 0x448   : > { %v1147_v58 = vmul.f32 %v2904_v51, %v1146_v56 }
 0x44a   : > { %v1148_v62 = vadd.f32 %v2904_v51, %v1147_v58 }
 0x44c   : > { %v1152_v1 = vsel %vm1151_vm4, %v2904_v51, %v1148_v62  ;;  %v1183_v9 = vpop.permute.xlu1 %1182 }
 0x44d   : > { %v1157_v2 = vsel %vm1154_vm5, %v1156_v63, %v1152_v1 }
 0x44e   : > { %v1158_v4 = vmul.f32 %v2900_v43, %v1157_v2 }
 0x44f   : > { %v1185_v5 = vpop.permute.xlu0 %1184 }
 0x450   : > { %v1190_v6 = vsel %vm1089_vm11, %v1185_v5, 0  ;;  %v1159_v7 = vpack.c.bf16 %v1158_v4, %v1143_v3  ;;  %v1079_v3 = vld [vmem:[%s3219_s19 + $0x4] sm:$0xf] }
 0x451   : > { %1199 = vmatpush.bf16.xpose.msrb.mxu2 %v1190_v6  ;;  %v3376_v4 = vsel %vm1279_vm6, %v1079_v3, 0 }
 0x452   : > { %2736 = vmatmul.msk.bf16.vlgmr.msra.gmra.mxu2 %vm1110_vm12, %v1159_v7  ;;  %1290 = vmatpush.bf16.msrb.mxu1 %v3376_v4 }
 0x462   : > { %2737 = vmatmul.msk.bf16.vlgmr.msrb.gmra.mxu2 %vm1089_vm11, %v1183_v9 }
 0x4d5   : > { %v1175_v12 = vpop.f32.mrf.mxu2 }
 0x4dd   : > { %v1177_v14 = vpop.f32.mrf.mxu2 }
 0x4de   : > { %v1180_v15 = vpack.c.bf16 %v1177_v14, %v1175_v12 }
 0x4e0   : > { %2740 = vmatmul.msk.bf16.vlgmr.msra.gmra.mxu3 %vm1089_vm11, %v1180_v15 }
 0x4e5   : > { %v1201_v16 = vpop.f32.mrf.mxu2 }
 0x4e6   : > { %v1206_v17 = vsel %vm1110_vm12, %v1201_v16, -inf }
 0x4e7   : > { %1207 = vmax.xlane.f32.xlu2 %v1206_v17 }
 0x4ed   : > { %v1203_v18 = vpop.f32.mrf.mxu2 }
 0x4ee   : > { %v1209_v20 = vsel %vm1110_vm12, %v1203_v18, -inf }
 0x4ef   : > { %1210 = vmax.xlane.f32.xlu0 %v1209_v20 }
 0x4ff   : > { %1255 = vrot.lane.b32.xlu2 %v3331_v25, %s3059_s24 }
 0x503   : > { %1317 = vrot.lane.b32.xlu0 %v3333_v26, %s3060_s29 }
 0x55a   : > { %v1208_v21 = vpop.xlane.xlu2 %1207 }
 0x55b   : > { %v1212_v22 = vsub.f32 %v1201_v16, %v1208_v21 }
 0x55d   : > { %v1214_v23 = vmul.f32 1.442695, %v1212_v22 }
 0x55f   : > { %2905 = vpow2.f32 %v1214_v23 }
 0x562   : > { %v1256_v24 = vpop.permute.xlu2 %1255  ;;  %v1211_v27 = vpop.xlane.xlu0 %1210 }
 0x563   : > { %v1213_v28 = vsub.f32 %v1203_v18, %v1211_v27  ;;  %1268 = vmatpush.bf16.msra.mxu2 %v1256_v24 }
 0x565   : > { %v2906_v29 = vpop.eup %2905  ;;  %v1216_v30 = vmul.f32 1.442695, %v1213_v28 }
 0x566   : > { %v1218_v31 = vsel %vm1110_vm12, %v2906_v29, 0.0 }
 0x567   : > { %2907 = vpow2.f32 %v1216_v30  ;;  %1219 = vadd.xlane.f32.xlu1 %v1218_v31 }
 0x56d   : > { %v2908_v32 = vpop.eup %2907 }
 0x56e   : > { %v1221_v33 = vsel %vm1110_vm12, %v2908_v32, 0.0 }
 0x56f   : > { %1222 = vadd.xlane.f32.xlu2 %v1221_v33  ;;  %932 = vadd.xlane.f32.xlu1 %v931_v45 }
 0x575   : > { %v1318_v2 = vpop.permute.xlu0 %1317 }
 0x587   : > { %1319 = vrot.lane.b32.xlu2 %v3331_v25, %s3061_s0 }
 0x5b0   : > { %929 = vadd.xlane.f32.xlu2 %v928_v44 }
 0x5da   : > { %v1220_v34 = vpop.xlane.xlu1 %1219 }
 0x5db   : > { %2909 = vrcp.f32 %v1220_v34  ;;  %v1235_v49 = vand.u32 2147483648, %v1220_v34  ;;  %vm1229_vm8 = vweird.f32 %v1220_v34  ;;  %v1233_v51 = vand.u32 2147483647, %v1220_v34 }
 0x5dd   : > { %v1236_v57 = vor.u32 1.1754944e-38, %v1235_v49  ;;  %vm1234_vm13 = vcmp.eq.f32.partialorder %v1233_v51, 8.507059e+37 }
 0x5e1   : > { %v2910_v35 = vpop.eup %2909 }
 0x5e2   : > { %v1225_v36 = vmul.f32 %v2910_v35, %v1220_v34  ;;  %v1223_v37 = vpop.xlane.xlu2 %1222  ;;  %vm1230_vm7 = vweird.f32 %v2910_v35  ;;  %v933_v15 = vpop.xlane.xlu1 %932 }
 0x5e3   : > { %2911 = vrcp.f32 %v1223_v37  ;;  %vm1231_vm9 = vmor %vm1229_vm8, %vm1230_vm7  ;;  %v1250_v53 = vand.u32 2147483648, %v1223_v37  ;;  %v1248_v56 = vand.u32 2147483647, %v1223_v37  ;;  %vm1244_vm14 = vweird.f32 %v1223_v37 }
 0x5e4   : > { %v1226_v38 = vsub.f32 1.0, %v1225_v36  ;;  %v944_v17 = vmul.f32 %v3293_v40, %v933_v15 }
 0x5e5   : > { %v1251_v60 = vor.u32 1.1754944e-38, %v1250_v53  ;;  %vm1249_vm0 = vcmp.eq.f32.partialorder %v1248_v56, 8.507059e+37 }
 0x5e6   : > { %v1227_v39 = vmul.f32 %v2910_v35, %v1226_v38  ;;  %v948_v20 = vsub.f32 %v918_v42, %v944_v17 }
 0x5e8   : > { %v1228_v46 = vadd.f32 %v2910_v35, %v1227_v39  ;;  %v952_v24 = vmul.f32 %v948_v20, %v948_v20 }
 0x5e9   : > { %v2912_v43 = vpop.eup %2911 }
 0x5ea   : > { %v1240_v47 = vmul.f32 %v2912_v43, %v1223_v37  ;;  %v1320_v48 = vpop.permute.xlu2 %1319  ;;  %v1232_v54 = vsel %vm1231_vm9, %v2910_v35, %v1228_v46  ;;  %vm1245_vm10 = vweird.f32 %v2912_v43  ;;  %v962_v27 = vsel %vm921_vm3, %v952_v24, 0.0 }
 0x5eb   : > { %v1325_v50 = vsel %vm1089_vm11, %v1320_v48, 0  ;;  %v1237_v59 = vsel %vm1234_vm13, %v1236_v57, %v1232_v54  ;;  %vm1246_vm15 = vmor %vm1244_vm14, %vm1245_vm10 }
 0x5ec   : > { %v1241_v52 = vsub.f32 1.0, %v1240_v47  ;;  %1334 = vmatpush.bf16.xpose.msrb.mxu2 %v1325_v50  ;;  %v1238_v63 = vmul.f32 %v2906_v29, %v1237_v59 }
 0x5ee   : > { %v1242_v55 = vmul.f32 %v2912_v43, %v1241_v52 }
 0x5f0   : > { %v1243_v58 = vadd.f32 %v2912_v43, %v1242_v55 }
 0x5f2   : > { %v1247_v61 = vsel %vm1246_vm15, %v2912_v43, %v1243_v58 }
 0x5f3   : > { %v1252_v62 = vsel %vm1249_vm0, %v1251_v60, %v1247_v61 }
 0x5f4   : > { %v1253_v0 = vmul.f32 %v2908_v32, %v1252_v62 }
 0x5f6   : > { %v1254_v1 = vpack.c.bf16 %v1253_v0, %v1238_v63 }
 0x5f8   : > { %2738 = vmatmul.msk.bf16.vlgmr.msra.gmra.mxu2 %vm1110_vm12, %v1254_v1 }
 0x608   : > { %2741 = vmatmul.msk.bf16.vlgmr.msrb.gmra.mxu2 %vm1089_vm11, %v1318_v2 }
 0x623   : > { %v930_v7 = vpop.xlane.xlu2 %929 }
 0x624   : > { %v943_v10 = vmul.f32 %v3293_v40, %v930_v7 }
 0x626   : > { %v947_v12 = vsub.f32 %v917_v41, %v943_v10 }
 0x628   : > { %v951_v18 = vmul.f32 %v947_v12, %v947_v12 }
 0x62a   : > { %v959_v21 = vsel %vm921_vm3, %v951_v18, 0.0 }
 0x67b   : > { %v1270_v5 = vpop.f32.mrf.mxu2 }
 0x683   : > { %v1272_v6 = vpop.f32.mrf.mxu2 }
 0x684   : > { %v1275_v9 = vpack.c.bf16 %v1272_v6, %v1270_v5 }
 0x686   : > { %2739 = vmatmul.msk.bf16.vlgmr.msrb.gmra.mxu1 %vm1089_vm11, %v1275_v9 }
 0x68b   : > { %v1336_v14 = vpop.f32.mrf.mxu2 }
 0x68c   : > { %v1341_v16 = vsel %vm1110_vm12, %v1336_v14, -inf }
 0x68d   : > { %1342 = vmax.xlane.f32.xlu1 %v1341_v16 }
 0x693   : > { %v1338_v22 = vpop.f32.mrf.mxu2 }
 0x694   : > { %v1344_v23 = vsel %vm1110_vm12, %v1338_v22, -inf }
 0x695   : > { %960 = vadd.xlane.f32.xlu1 %v959_v21  ;;  %1345 = vmax.xlane.f32.xlu0 %v1344_v23 }
 0x69d   : > { %963 = vadd.xlane.f32.xlu1 %v962_v27 }
 0x6a9   : > { %1435 = vrot.lane.b32.xlu0 %v3331_v25, %s3062_s26 }
 0x700   : > { %v1343_v28 = vpop.xlane.xlu1 %1342 }
 0x701   : > { %v1347_v29 = vsub.f32 %v1336_v14, %v1343_v28 }
 0x703   : > { %v1349_v30 = vmul.f32 1.442695, %v1347_v29 }
 0x705   : > { %2913 = vpow2.f32 %v1349_v30 }
 0x708   : > { %v961_v31 = vpop.xlane.xlu1 %960  ;;  %v1346_v32 = vpop.xlane.xlu0 %1345 }
 0x709   : > { %v967_v33 = vmul.f32 %v961_v31, %v3293_v40  ;;  %v1348_v34 = vsub.f32 %v1338_v22, %v1346_v32 }
 0x70b   : > { %v3389_v35 = vpop.eup %2913  ;;  %v971_v36 = vadd.f32 1e-05, %v967_v33  ;;  %v1351_v37 = vmul.f32 1.442695, %v1348_v34 }
 0x70c   : > { %v1353_v38 = vsel %vm1110_vm12, %v3389_v35, 0.0 }
 0x70d   : > { %2915 = vrsqrt.f32 %v971_v36  ;;  %1354 = vadd.xlane.f32.xlu1 %v1353_v38  ;;  %vm999_vm1 = vweird.f32 %v971_v36 }
 0x70e   : > { %2917 = vpow2.f32 %v1351_v37 }
 0x710   : > { %v964_v39 = vpop.xlane.xlu1 %963 }
 0x711   : > { %v968_v41 = vmul.f32 %v964_v39, %v3293_v40 }
 0x713   : > { %v2916_v42 = vpop.eup %2915  ;;  %v972_v43 = vadd.f32 1e-05, %v968_v41 }
 0x714   : > { %v3394_v44 = vpop.eup %2917  ;;  %v994_v45 = vmul.f32 %v2916_v42, %v971_v36  ;;  %vm1000_vm2 = vweird.f32 %v2916_v42 }
 0x715   : > { %2919 = vrsqrt.f32 %v972_v43  ;;  %v1356_v46 = vsel %vm1110_vm12, %v3394_v44, 0.0  ;;  %vm1001_vm4 = vmor %vm999_vm1, %vm1000_vm2  ;;  %vm1009_vm5 = vweird.f32 %v972_v43 }
 0x716   : > { %v995_v47 = vmul.f32 %v2916_v42, %v994_v45  ;;  %1357 = vadd.xlane.f32.xlu2 %v1356_v46 }
 0x718   : > { %v996_v48 = vmul.f32 0.5, %v995_v47 }
 0x71a   : > { %v997_v49 = vsub.f32 1.5, %v996_v48 }
 0x71b   : > { %v2920_v50 = vpop.eup %2919  ;;  %v1436_v51 = vpop.permute.xlu0 %1435 }
 0x71c   : > { %v998_v52 = vmul.f32 %v2916_v42, %v997_v49  ;;  %v1004_v53 = vmul.f32 %v2920_v50, %v972_v43  ;;  %v1441_v54 = vsel %vm1089_vm11, %v1436_v51, 0  ;;  %vm1010_vm7 = vweird.f32 %v2920_v50 }
 0x71d   : > { %1450 = vmatpush.bf16.xpose.msrb.mxu3 %v1441_v54  ;;  %vm1011_vm8 = vmor %vm1009_vm5, %vm1010_vm7 }
 0x71e   : > { %v1005_v55 = vmul.f32 %v2920_v50, %v1004_v53  ;;  %v1002_v56 = vsel %vm1001_vm4, %v2916_v42, %v998_v52  ;;  %v1312_v52 = vpop.f32.mrf.mxu3 }
 0x71f   : > { %v1015_v59 = vmul.f32 %v1002_v56, %v947_v12 }
 0x720   : > { %v1006_v57 = vmul.f32 0.5, %v1005_v55 }
 0x721   : > { %v1022_v63 = vmul.f32 %v3308_v8, %v1015_v59 }
 0x722   : > { %v1007_v58 = vsub.f32 1.5, %v1006_v57 }
 0x723   : > { %v1029_v1 = vadd.f32 %v3316_v13, %v1022_v63 }
 0x724   : > { %v1008_v60 = vmul.f32 %v2920_v50, %v1007_v58 }
 0x726   : > { %v1012_v61 = vsel %vm1011_vm8, %v2920_v50, %v1008_v60  ;;  %1390 = vrot.lane.b32.xlu1 %v3331_v25, %s3063_s22  ;;  %v1292_v50 = vpop.f32.mrf.mxu1  ;;  %v3443_v63 = vpop.f32.mrf.mxu3 }
 0x727   : > { %v1016_v62 = vmul.f32 %v1012_v61, %v948_v20  ;;  %v1313_v53 = vadd.f32 %v1312_v52, %v1292_v50 }
 0x729   : > { %v1023_v0 = vmul.f32 %v3308_v8, %v1016_v62 }
 0x72b   : > { %v1030_v2 = vadd.f32 %v3316_v13, %v1023_v0 }
 0x72d   : > { %v1032_v3 = vpack.c.bf16 %v1030_v2, %v1029_v1 }
 0x72e   : > { %1433 = vrot.lane.b32.xlu1 %v3333_v26, %s3064_s8  ;;  %v3427_v51 = vpop.f32.mrf.mxu1 }
 0x72f   : > { %2734 = vmatmul.msk.bf16.gmra.mxu0 %vm921_vm3, %v1032_v3 }
 0x780   : > { %v1355_v5 = vpop.xlane.xlu1 %1354 }
 0x781   : > { %2921 = vrcp.f32 %v1355_v5  ;;  %v1370_v13 = vand.u32 2147483648, %v1355_v5  ;;  %vm1364_vm10 = vweird.f32 %v1355_v5  ;;  %v1368_v16 = vand.u32 2147483647, %v1355_v5 }
 0x783   : > { %v1371_v22 = vor.u32 1.1754944e-38, %v1370_v13  ;;  %vm1369_vm15 = vcmp.eq.f32.partialorder %v1368_v16, 8.507059e+37 }
 0x787   : > { %v2922_v6 = vpop.eup %2921 }
 0x788   : > { %v1360_v7 = vmul.f32 %v2922_v6, %v1355_v5  ;;  %vm1365_vm9 = vweird.f32 %v2922_v6 }
 0x789   : > { %v1358_v9 = vpop.xlane.xlu2 %1357  ;;  %vm1366_vm13 = vmor %vm1364_vm10, %vm1365_vm9 }
 0x78a   : > { %v1361_v10 = vsub.f32 1.0, %v1360_v7  ;;  %2923 = vrcp.f32 %v1358_v9  ;;  %v1385_v26 = vand.u32 2147483648, %v1358_v9  ;;  %v1383_v21 = vand.u32 2147483647, %v1358_v9 }
 0x78b   : > { %vm1379_vm0 = vweird.f32 %v1358_v9 }
 0x78c   : > { %v1362_v12 = vmul.f32 %v2922_v6, %v1361_v10  ;;  %v1386_v24 = vor.u32 1.1754944e-38, %v1385_v26  ;;  %vm1384_vm2 = vcmp.eq.f32.partialorder %v1383_v21, 8.507059e+37 }
 0x78e   : > { %v1363_v14 = vadd.f32 %v2922_v6, %v1362_v12 }
 0x790   : > { %v2924_v8 = vpop.eup %2923  ;;  %v1367_v18 = vsel %vm1366_vm13, %v2922_v6, %v1363_v14 }
 0x791   : > { %v1375_v15 = vmul.f32 %v2924_v8, %v1358_v9  ;;  %vm1380_vm14 = vweird.f32 %v2924_v8  ;;  %v1372_v28 = vsel %vm1369_vm15, %v1371_v22, %v1367_v18 }
 0x792   : > { %vm1381_vm1 = vmor %vm1379_vm0, %vm1380_vm14  ;;  %v1373_v31 = vmul.f32 %v3389_v35, %v1372_v28  ;;  %v1080_v35 = vld [vmem:[%s3219_s19 + $0x8] sm:$0xf] }
 0x793   : > { %v1376_v17 = vsub.f32 1.0, %v1375_v15 }
 0x795   : > { %v1377_v20 = vmul.f32 %v2924_v8, %v1376_v17 }
 0x797   : > { %v1378_v23 = vadd.f32 %v2924_v8, %v1377_v20 }
 0x798   : > { %v1391_v27 = vpop.permute.xlu1 %1390 }
 0x799   : > { %v1382_v29 = vsel %vm1381_vm1, %v2924_v8, %v1378_v23  ;;  %1403 = vmatpush.bf16.msrb.mxu0 %v1391_v27 }
 0x79a   : > { %v1387_v30 = vsel %vm1384_vm2, %v1386_v24, %v1382_v29 }
 0x79b   : > { %v1388_v32 = vmul.f32 %v3394_v44, %v1387_v30  ;;  %v1415_v44 = vsel %vm1279_vm6, %v1080_v35, 0 }
 0x79c   : > { %1424 = vmatpush.bf16.msra.mxu1 %v1415_v44 }
 0x79d   : > { %v1389_v33 = vpack.c.bf16 %v1388_v32, %v1373_v31 }
 0x79f   : > { %2742 = vmatmul.msk.bf16.vlgmr.msrb.gmra.mxu0 %vm1110_vm12, %v1389_v33 }
 0x7a0   : > { %v1434_v34 = vpop.permute.xlu1 %1433 }
 0x7a1   : > { %2744 = vmatmul.msk.bf16.vlgmr.msrb.gmra.mxu3 %vm1089_vm11, %v1434_v34 }
 0x7ac   : > { %v1073_v36 = vpop.f32.mrf.mxu0 }
 0x7ad   : > { %v1074_v37 = vadd.f32 %v3327_v19, %v1073_v36 }
 0x7af   : > { %v1551_v41 = vmul.f32 0.35355338, %v1074_v37 }
 0x7b4   : > { %v1075_v38 = vpop.f32.mrf.mxu0 }
 0x7b5   : > { %v1076_v39 = vadd.f32 %v3327_v19, %v1075_v38 }
 0x7b7   : > { %v1552_v42 = vmul.f32 0.35355338, %v1076_v39  ;;  %v3414_v43 = vpack.c.bf16 %v1076_v39, %v1074_v37 }
 0x7b9   : > { %v3416_v45 = vpack.c.bf16 %v1552_v42, %v1551_v41  ;;  %1556 = vrot.lane.b32.xlu2 %v3414_v43, %s3056_s23  ;;  %s3845_s23 = scalar_lea.vmem %s3799_s9, %s3196_s25 }
 0x813   : > { %v1557_v46 = vpop.permute.xlu2 %1556 }
 0x814   : > { %v1562_v47 = vsel %vm1089_vm11, %v1557_v46, 0 }
 0x815   : > { %1571 = vmatpush.bf16.xpose.msrb.mxu1 %v1562_v47 }
 0x81c   : > { %v1405_v48 = vpop.f32.mrf.mxu0 }
 0x824   : > { %v1407_v49 = vpop.f32.mrf.mxu0  ;;  %v1452_v6 = vpop.f32.mrf.mxu3 }
 0x825   : > { %v1410_v19 = vpack.c.bf16 %v1407_v49, %v1405_v48  ;;  %v1457_v10 = vsel %vm1110_vm12, %v1452_v6, -inf }
 0x827   : > { %2743 = vmatmul.msk.bf16.vlgmr.msra.gmra.mxu1 %vm1089_vm11, %v1410_v19 }
 0x828   : > { %1753 = vmatpush.bf16.msra.mxu1 %v3376_v4 }
 0x82c   : > { %v1454_v12 = vpop.f32.mrf.mxu3 }
 0x82d   : > { %v1460_v8 = vsel %vm1110_vm12, %v1454_v12, -inf }
 0x837   : > { %2747 = vmatmul.msk.bf16.vlgmr.msrb.gmra.mxu1 %vm1089_vm11, %v3416_v45 }
 0x838   : > { %1881 = vmatpush.bf16.msrb.mxu1 %v1415_v44 }
 0x8a4   : > { %v1426_v54 = vpop.f32.mrf.mxu1 }
 0x8a5   : > { %v3429_v55 = vadd.f32 %v1426_v54, %v1313_v53 }
 0x8ac   : > { %v3431_v56 = vpop.f32.mrf.mxu1 }
 0x8b4   : > { %v1573_v57 = vpop.f32.mrf.mxu1 }
 0x8b5   : > { %v1578_v58 = vsel %vm1110_vm12, %v1573_v57, -inf }
 0x8b6   : > { %1579 = vmax.xlane.f32.xlu2 %v1578_v58 }
 0x8bc   : > { %v1575_v59 = vpop.f32.mrf.mxu1 }
 0x8bd   : > { %v1581_v4 = vsel %vm1110_vm12, %v1575_v59, -inf }
 0x8be   : > { %1582 = vmax.xlane.f32.xlu1 %v1581_v4 }
 0x8d7   : > { %1627 = vrot.lane.b32.xlu1 %v3414_v43, %s3055_s20 }
 0x8df   : > { %1649 = vrot.lane.b32.xlu1 %v3416_v45, %s3057_s27 }
 0x8e7   : > { %1892 = vrot.lane.b32.xlu1 %v3414_v43, %s3062_s26  ;;  %s3853_s26 = scalar_lea.vmem %s3805_s15, %s3196_s25 }
 0x8ef   : > { %1890 = vrot.lane.b32.xlu1 %v3416_v45, %s3064_s8  ;;  %s3065_s8 = smov 40  }
 0x929   : > { %v1580_v60 = vpop.xlane.xlu2 %1579 }
 0x92a   : > { %v1584_v61 = vsub.f32 %v1573_v57, %v1580_v60 }
 0x92c   : > { %v1586_v62 = vmul.f32 1.442695, %v1584_v61 }
 0x92e   : > { %2925 = vpow2.f32 %v1586_v62 }
 0x931   : > { %v1583_v0 = vpop.xlane.xlu1 %1582 }
 0x932   : > { %v1585_v1 = vsub.f32 %v1575_v59, %v1583_v0 }
 0x934   : > { %v2926_v2 = vpop.eup %2925  ;;  %v1588_v3 = vmul.f32 1.442695, %v1585_v1 }
 0x935   : > { %v1590_v5 = vsel %vm1110_vm12, %v2926_v2, 0.0 }
 0x936   : > { %2927 = vpow2.f32 %v1588_v3  ;;  %1591 = vadd.xlane.f32.xlu0 %v1590_v5 }
 0x93c   : > { %v2928_v7 = vpop.eup %2927 }
 0x93d   : > { %v1593_v9 = vsel %vm1110_vm12, %v2928_v7, 0.0 }
 0x93e   : > { %1594 = vadd.xlane.f32.xlu2 %v1593_v9  ;;  %1458 = vmax.xlane.f32.xlu0 %v1457_v10 }
 0x946   : > { %1461 = vmax.xlane.f32.xlu2 %v1460_v8 }
 0x949   : > { %v1628_v14 = vpop.permute.xlu1 %1627 }
 0x94a   : > { %1640 = vmatpush.bf16.msra.mxu3 %v1628_v14 }
 0x94e   : > { %1770 = vmatpush.bf16.msrb.mxu3 %v3355_v11 }
 0x951   : > { %v3450_v29 = vpop.permute.xlu1 %1649 }
 0x959   : > { %v1893_v53 = vpop.permute.xlu1 %1892 }
 0x95a   : > { %v1898_v58 = vsel %vm1089_vm11, %v1893_v53, 0 }
 0x9a9   : > { %v1592_v15 = vpop.xlane.xlu0 %1591 }
 0x9aa   : > { %2929 = vrcp.f32 %v1592_v15  ;;  %v1607_v11 = vand.u32 2147483648, %v1592_v15  ;;  %vm1601_vm5 = vweird.f32 %v1592_v15  ;;  %v1605_v31 = vand.u32 2147483647, %v1592_v15 }
 0x9ac   : > { %v1608_v42 = vor.u32 1.1754944e-38, %v1607_v11  ;;  %vm1606_vm9 = vcmp.eq.f32.partialorder %v1605_v31, 8.507059e+37 }
 0x9b0   : > { %v2930_v13 = vpop.eup %2929 }
 0x9b1   : > { %v1597_v16 = vmul.f32 %v2930_v13, %v1592_v15  ;;  %v1595_v17 = vpop.xlane.xlu2 %1594  ;;  %v1459_v26 = vpop.xlane.xlu0 %1458  ;;  %vm1602_vm4 = vweird.f32 %v2930_v13 }
 0x9b2   : > { %2931 = vrcp.f32 %v1595_v17  ;;  %v1463_v20 = vsub.f32 %v1452_v6, %v1459_v26  ;;  %vm3452_vm7 = vmor %vm1601_vm5, %vm1602_vm4  ;;  %v1622_v34 = vand.u32 2147483648, %v1595_v17  ;;  %v1620_v41 = vand.u32 2147483647, %v1595_v17 }
 0x9b3   : > { %v1598_v18 = vsub.f32 1.0, %v1597_v16  ;;  %vm1616_vm10 = vweird.f32 %v1595_v17 }
 0x9b4   : > { %v1465_v22 = vmul.f32 1.442695, %v1463_v20  ;;  %v1623_v47 = vor.u32 1.1754944e-38, %v1622_v34  ;;  %vm1621_vm14 = vcmp.eq.f32.partialorder %v1620_v41, 8.507059e+37 }
 0x9b5   : > { %v1599_v21 = vmul.f32 %v2930_v13, %v1598_v18 }
 0x9b6   : > { %2933 = vpow2.f32 %v1465_v22 }
 0x9b7   : > { %v1600_v24 = vadd.f32 %v2930_v13, %v1599_v21 }
 0x9b8   : > { %v2932_v23 = vpop.eup %2931 }
 0x9b9   : > { %v1612_v27 = vmul.f32 %v2932_v23, %v1595_v17  ;;  %v1462_v28 = vpop.xlane.xlu2 %1461  ;;  %v1604_v38 = vsel %vm3452_vm7, %v2930_v13, %v1600_v24  ;;  %vm1617_vm8 = vweird.f32 %v2932_v23 }
 0x9ba   : > { %v1464_v30 = vsub.f32 %v1454_v12, %v1462_v28  ;;  %v1609_v46 = vsel %vm1606_vm9, %v1608_v42, %v1604_v38  ;;  %vm1618_vm13 = vmor %vm1616_vm10, %vm1617_vm8 }
 0x9bb   : > { %v1613_v32 = vsub.f32 1.0, %v1612_v27  ;;  %v1610_v19 = vmul.f32 %v2926_v2, %v1609_v46 }
 0x9bc   : > { %v1467_v36 = vmul.f32 1.442695, %v1464_v30  ;;  %v3456_v37 = vpop.eup %2933  ;;  %v1891_v30 = vpop.permute.xlu1 %1890 }
 0x9bd   : > { %v1614_v39 = vmul.f32 %v2932_v23, %v1613_v32  ;;  %v1469_v35 = vsel %vm1110_vm12, %v3456_v37, 0.0  ;;  %v1081_v32 = vld [vmem:[%s3219_s19 + $0xc] sm:$0xf] }
 0x9be   : > { %2935 = vpow2.f32 %v1467_v36  ;;  %1470 = vadd.xlane.f32.xlu0 %v1469_v35  ;;  %v3484_v33 = vsel %vm1279_vm6, %v1081_v32, 0 }
 0x9bf   : > { %v1615_v44 = vadd.f32 %v2932_v23, %v1614_v39  ;;  %1540 = vmatpush.bf16.msra.mxu0 %v3484_v33 }
 0x9c1   : > { %v1619_v48 = vsel %vm1618_vm13, %v2932_v23, %v1615_v44 }
 0x9c2   : > { %v1624_v49 = vsel %vm1621_vm14, %v1623_v47, %v1619_v48 }
 0x9c3   : > { %v1625_v50 = vmul.f32 %v2928_v7, %v1624_v49 }
 0x9c4   : > { %v2936_v52 = vpop.eup %2935 }
 0x9c5   : > { %v1472_v54 = vsel %vm1110_vm12, %v2936_v52, 0.0  ;;  %v1626_v57 = vpack.c.bf16 %v1625_v50, %v1610_v19 }
 0x9c6   : > { %1473 = vadd.xlane.f32.xlu2 %v1472_v54 }
 0x9c7   : > { %2748 = vmatmul.msk.bf16.vlgmr.msra.gmra.mxu3 %vm1110_vm12, %v1626_v57 }
 0x9c8   : > { %1907 = vmatpush.bf16.xpose.msra.mxu3 %v1898_v58 }
 0x9d2   : > { %1506 = vrot.lane.b32.xlu0 %v3331_v25, %s3065_s8 }
 0x9da   : > { %1779 = vrot.lane.b32.xlu0 %v3414_v43, %s3061_s0 }
 0x9de   : > { %1651 = vrot.lane.b32.xlu2 %v3414_v43, %s3058_s30 }
 0x9e6   : > { %1777 = vrot.lane.b32.xlu2 %v3416_v45, %s3060_s29  ;;  %s3852_s29 = scalar_lea.vmem %s3803_s13, %s3196_s25 }
 0xa31   : > { %v1471_v59 = vpop.xlane.xlu0 %1470 }
 0xa32   : > { %2937 = vrcp.f32 %v1471_v59  ;;  %v1486_v3 = vand.u32 2147483648, %v1471_v59  ;;  %vm1480_vm0 = vweird.f32 %v1471_v59  ;;  %v1484_v5 = vand.u32 2147483647, %v1471_v59 }
 0xa34   : > { %v1487_v14 = vor.u32 1.1754944e-38, %v1486_v3  ;;  %vm1485_vm4 = vcmp.eq.f32.partialorder %v1484_v5, 8.507059e+37 }
 0xa38   : > { %v2938_v4 = vpop.eup %2937 }
 0xa39   : > { %v1474_v60 = vpop.xlane.xlu2 %1473  ;;  %v1476_v61 = vmul.f32 %v2938_v4, %v1471_v59  ;;  %vm1481_vm15 = vweird.f32 %v2938_v4 }
 0xa3a   : > { %2939 = vrcp.f32 %v1474_v60  ;;  %vm1482_vm1 = vmor %vm1480_vm0, %vm1481_vm15  ;;  %v1501_v9 = vand.u32 2147483648, %v1474_v60  ;;  %v1499_v12 = vand.u32 2147483647, %v1474_v60  ;;  %vm1495_vm5 = vweird.f32 %v1474_v60 }
 0xa3b   : > { %v1477_v62 = vsub.f32 1.0, %v1476_v61 }
 0xa3c   : > { %v1502_v17 = vor.u32 1.1754944e-38, %v1501_v9  ;;  %vm1500_vm8 = vcmp.eq.f32.partialorder %v1499_v12, 8.507059e+37 }
 0xa3d   : > { %v1478_v0 = vmul.f32 %v2938_v4, %v1477_v62 }
 0xa3f   : > { %v1479_v2 = vadd.f32 %v2938_v4, %v1478_v0 }
 0xa40   : > { %v2940_v1 = vpop.eup %2939 }
 0xa41   : > { %v1491_v25 = vmul.f32 %v2940_v1, %v1474_v60  ;;  %v1652_v7 = vpop.permute.xlu2 %1651  ;;  %v1483_v45 = vsel %vm1482_vm1, %v2938_v4, %v1479_v2  ;;  %vm1496_vm2 = vweird.f32 %v2940_v1  ;;  %v1315_v4 = vadd.f32 %v3443_v63, %v3427_v51 }
 0xa42   : > { %v1657_v15 = vsel %vm1089_vm11, %v1652_v7, 0  ;;  %v1488_v16 = vsel %vm1485_vm4, %v1487_v14, %v1483_v45  ;;  %vm1497_vm7 = vmor %vm1495_vm5, %vm1496_vm2 }
 0xa43   : > { %v1492_v6 = vsub.f32 1.0, %v1491_v25  ;;  %v1489_v21 = vmul.f32 %v3456_v37, %v1488_v16  ;;  %v1432_v62 = vadd.f32 %v3431_v56, %v1315_v4 }
 0xa44   : > { %v1507_v8 = vpop.permute.xlu0 %1506 }
 0xa45   : > { %v1493_v10 = vmul.f32 %v2940_v1, %v1492_v6  ;;  %1519 = vmatpush.bf16.msra.mxu2 %v1507_v8 }
 0xa47   : > { %v1494_v13 = vadd.f32 %v2940_v1, %v1493_v10 }
 0xa49   : > { %1666 = vmatpush.bf16.xpose.msrb.mxu2 %v1657_v15  ;;  %v1498_v26 = vsel %vm1497_vm7, %v2940_v1, %v1494_v13  ;;  %v1778_v31 = vpop.permute.xlu2 %1777 }
 0xa4a   : > { %v1503_v18 = vsel %vm1500_vm8, %v1502_v17, %v1498_v26  ;;  %v1642_v20 = vpop.f32.mrf.mxu3 }
 0xa4b   : > { %v1504_v22 = vmul.f32 %v2936_v52, %v1503_v18 }
 0xa4c   : > { %v1780_v23 = vpop.permute.xlu0 %1779 }
 0xa4d   : > { %v1505_v24 = vpack.c.bf16 %v1504_v22, %v1489_v21  ;;  %v1785_v27 = vsel %vm1089_vm11, %v1780_v23, 0 }
 0xa4f   : > { %2745 = vmatmul.msk.bf16.vlgmr.msra.gmra.mxu2 %vm1110_vm12, %v1505_v24  ;;  %v2981_v24 = vld [vmem:[#allocation2] sm:$0xff] }
 0xa51   : > { %1794 = vmatpush.bf16.xpose.msra.mxu2 %v1785_v27 }
 0xa52   : > { %v1644_v28 = vpop.f32.mrf.mxu3 }
 0xa53   : > { %v1647_v11 = vpack.c.bf16 %v1644_v28, %v1642_v20  ;;  %v3539_v28 = vld [vmem:[%s3845_s23] ss:$0 sm:$0xff] }
 0xa55   : > { %2752 = vmatmul.msk.bf16.vlgmr.msrb.gmra.mxu3 %vm1089_vm11, %v1647_v11 }
 0xa5f   : > { %2749 = vmatmul.msk.bf16.vlgmr.msrb.gmra.mxu2 %vm1089_vm11, %v3450_v29 }
 0xa65   : > { %2756 = vmatmul.msk.bf16.vlgmr.msra.gmra.mxu3 %vm1089_vm11, %v1891_v30 }
 0xa6f   : > { %2753 = vmatmul.msk.bf16.vlgmr.msra.gmra.mxu2 %vm1089_vm11, %v1778_v31  ;;  %v2982_v31 = vld [vmem:[#allocation2 + $0x8] sm:$0xff] }
 0xad2   : > { %v1521_v34 = vpop.f32.mrf.mxu2 }
 0xad8   : > { %v3487_v36 = vpop.f32.mrf.mxu3 }
 0xada   : > { %v1523_v37 = vpop.f32.mrf.mxu2 }
 0xadb   : > { %v1526_v38 = vpack.c.bf16 %v1523_v37, %v1521_v34 }
 0xadd   : > { %2746 = vmatmul.msk.bf16.vlgmr.msra.gmra.mxu0 %vm1089_vm11, %v1526_v38 }
 0xae0   : > { %v3490_v29 = vpop.f32.mrf.mxu3 }
 0xae2   : > { %v1668_v39 = vpop.f32.mrf.mxu2 }
 0xae3   : > { %v1673_v41 = vsel %vm1110_vm12, %v1668_v39, -inf }
 0xae4   : > { %1674 = vmax.xlane.f32.xlu0 %v1673_v41 }
 0xae8   : > { %v1909_v42 = vpop.f32.mrf.mxu3 }
 0xae9   : > { %v1914_v35 = vsel %vm1110_vm12, %v1909_v42, -inf }
 0xaea   : > { %1915 = vmax.xlane.f32.xlu2 %v1914_v35  ;;  %v1670_v44 = vpop.f32.mrf.mxu2 }
 0xaeb   : > { %v1676_v46 = vsel %vm1110_vm12, %v1670_v44, -inf }
 0xaec   : > { %1677 = vmax.xlane.f32.xlu1 %v1676_v46 }
 0xaf0   : > { %v1911_v47 = vpop.f32.mrf.mxu3 }
 0xaf1   : > { %v1917_v48 = vsel %vm1110_vm12, %v1911_v47, -inf }
 0xaf2   : > { %1918 = vmax.xlane.f32.xlu0 %v1917_v48  ;;  %v1796_v49 = vpop.f32.mrf.mxu2 }
 0xaf3   : > { %v1801_v19 = vsel %vm1110_vm12, %v1796_v49, -inf }
 0xaf4   : > { %1802 = vmax.xlane.f32.xlu1 %v1801_v19 }
 0xafa   : > { %v1798_v50 = vpop.f32.mrf.mxu2 }
 0xafb   : > { %v1804_v52 = vsel %vm1110_vm12, %v1798_v50, -inf }
 0xafc   : > { %1805 = vmax.xlane.f32.xlu2 %v1804_v52 }
 0xb57   : > { %v1675_v53 = vpop.xlane.xlu0 %1674 }
 0xb58   : > { %v1679_v54 = vsub.f32 %v1668_v39, %v1675_v53 }
 0xb5a   : > { %v1681_v57 = vmul.f32 1.442695, %v1679_v54  ;;  %v1542_v58 = vpop.f32.mrf.mxu0 }
 0xb5b   : > { %v1547_v59 = vadd.f32 %v1542_v58, %v3429_v55 }
 0xb5c   : > { %2941 = vpow2.f32 %v1681_v57 }
 0xb5d   : > { %1549 = vst.msk [vmem:[#allocation4] sm:$0xff] %vm921_vm3, %v1547_v59  ;;  %v1916_v6 = vpop.xlane.xlu2 %1915 }
 0xb5e   : > { %v1920_v13 = vsub.f32 %v1909_v42, %v1916_v6 }
 0xb5f   : > { %v1678_v60 = vpop.xlane.xlu1 %1677 }
 0xb60   : > { %v1680_v61 = vsub.f32 %v1670_v44, %v1678_v60  ;;  %v1922_v26 = vmul.f32 1.442695, %v1920_v13 }
 0xb62   : > { %v3503_v0 = vpop.eup %2941  ;;  %v1683_v1 = vmul.f32 1.442695, %v1680_v61  ;;  %v1544_v2 = vpop.f32.mrf.mxu0 }
 0xb63   : > { %v1548_v25 = vadd.f32 %v1544_v2, %v1432_v62  ;;  %v1685_v3 = vsel %vm1110_vm12, %v3503_v0, 0.0 }
 0xb64   : > { %2943 = vpow2.f32 %v1683_v1  ;;  %1686 = vadd.xlane.f32.xlu0 %v1685_v3  ;;  %v2005_v23 = vld [vmem:[#allocation4] sm:$0xff] }
 0xb65   : > { %1550 = vst.msk [vmem:[#allocation4 + $0x8] sm:$0xff] %vm921_vm3, %v1548_v25  ;;  %v1919_v55 = vpop.xlane.xlu0 %1918  ;;  %v2009_v27 = vadd.f32 %v2981_v24, %v2005_v23 }
 0xb66   : > { %v1921_v5 = vsub.f32 %v1911_v47, %v1919_v55 }
 0xb67   : > { %v1803_v51 = vpop.xlane.xlu1 %1802  ;;  %v3542_v11 = vadd.f32 %v3539_v28, %v2009_v27 }
 0xb68   : > { %v1924_v63 = vmul.f32 1.442695, %v1921_v5  ;;  %v1807_v7 = vsub.f32 %v1796_v49, %v1803_v51 }
 0xb69   : > { %v2023_v34 = vsel %vm921_vm3, %v3542_v11, 0.0 }
 0xb6a   : > { %v3508_v9 = vpop.eup %2943  ;;  %2945 = vpow2.f32 %v1924_v63  ;;  %v1809_v56 = vmul.f32 1.442695, %v1807_v7 }
 0xb6b   : > { %v1688_v45 = vsel %vm1110_vm12, %v3508_v9, 0.0 }
 0xb6c   : > { %2947 = vpow2.f32 %v1809_v56  ;;  %1689 = vadd.xlane.f32.xlu1 %v1688_v45  ;;  %v2006_v30 = vld [vmem:[#allocation4 + $0x8] sm:$0xff] }
 0xb6d   : > { %v2010_v32 = vadd.f32 %v2982_v31, %v2006_v30 }
 0xb6f   : > { %v1806_v10 = vpop.xlane.xlu2 %1805 }
 0xb70   : > { %v3512_v12 = vpop.eup %2945  ;;  %v1808_v8 = vsub.f32 %v1798_v50, %v1806_v10 }
 0xb71   : > { %v1929_v14 = vsel %vm1110_vm12, %v3512_v12, 0.0 }
 0xb72   : > { %v3516_v15 = vpop.eup %2947  ;;  %v1811_v16 = vmul.f32 1.442695, %v1808_v8  ;;  %1930 = vadd.xlane.f32.xlu0 %v1929_v14 }
 0xb73   : > { %v1813_v17 = vsel %vm1110_vm12, %v3516_v15, 0.0 }
 0xb74   : > { %2949 = vpow2.f32 %v1811_v16  ;;  %1814 = vadd.xlane.f32.xlu1 %v1813_v17 }
 0xb75   : > { %2951 = vpow2.f32 %v1922_v26 }
 0xb7a   : > { %v3520_v18 = vpop.eup %2949 }
 0xb7b   : > { %v1816_v20 = vsel %vm1110_vm12, %v3520_v18, 0.0  ;;  %v3524_v21 = vpop.eup %2951 }
 0xb7c   : > { %1817 = vadd.xlane.f32.xlu2 %v1816_v20  ;;  %v1926_v22 = vsel %vm1110_vm12, %v3524_v21, 0.0 }
 0xb84   : > { %1927 = vadd.xlane.f32.xlu2 %v1926_v22 }
 0xb86   : > { %1722 = vrot.lane.b32.xlu0 %v3414_v43, %s3059_s24 }
 0xb8d   : > { %1963 = vrot.lane.b32.xlu1 %v3414_v43, %s3065_s8 }
 0xb9c   : > { %1850 = vrot.lane.b32.xlu2 %v3414_v43, %s3063_s22  ;;  %v3547_v43 = vadd.f32 %v3539_v28, %v2010_v32  ;;  %s2305_s22 = sadd.s32 1, %s3044_s1 }
 0xb9d   : > { %s2307_s8 = ssub.s32 0, %s2305_s22  ;;  %p2306_p6 = scmp.lt.s32.totalorder %s2305_s22, 0 }
 0xb9e   : > { %v2026_v37 = vsel %vm921_vm3, %v3547_v43, 0.0  ;;  %s2801_s19 = smin.u32 %s2307_s8, %s2305_s22 }
 0xb9f   : > { %s2309_s20 = sand.u32 1, %s2801_s19  }
 0xba0   : > { %s2310_s23 = ssub.s32 0, %s2309_s20 }
 0xba1   : > { %s3868_s23 = smov (!%p2306_p6, %s2310_s23), %s2309_s20 }
 0xba2   : > { %p2803_p7 = scmp.lt.s32.totalorder %s3868_s23, 0 }
 0xbb0   : > { %2024 = vadd.xlane.f32.xlu0 %v2023_v34 }
 0xbb7   : > { %2027 = vadd.xlane.f32.xlu1 %v2026_v37 }
 0xbd7   : > { %v1687_v38 = vpop.xlane.xlu0 %1686 }
 0xbd8   : > { %2953 = vrcp.f32 %v1687_v38  ;;  %v1702_v4 = vand.u32 2147483648, %v1687_v38  ;;  %vm1696_vm14 = vweird.f32 %v1687_v38  ;;  %v1700_v61 = vand.u32 2147483647, %v1687_v38 }
 0xbda   : > { %v1703_v55 = vor.u32 1.1754944e-38, %v1702_v4  ;;  %vm1701_vm1 = vcmp.eq.f32.partialorder %v1700_v61, 8.507059e+37 }
 0xbde   : > { %v2954_v39 = vpop.eup %2953 }
 0xbdf   : > { %v1690_v41 = vpop.xlane.xlu1 %1689  ;;  %v1692_v42 = vmul.f32 %v2954_v39, %v1687_v38  ;;  %vm1697_vm9 = vweird.f32 %v2954_v39 }
 0xbe0   : > { %2955 = vrcp.f32 %v1690_v41  ;;  %v1717_v53 = vand.u32 2147483648, %v1690_v41  ;;  %vm1711_vm10 = vweird.f32 %v1690_v41  ;;  %v1715_v58 = vand.u32 2147483647, %v1690_v41  ;;  %vm1698_vm15 = vmor %vm1696_vm14, %vm1697_vm9 }
 0xbe1   : > { %v1693_v46 = vsub.f32 1.0, %v1692_v42 }
 0xbe2   : > { %v1718_v1 = vor.u32 1.1754944e-38, %v1717_v53  ;;  %vm1716_vm0 = vcmp.eq.f32.partialorder %v1715_v58, 8.507059e+37 }
 0xbe3   : > { %v1694_v19 = vmul.f32 %v2954_v39, %v1693_v46 }
 0xbe5   : > { %v3551_v35 = vpop.xlane.xlu0 %1930  ;;  %v1695_v57 = vadd.f32 %v2954_v39, %v1694_v19 }
 0xbe6   : > { %v2956_v44 = vpop.eup %2955  ;;  %2957 = vrcp.f32 %v3551_v35  ;;  %vm1952_vm8 = vweird.f32 %v3551_v35 }
 0xbe7   : > { %v1707_v47 = vmul.f32 %v2956_v44, %v1690_v41  ;;  %v3553_v48 = vpop.xlane.xlu1 %1814  ;;  %vm1712_vm6 = vweird.f32 %v2956_v44  ;;  %v1699_v2 = vsel %vm1698_vm15, %v2954_v39, %v1695_v57  ;;  %v1958_v39 = vand.u32 2147483648, %v3551_v35 }
 0xbe8   : > { %2959 = vrcp.f32 %v3553_v48  ;;  %vm1713_vm13 = vmor %vm1711_vm10, %vm1712_vm6  ;;  %v1704_v6 = vsel %vm1701_vm1, %v1703_v55, %v1699_v2  ;;  %v1830_v22 = vand.u32 2147483648, %v3553_v48  ;;  %vm1824_vm10 = vweird.f32 %v3553_v48 }
 0xbe9   : > { %v1708_v49 = vsub.f32 1.0, %v1707_v47  ;;  %v1705_v8 = vmul.f32 %v3503_v0, %v1704_v6  ;;  %v1828_v41 = vand.u32 2147483647, %v3553_v48  ;;  %v1959_v58 = vor.u32 1.1754944e-38, %v1958_v39 }
 0xbea   : > { %v1831_v47 = vor.u32 1.1754944e-38, %v1830_v22 }
 0xbeb   : > { %v1709_v50 = vmul.f32 %v2956_v44, %v1708_v49 }
 0xbec   : > { %v3557_v54 = vpop.eup %2957 }
 0xbed   : > { %v1710_v52 = vadd.f32 %v2956_v44, %v1709_v50  ;;  %v1948_v25 = vmul.f32 %v3557_v54, %v3551_v35  ;;  %vm1953_vm4 = vweird.f32 %v3557_v54 }
 0xbee   : > { %v3559_v59 = vpop.eup %2959  ;;  %vm3587_vm9 = vmor %vm1952_vm8, %vm1953_vm4 }
 0xbef   : > { %v3561_v60 = vpop.xlane.xlu2 %1817  ;;  %v1714_v62 = vsel %vm1713_vm13, %v2956_v44, %v1710_v52  ;;  %v1820_v3 = vmul.f32 %v3559_v59, %v3553_v48  ;;  %v1949_v7 = vsub.f32 1.0, %v1948_v25  ;;  %vm1825_vm5 = vweird.f32 %v3559_v59 }
 0xbf0   : > { %2961 = vrcp.f32 %v3561_v60  ;;  %v1719_v5 = vsel %vm1716_vm0, %v1718_v1, %v1714_v62  ;;  %vm1839_vm7 = vweird.f32 %v3561_v60  ;;  %v1843_v30 = vand.u32 2147483647, %v3561_v60  ;;  %vm3599_vm13 = vmor %vm1824_vm10, %vm1825_vm5 }
 0xbf1   : > { %v1720_v63 = vmul.f32 %v3508_v9, %v1719_v5  ;;  %v1821_v56 = vsub.f32 1.0, %v1820_v3  ;;  %v1950_v16 = vmul.f32 %v3557_v54, %v1949_v7  ;;  %v1845_v9 = vand.u32 2147483648, %v3561_v60 }
 0xbf2   : > { %v1956_v44 = vand.u32 2147483647, %v3551_v35  ;;  %vm1844_vm14 = vcmp.eq.f32.partialorder %v1843_v30, 8.507059e+37  ;;  %vm1829_vm0 = vcmp.eq.f32.partialorder %v1828_v41, 8.507059e+37 }
 0xbf3   : > { %v1822_v17 = vmul.f32 %v3559_v59, %v1821_v56  ;;  %v1721_v26 = vpack.c.bf16 %v1720_v63, %v1705_v8  ;;  %v1951_v24 = vadd.f32 %v3557_v54, %v1950_v16  ;;  %v1846_v49 = vor.u32 1.1754944e-38, %v1845_v9 }
 0xbf4   : > { %vm1957_vm1 = vcmp.eq.f32.partialorder %v1956_v44, 8.507059e+37  ;;  %v2984_v44 = vld [vmem:[#allocation2 + $0x18] sm:$0xff] }
 0xbf5   : > { %v1823_v27 = vadd.f32 %v3559_v59, %v1822_v17  ;;  %v1955_v48 = vsel %vm3587_vm9, %v3557_v54, %v1951_v24 }
 0xbf6   : > { %v2962_v51 = vpop.eup %2961 }
 0xbf7   : > { %v1835_v45 = vmul.f32 %v2962_v51, %v3561_v60  ;;  %v1928_v10 = vpop.xlane.xlu2 %1927  ;;  %vm1840_vm2 = vweird.f32 %v2962_v51  ;;  %v1827_v50 = vsel %vm3599_vm13, %v3559_v59, %v1823_v27 }
 0xbf8   : > { %2963 = vrcp.f32 %v1928_v10  ;;  %v1723_v14 = vpop.permute.xlu0 %1722  ;;  %vm3583_vm6 = vmor %vm1839_vm7, %vm1840_vm2  ;;  %v1943_v35 = vand.u32 2147483648, %v1928_v10  ;;  %v1941_v57 = vand.u32 2147483647, %v1928_v10  ;;  %v1832_v4 = vsel %vm1829_vm0, %v1831_v47, %v1827_v50 }
 0xbf9   : > { %v1836_v13 = vsub.f32 1.0, %v1835_v45  ;;  %1735 = vmatpush.bf16.msrb.mxu0 %v1723_v14  ;;  %vm1937_vm2 = vweird.f32 %v1928_v10  ;;  %v1833_v59 = vmul.f32 %v3516_v15, %v1832_v4  ;;  %v2825_v4 = vld [vmem:[%s3236_s6] sm:$0xff] }
 0xbfa   : > { %v1944_v54 = vor.u32 1.1754944e-38, %v1943_v35  ;;  %vm1942_vm5 = vcmp.eq.f32.partialorder %v1941_v57, 8.507059e+37 }
 0xbfb   : > { %v1837_v20 = vmul.f32 %v2962_v51, %v1836_v13 }
 0xbfc   : > { %2750 = vmatmul.msk.bf16.vlgmr.msrb.gmra.mxu0 %vm1110_vm12, %v1721_v26 }
 0xbfd   : > { %v1838_v0 = vadd.f32 %v2962_v51, %v1837_v20 }
 0xbfe   : > { %v2964_v23 = vpop.eup %2963 }
 0xbff   : > { %v1933_v32 = vmul.f32 %v2964_v23, %v1928_v10  ;;  %v1964_v34 = vpop.permute.xlu1 %1963  ;;  %v1851_v37 = vpop.permute.xlu2 %1850  ;;  %v1842_v42 = vsel %vm3583_vm6, %v2962_v51, %v1838_v0  ;;  %vm1938_vm15 = vweird.f32 %v2964_v23 }
 0xc00   : > { %1863 = vmatpush.bf16.msra.mxu0 %v1851_v37  ;;  %1976 = vmatpush.bf16.msrb.mxu2 %v1964_v34  ;;  %v1847_v52 = vsel %vm1844_vm14, %v1846_v49, %v1842_v42  ;;  %vm1939_vm4 = vmor %vm1937_vm2, %vm1938_vm15  ;;  %v2983_v37 = vld [vmem:[#allocation2 + $0x10] sm:$0xff] }
 0xc01   : > { %v1934_v19 = vsub.f32 1.0, %v1933_v32  ;;  %v1848_v61 = vmul.f32 %v3520_v18, %v1847_v52 }
 0xc03   : > { %v1935_v53 = vmul.f32 %v2964_v23, %v1934_v19  ;;  %v1849_v3 = vpack.c.bf16 %v1848_v61, %v1833_v59 }
 0xc04   : > { %1994 = vmatpush.bf16.msrb.mxu0 %v3484_v33  ;;  %v1960_v33 = vsel %vm1957_vm1, %v1959_v58, %v1955_v48 }
 0xc05   : > { %v1936_v60 = vadd.f32 %v2964_v23, %v1935_v53  ;;  %v1961_v2 = vmul.f32 %v3512_v12, %v1960_v33  ;;  %v2826_v53 = vld [vmem:[%s3236_s6 + $0x8] sm:$0xff]  ;;  %s2316_s6 = sadd.s32 2, %s3868_s23 }
 0xc06   : > { %s3870_s6 = smov (!%p2803_p7, %s2316_s6), %s3868_s23 }
 0xc07   : > { %v1940_v62 = vsel %vm1939_vm4, %v2964_v23, %v1936_v60  ;;  %p2804_p8 = scmp.ne.s32.totalorder %s3870_s6, 0 }
 0xc08   : > { %v1945_v1 = vsel %vm1942_vm5, %v1944_v54, %v1940_v62 }
 0xc09   : > { %v1946_v25 = vmul.f32 %v3524_v21, %v1945_v1 }
 0xc0b   : > { %v1962_v55 = vpack.c.bf16 %v1961_v2, %v1946_v25 }
 0xc0c   : > { %2754 = vmatmul.msk.bf16.vlgmr.msra.gmra.mxu0 %vm1110_vm12, %v1849_v3 }
 0xc0d   : > { %2757 = vmatmul.msk.bf16.vlgmr.msrb.gmra.mxu2 %vm1110_vm12, %v1962_v55 }
 0xc23   : > { %v2025_v5 = vpop.xlane.xlu0 %2024 }
 0xc24   : > { %v2035_v18 = vmul.f32 %v2025_v5, %v3293_v40 }
 0xc26   : > { %v3618_v6 = vsub.f32 %v3542_v11, %v2035_v18 }
 0xc28   : > { %v2043_v15 = vmul.f32 %v3618_v6, %v3618_v6 }
 0xc2a   : > { %v2047_v51 = vsel %vm921_vm3, %v2043_v15, 0.0  ;;  %v2028_v27 = vpop.xlane.xlu1 %2027 }
 0xc2b   : > { %2048 = vadd.xlane.f32.xlu1 %v2047_v51  ;;  %v2036_v34 = vmul.f32 %v2028_v27, %v3293_v40 }
 0xc2d   : > { %v2040_v39 = vsub.f32 %v3547_v43, %v2036_v34 }
 0xc2f   : > { %v2044_v42 = vmul.f32 %v2040_v39, %v2040_v39 }
 0xc31   : > { %v2050_v49 = vsel %vm921_vm3, %v2044_v42, 0.0 }
 0xc79   : > { %v1737_v12 = vpop.f32.mrf.mxu0 }
 0xc81   : > { %v1739_v21 = vpop.f32.mrf.mxu0 }
 0xc82   : > { %v1742_v63 = vpack.c.bf16 %v1739_v21, %v1737_v12 }
 0xc84   : > { %2751 = vmatmul.msk.bf16.vlgmr.msra.gmra.mxu1 %vm1089_vm11, %v1742_v63 }
 0xc85   : > { %2159 = vmatpush.bf16.msra.mxu1 %v2826_v53 }
 0xc89   : > { %v1865_v7 = vpop.f32.mrf.mxu0  ;;  %2160 = vmatpush.bf16.msra.mxu1 %v2825_v4 }
 0xc90   : > { %v1978_v56 = vpop.f32.mrf.mxu2 }
 0xc91   : > { %v1867_v45 = vpop.f32.mrf.mxu0 }
 0xc92   : > { %v1870_v10 = vpack.c.bf16 %v1867_v45, %v1865_v7 }
 0xc94   : > { %2755 = vmatmul.msk.bf16.vlgmr.msrb.gmra.mxu1 %vm1089_vm11, %v1870_v10  ;;  %v2887_v10 = vld [vmem:[%s810_s17] ss:$0 sm:$0xff] }
 0xc98   : > { %v1980_v8 = vpop.f32.mrf.mxu2 }
 0xc99   : > { %v1983_v14 = vpack.c.bf16 %v1980_v8, %v1978_v56 }
 0xc9b   : > { %2758 = vmatmul.msk.bf16.vlgmr.msrb.gmra.mxu0 %vm1089_vm11, %v1983_v14 }
 0xc9e   : > { %v2049_v48 = vpop.xlane.xlu1 %2048 }
 0xc9f   : > { %v2059_v50 = vmul.f32 %v2049_v48, %v3293_v40 }
 0xca1   : > { %v2063_v35 = vadd.f32 1e-05, %v2059_v50 }
 0xca3   : > { %2965 = vrsqrt.f32 %v2063_v35  ;;  %vm2073_vm12 = vweird.f32 %v2063_v35 }
 0xca9   : > { %v2966_v57 = vpop.eup %2965 }
 0xcaa   : > { %v2068_v60 = vmul.f32 %v2966_v57, %v2063_v35  ;;  %vm2074_vm11 = vweird.f32 %v2966_v57  ;;  %v2831_v35 = vld [vmem:[%s3246_s4 + $0x20] sm:$0xff] }
 0xcab   : > { %vm2075_vm7 = vmor %vm2073_vm12, %vm2074_vm11 }
 0xcac   : > { %v2069_v54 = vmul.f32 %v2966_v57, %v2068_v60  ;;  %v2829_v60 = vld [vmem:[%s3246_s4 + $0x10] sm:$0xff] }
 0xcae   : > { %v2070_v55 = vmul.f32 0.5, %v2069_v54 }
 0xcb0   : > { %v2071_v15 = vsub.f32 1.5, %v2070_v55 }
 0xcb2   : > { %v2072_v12 = vmul.f32 %v2966_v57, %v2071_v15 }
 0xcb4   : > { %v2076_v7 = vsel %vm2075_vm7, %v2966_v57, %v2072_v12 }
 0xcb5   : > { %v2107_v8 = vmul.f32 %v2076_v7, %v3618_v6 }
 0xd01   : > { %v1755_v13 = vpop.f32.mrf.mxu1 }
 0xd02   : > { %v1773_v26 = vadd.f32 %v3487_v36, %v1755_v13 }
 0xd09   : > { %v1757_v16 = vpop.f32.mrf.mxu1 }
 0xd0a   : > { %v1775_v23 = vadd.f32 %v3490_v29, %v1757_v16  ;;  %v2888_v16 = vld [vmem:[%s813_s2] ss:$0 sm:$0xff] }
 0xd11   : > { %v1883_v17 = vpop.f32.mrf.mxu1 }
 0xd12   : > { %v1888_v20 = vadd.f32 %v1883_v17, %v1773_v26  ;;  %v2114_v17 = vmul.f32 %v2887_v10, %v2107_v8 }
 0xd18   : > { %v1996_v22 = vpop.f32.mrf.mxu0 }
 0xd19   : > { %v2001_v0 = vadd.f32 %v1996_v22, %v1888_v20  ;;  %v1885_v9 = vpop.f32.mrf.mxu1  ;;  %v2121_v22 = vadd.f32 %v2888_v16, %v2114_v17 }
 0xd1a   : > { %v1889_v24 = vadd.f32 %v1885_v9, %v1775_v23 }
 0xd1b   : > { %2003 = vst.msk [vmem:[#allocation4 + $0x10] sm:$0xff] %vm921_vm3, %v2001_v0 }
 0xd20   : > { %v1998_v30 = vpop.f32.mrf.mxu0 }
 0xd21   : > { %v2002_v31 = vadd.f32 %v1998_v30, %v1889_v24 }
 0xd22   : > { %v2007_v32 = vld [vmem:[#allocation4 + $0x10] sm:$0xff] }
 0xd23   : > { %2004 = vst.msk [vmem:[#allocation4 + $0x18] sm:$0xff] %vm921_vm3, %v2002_v31  ;;  %v2011_v38 = vadd.f32 %v2983_v37, %v2007_v32  ;;  %v2834_v37 = vld [vmem:[%s3246_s4 + $0x38] sm:$0xff] }
 0xd24   : > { %2278 = vmatpush.bf16.msrb.mxu3 %v2834_v37 }
 0xd25   : > { %v3632_v36 = vadd.f32 %v3539_v28, %v2011_v38 }
 0xd27   : > { %v2029_v41 = vsel %vm921_vm3, %v3632_v36, 0.0 }
 0xd28   : > { %2030 = vadd.xlane.f32.xlu2 %v2029_v41  ;;  %v2833_v41 = vld [vmem:[%s3246_s4 + $0x30] sm:$0xff] }
 0xd29   : > { %2279 = vmatpush.bf16.msrb.mxu3 %v2833_v41 }
 0xd2a   : > { %v2008_v29 = vld [vmem:[#allocation4 + $0x18] sm:$0xff] }
 0xd2b   : > { %v2012_v46 = vadd.f32 %v2984_v44, %v2008_v29 }
 0xd2d   : > { %v3638_v47 = vadd.f32 %v3539_v28, %v2012_v46 }
 0xd2f   : > { %v2032_v19 = vsel %vm921_vm3, %v3638_v47, 0.0 }
 0xd30   : > { %2051 = vadd.xlane.f32.xlu2 %v2050_v49  ;;  %2033 = vadd.xlane.f32.xlu0 %v2032_v19  ;;  %v2832_v49 = vld [vmem:[%s3246_s4 + $0x28] sm:$0xff] }
 0xd31   : > { %2280 = vmatpush.bf16.msrb.mxu3 %v2832_v49 }
 0xd35   : > { %2281 = vmatpush.bf16.msrb.mxu3 %v2831_v35 }
 0xd9b   : > { %v2031_v52 = vpop.xlane.xlu2 %2030 }
 0xd9c   : > { %v2037_v58 = vmul.f32 %v2031_v52, %v3293_v40 }
 0xd9e   : > { %v3647_v28 = vsub.f32 %v3632_v36, %v2037_v58  ;;  %v2830_v58 = vld [vmem:[%s3246_s4 + $0x18] sm:$0xff] }
 0xd9f   : > { %2282 = vmatpush.bf16.msrb.mxu3 %v2830_v58 }
 0xda0   : > { %v2045_v33 = vmul.f32 %v3647_v28, %v3647_v28 }
 0xda2   : > { %v2053_v61 = vsel %vm921_vm3, %v2045_v33, 0.0 }
 0xda3   : > { %v2052_v62 = vpop.xlane.xlu2 %2051  ;;  %2054 = vadd.xlane.f32.xlu0 %v2053_v61  ;;  %v2034_v59 = vpop.xlane.xlu0 %2033  ;;  %2283 = vmatpush.bf16.msrb.mxu3 %v2829_v60 }
 0xda4   : > { %v2060_v1 = vmul.f32 %v2052_v62, %v3293_v40  ;;  %v2038_v2 = vmul.f32 %v2034_v59, %v3293_v40  ;;  %v2828_v62 = vld [vmem:[%s3246_s4 + $0x8] sm:$0xff] }
 0xda6   : > { %v2064_v25 = vadd.f32 1e-05, %v2060_v1  ;;  %v3656_v3 = vsub.f32 %v3638_v47, %v2038_v2 }
 0xda7   : > { %2284 = vmatpush.bf16.msrb.mxu3 %v2828_v62 }
 0xda8   : > { %2967 = vrsqrt.f32 %v2064_v25  ;;  %v2046_v5 = vmul.f32 %v3656_v3, %v3656_v3  ;;  %vm2083_vm6 = vweird.f32 %v2064_v25 }
 0xdaa   : > { %v2056_v18 = vsel %vm921_vm3, %v2046_v5, 0.0 }
 0xdab   : > { %2057 = vadd.xlane.f32.xlu1 %v2056_v18 }
 0xdae   : > { %v2968_v51 = vpop.eup %2967 }
 0xdaf   : > { %v2078_v21 = vmul.f32 %v2968_v51, %v2064_v25  ;;  %vm2084_vm8 = vweird.f32 %v2968_v51  ;;  %v2827_v25 = vld [vmem:[%s3246_s4] sm:$0xff] }
 0xdb0   : > { %vm2085_vm9 = vmor %vm2083_vm6, %vm2084_vm8  ;;  %2285 = vmatpush.bf16.msrb.mxu3 %v2827_v25 }
 0xdb1   : > { %v2079_v63 = vmul.f32 %v2968_v51, %v2078_v21 }
 0xdb3   : > { %v2080_v56 = vmul.f32 0.5, %v2079_v63 }
 0xdb5   : > { %v2081_v45 = vsub.f32 1.5, %v2080_v56 }
 0xdb7   : > { %v2082_v14 = vmul.f32 %v2968_v51, %v2081_v45 }
 0xdb9   : > { %v2086_v13 = vsel %vm2085_vm9, %v2968_v51, %v2082_v14 }
 0xdba   : > { %v2108_v26 = vmul.f32 %v2086_v13, %v2040_v39 }
 0xdbc   : > { %v2115_v20 = vmul.f32 %v2887_v10, %v2108_v26 }
 0xdbe   : > { %v2122_v0 = vadd.f32 %v2888_v16, %v2115_v20 }
 0xdc0   : > { %v2125_v9 = vpack.c.bf16 %v2122_v0, %v2121_v22 }
 0xdc2   : > { %2767 = vmatmul.msk.bf16.vlgmr.msra.gmra.mxu1 %vm921_vm3, %v2125_v9 }
 0xe16   : > { %v2055_v6 = vpop.xlane.xlu0 %2054 }
 0xe17   : > { %v2061_v23 = vmul.f32 %v2055_v6, %v3293_v40 }
 0xe19   : > { %v2065_v24 = vadd.f32 1e-05, %v2061_v23 }
 0xe1b   : > { %2969 = vrsqrt.f32 %v2065_v24  ;;  %vm2093_vm13 = vweird.f32 %v2065_v24 }
 0xe1e   : > { %v2058_v27 = vpop.xlane.xlu1 %2057 }
 0xe1f   : > { %v2062_v30 = vmul.f32 %v2058_v27, %v3293_v40 }
 0xe21   : > { %v2970_v31 = vpop.eup %2969  ;;  %v2066_v32 = vadd.f32 1e-05, %v2062_v30 }
 0xe22   : > { %v2088_v34 = vmul.f32 %v2970_v31, %v2065_v24  ;;  %vm2094_vm10 = vweird.f32 %v2970_v31 }
 0xe23   : > { %2971 = vrsqrt.f32 %v2066_v32  ;;  %vm2095_vm14 = vmor %vm2093_vm13, %vm2094_vm10  ;;  %vm2103_vm0 = vweird.f32 %v2066_v32 }
 0xe24   : > { %v2089_v38 = vmul.f32 %v2970_v31, %v2088_v34 }
 0xe26   : > { %v2090_v39 = vmul.f32 0.5, %v2089_v38 }
 0xe28   : > { %v2091_v29 = vsub.f32 1.5, %v2090_v39 }
 0xe29   : > { %v2972_v42 = vpop.eup %2971 }
 0xe2a   : > { %v2092_v44 = vmul.f32 %v2970_v31, %v2091_v29  ;;  %v2098_v46 = vmul.f32 %v2972_v42, %v2066_v32  ;;  %vm2104_vm15 = vweird.f32 %v2972_v42 }
 0xe2b   : > { %vm2105_vm1 = vmor %vm2103_vm0, %vm2104_vm15 }
 0xe2c   : > { %v2099_v19 = vmul.f32 %v2972_v42, %v2098_v46  ;;  %v2096_v48 = vsel %vm2095_vm14, %v2970_v31, %v2092_v44 }
 0xe2d   : > { %v2109_v53 = vmul.f32 %v2096_v48, %v3647_v28  ;;  %v2889_v28 = vld [vmem:[%s3852_s29] ss:$0 sm:$0xff] }
 0xe2e   : > { %v2100_v50 = vmul.f32 0.5, %v2099_v19 }
 0xe2f   : > { %v2116_v61 = vmul.f32 %v2887_v10, %v2109_v53 }
 0xe30   : > { %v2101_v52 = vsub.f32 1.5, %v2100_v50 }
 0xe31   : > { %v2123_v59 = vadd.f32 %v2888_v16, %v2116_v61 }
 0xe32   : > { %v2102_v57 = vmul.f32 %v2972_v42, %v2101_v52 }
 0xe34   : > { %v2106_v4 = vsel %vm2105_vm1, %v2972_v42, %v2102_v57  ;;  %v2890_v57 = vld [vmem:[%s3853_s26] ss:$0 sm:$0xff] }
 0xe35   : > { %v2110_v33 = vmul.f32 %v2106_v4, %v3656_v3 }
 0xe37   : > { %v2117_v54 = vmul.f32 %v2887_v10, %v2110_v33 }
 0xe39   : > { %v2124_v1 = vadd.f32 %v2888_v16, %v2117_v54 }
 0xe3b   : > { %v2126_v2 = vpack.c.bf16 %v2124_v1, %v2123_v59 }
 0xe3d   : > { %2768 = vmatmul.msk.bf16.gmra.mxu1 %vm921_vm3, %v2126_v2 }
 0xe3f   : > { %v2162_v55 = vpop.f32.mrf.mxu1 }
 0xe40   : > { %v2163_v5 = vadd.f32 %v2889_v28, %v2162_v55 }
 0xe42   : > { %v2176_v3 = vmul.f32 0.044715, %v2163_v5  ;;  %v2172_v17 = vmul.f32 0.5, %v2163_v5 }
 0xe44   : > { %v2180_v18 = vmul.f32 %v2176_v3, %v2163_v5 }
 0xe46   : > { %v2184_v15 = vmul.f32 %v2180_v18, %v2163_v5 }
 0xe47   : > { %v2164_v51 = vpop.f32.mrf.mxu1 }
 0xe48   : > { %v2188_v12 = vadd.f32 %v2184_v15, %v2163_v5  ;;  %v2165_v21 = vadd.f32 %v2889_v28, %v2164_v51 }
 0xe4a   : > { %v2177_v63 = vmul.f32 0.044715, %v2165_v21  ;;  %v2192_v7 = vmul.f32 0.7978846, %v2188_v12  ;;  %v2173_v26 = vmul.f32 0.5, %v2165_v21 }
 0xe4c   : > { %v2181_v56 = vmul.f32 %v2177_v63, %v2165_v21  ;;  %2973 = vtanh.f32 %v2192_v7 }
 0xe4e   : > { %v2185_v45 = vmul.f32 %v2181_v56, %v2165_v21 }
 0xe50   : > { %v2189_v10 = vadd.f32 %v2185_v45, %v2165_v21 }
 0xe52   : > { %v2193_v8 = vmul.f32 0.7978846, %v2189_v10  ;;  %v2974_v14 = vpop.eup %2973 }
 0xe53   : > { %v2200_v13 = vadd.f32 1.0, %v2974_v14 }
 0xe54   : > { %2975 = vtanh.f32 %v2193_v8 }
 0xe55   : > { %v2204_v22 = vmul.f32 %v2200_v13, %v2172_v17 }
 0xe5a   : > { %v2976_v16 = vpop.eup %2975 }
 0xe5b   : > { %v2201_v20 = vadd.f32 1.0, %v2976_v16 }
 0xe5d   : > { %v2205_v0 = vmul.f32 %v2201_v20, %v2173_v26 }
 0xe5f   : > { %v2208_v9 = vpack.c.bf16 %v2205_v0, %v2204_v22 }
 0xe61   : > { %2286 = vmatmul.bf16.vlgmr.msrb.gmra.mxu3 %v2208_v9 }
 0xeba   : > { %v2167_v6 = vpop.f32.mrf.mxu1 }
 0xebb   : > { %v2168_v23 = vadd.f32 %v2889_v28, %v2167_v6 }
 0xebd   : > { %v2178_v24 = vmul.f32 0.044715, %v2168_v23  ;;  %v2174_v19 = vmul.f32 0.5, %v2168_v23 }
 0xebf   : > { %v2182_v27 = vmul.f32 %v2178_v24, %v2168_v23 }
 0xec1   : > { %v2186_v30 = vmul.f32 %v2182_v27, %v2168_v23 }
 0xec2   : > { %v2169_v31 = vpop.f32.mrf.mxu1 }
 0xec3   : > { %v2170_v32 = vadd.f32 %v2889_v28, %v2169_v31  ;;  %v2190_v34 = vadd.f32 %v2186_v30, %v2168_v23 }
 0xec5   : > { %v2179_v37 = vmul.f32 0.044715, %v2170_v32  ;;  %v2194_v39 = vmul.f32 0.7978846, %v2190_v34  ;;  %v2175_v48 = vmul.f32 0.5, %v2170_v32 }
 0xec7   : > { %v2183_v38 = vmul.f32 %v2179_v37, %v2170_v32  ;;  %2977 = vtanh.f32 %v2194_v39 }
 0xec9   : > { %v2187_v41 = vmul.f32 %v2183_v38, %v2170_v32 }
 0xecb   : > { %v2191_v29 = vadd.f32 %v2187_v41, %v2170_v32 }
 0xecd   : > { %v2195_v42 = vmul.f32 0.7978846, %v2191_v29  ;;  %v2978_v44 = vpop.eup %2977 }
 0xece   : > { %v2202_v46 = vadd.f32 1.0, %v2978_v44 }
 0xecf   : > { %2979 = vtanh.f32 %v2195_v42 }
 0xed0   : > { %v2206_v35 = vmul.f32 %v2202_v46, %v2174_v19 }
 0xed5   : > { %v2980_v49 = vpop.eup %2979 }
 0xed6   : > { %v2203_v50 = vadd.f32 1.0, %v2980_v49 }
 0xed8   : > { %v2207_v52 = vmul.f32 %v2203_v50, %v2175_v48 }
 0xeda   : > { %v2209_v53 = vpack.c.bf16 %v2207_v52, %v2206_v35 }
 0xedc   : > { %2291 = vmatmul.bf16.gmra.mxu3 %v2209_v53 }
 0xee4   : > { %v2287_v58 = vpop.f32.mrf.mxu3 }
 0xee5   : > { %v2288_v4 = vadd.f32 %v2890_v57, %v2287_v58 }
 0xee7   : > { %v2297_v60 = vadd.f32 %v2288_v4, %v3542_v11 }
 0xee9   : > { %2301 = vst.msk [vmem:[#allocation2] sm:$0xff] %vm921_vm3, %v2297_v60 }
 0xeec   : > { %v2289_v33 = vpop.f32.mrf.mxu3 }
 0xeed   : > { %v2290_v61 = vadd.f32 %v2890_v57, %v2289_v33 }
 0xeef   : > { %v2298_v54 = vadd.f32 %v2290_v61, %v3547_v43 }
 0xef1   : > { %2302 = vst.msk [vmem:[#allocation2 + $0x8] sm:$0xff] %vm921_vm3, %v2298_v54 }
 0xf5f   : > { %v2292_v62 = vpop.f32.mrf.mxu3 }
 0xf60   : > { %v2293_v59 = vadd.f32 %v2890_v57, %v2292_v62 }
 0xf62   : > { %v2299_v11 = vadd.f32 %v2293_v59, %v3632_v36 }
 0xf64   : > { %2303 = vst.msk [vmem:[#allocation2 + $0x10] sm:$0xff] %vm921_vm3, %v2299_v11 }
 0xf67   : > { %v2294_v1 = vpop.f32.mrf.mxu3 }
 0xf68   : > { %v2295_v2 = vadd.f32 %v2890_v57, %v2294_v1  ;;  %2321 = sbr.rel (%p2804_p8) target bundleno = 3961 (0xf79), region = 108 }
 0xf6a   : > { %v2300_v28 = vadd.f32 %v2295_v2, %v3638_v47 }
 0xf6c   : > { %2304 = vst.msk [vmem:[#allocation2 + $0x18] sm:$0xff] %vm921_vm3, %v2300_v28 }
 0xf6d   : > { %v2322_v25 = vld [vmem:[#allocation2] sm:$0xff]  ;;  %v2323_v5 = vld [vmem:[#allocation2 + $0x8] sm:$0xff]  ;;  %v2324_v18 = vld [vmem:[#allocation2 + $0x10] sm:$0xff] }
 0xf6e   : > { %v2326_v55 = vld [vmem:[#allocation3] sm:$0xff]  ;;  %v2327_v3 = vld [vmem:[#allocation3 + $0x8] sm:$0xff]  ;;  %v2328_v15 = vld [vmem:[#allocation3 + $0x10] sm:$0xff] }
 0xf6f   : > { %v2330_v43 = vadd.f32 %v2326_v55, %v2322_v25  ;;  %v2331_v51 = vadd.f32 %v2327_v3, %v2323_v5  ;;  %v2329_v36 = vld [vmem:[#allocation3 + $0x18] sm:$0xff]  ;;  %v2332_v21 = vadd.f32 %v2328_v15, %v2324_v18 }
 0xf71   : > { %2334 = vst.msk [vmem:[#allocation2] sm:$0xff] %vm921_vm3, %v2330_v43 }
 0xf72   : > { %2338 = vst.msk [vmem:[#allocation3] sm:$0xff] %vm921_vm3, %v2330_v43 }
 0xf73   : > { %v2325_v12 = vld [vmem:[#allocation2 + $0x18] sm:$0xff]  ;;  %2335 = vst.msk [vmem:[#allocation2 + $0x8] sm:$0xff] %vm921_vm3, %v2331_v51 }
 0xf74   : > { %v2333_v47 = vadd.f32 %v2329_v36, %v2325_v12  ;;  %2339 = vst.msk [vmem:[#allocation3 + $0x8] sm:$0xff] %vm921_vm3, %v2331_v51 }
 0xf75   : > { %2336 = vst.msk [vmem:[#allocation2 + $0x10] sm:$0xff] %vm921_vm3, %v2332_v21 }
 0xf76   : > { %2340 = vst.msk [vmem:[#allocation3 + $0x10] sm:$0xff] %vm921_vm3, %v2332_v21 }
 0xf77   : > { %2337 = vst.msk [vmem:[#allocation2 + $0x18] sm:$0xff] %vm921_vm3, %v2333_v47 }
 0xf78   : > { %2341 = vst.msk [vmem:[#allocation3 + $0x18] sm:$0xff] %vm921_vm3, %v2333_v47 }
 0xf79 PF: > { %p2805_p9 = scmp.ne.s32.totalorder %s3044_s1, 3 }
 0xf7a   : > { %s3856_s24 = sld [smem:[#allocation19_spill]] (!%p2805_p9) }
 0xf7b   : > { %2345 = sbr.rel (%p2805_p9) target bundleno = 4407 (0x1137), region = 112  ;;  %s3857_s0 = sld [smem:[#allocation20_spill]] (!%p2805_p9) }
 0xf7c   : > { %s3858_s8 = sld [smem:[#allocation21_spill]] (!%p2805_p9) }
 0xf80   : > { %v2348_v63 = vld [vmem:[#allocation2 + $0x10] sm:$0xff]  ;;  %v2346_v7 = vld [vmem:[#allocation2] sm:$0xff]  ;;  %v2349_v10 = vld [vmem:[#allocation2 + $0x18] sm:$0xff]  ;;  %v3066_v21 = vmov 16.0   ;;  %vm2471_vm0 = vcmask 253952  }
 0xf81   : > { %v2358_v56 = vsel %vm921_vm3, %v2348_v63, 0.0  ;;  %v2352_v45 = vsel %vm921_vm3, %v2346_v7, 0.0  ;;  %v2347_v8 = vld [vmem:[#allocation2 + $0x8] sm:$0xff]  ;;  %v2361_v14 = vsel %vm921_vm3, %v2349_v10, 0.0 }
 0xf82   : > { %2359 = vadd.xlane.f32.xlu1 %v2358_v56  ;;  %2353 = vadd.xlane.f32.xlu0 %v2352_v45  ;;  %v2355_v13 = vsel %vm921_vm3, %v2347_v8, 0.0  ;;  %v2836_v36 = vld [vmem:[%s3808_s18 + $0x8] sm:$0xff]  ;;  %v2835_v45 = vld [vmem:[%s3808_s18] sm:$0xff] }
 0xf83   : > { %2515 = vmatpush.bf16.msra.mxu0 %v2836_v36 }
 0xf87   : > { %2516 = vmatpush.bf16.msra.mxu0 %v2835_v45 }
 0xf8a   : > { %2362 = vadd.xlane.f32.xlu1 %v2361_v14  ;;  %2356 = vadd.xlane.f32.xlu0 %v2355_v13 }
 0xff5   : > { %v2360_v16 = vpop.xlane.xlu1 %2359  ;;  %v2354_v17 = vpop.xlane.xlu0 %2353 }
 0xff6   : > { %v2366_v26 = vmul.f32 %v2360_v16, %v3293_v40  ;;  %v2364_v20 = vmul.f32 %v2354_v17, %v3293_v40  ;;  %v2986_v16 = vld [vmem:[%s3857_s0] ss:$0 sm:$0xff] }
 0xff8   : > { %v3720_v22 = vsub.f32 %v2348_v63, %v2366_v26  ;;  %v3722_v0 = vsub.f32 %v2346_v7, %v2364_v20  ;;  %v2985_v63 = vld [vmem:[%s3856_s24] ss:$0 sm:$0xff] }
 0xffa   : > { %v2374_v9 = vmul.f32 %v3720_v22, %v3720_v22  ;;  %v2372_v6 = vmul.f32 %v3722_v0, %v3722_v0 }
 0xffc   : > { %v2382_v23 = vsel %vm921_vm3, %v2374_v9, 0.0  ;;  %v2376_v24 = vsel %vm921_vm3, %v2372_v6, 0.0 }
 0xffd   : > { %v2363_v27 = vpop.xlane.xlu1 %2362  ;;  %2383 = vadd.xlane.f32.xlu0 %v2382_v23  ;;  %2377 = vadd.xlane.f32.xlu2 %v2376_v24  ;;  %v2357_v30 = vpop.xlane.xlu0 %2356 }
 0xffe   : > { %v2367_v31 = vmul.f32 %v2363_v27, %v3293_v40  ;;  %v2365_v32 = vmul.f32 %v2357_v30, %v3293_v40 }
0x1000   : > { %v3732_v34 = vsub.f32 %v2349_v10, %v2367_v31  ;;  %v3734_v37 = vsub.f32 %v2347_v8, %v2365_v32 }
0x1002   : > { %v2375_v38 = vmul.f32 %v3732_v34, %v3732_v34  ;;  %v2373_v39 = vmul.f32 %v3734_v37, %v3734_v37 }
0x1004   : > { %v2385_v41 = vsel %vm921_vm3, %v2375_v38, 0.0  ;;  %v2379_v29 = vsel %vm921_vm3, %v2373_v39, 0.0 }
0x1005   : > { %2386 = vadd.xlane.f32.xlu1 %v2385_v41  ;;  %2380 = vadd.xlane.f32.xlu2 %v2379_v29 }
0x1070   : > { %v2378_v42 = vpop.xlane.xlu2 %2377  ;;  %v2384_v44 = vpop.xlane.xlu0 %2383 }
0x1071   : > { %v2388_v46 = vmul.f32 %v2378_v42, %v3293_v40  ;;  %v2390_v49 = vmul.f32 %v2384_v44, %v3293_v40 }
0x1073   : > { %v2392_v19 = vadd.f32 1e-05, %v2388_v46  ;;  %v2394_v48 = vadd.f32 1e-05, %v2390_v49 }
0x1075   : > { %2988 = vrsqrt.f32 %v2392_v19  ;;  %vm2402_vm5 = vweird.f32 %v2392_v19  ;;  %vm2422_vm12 = vweird.f32 %v2394_v48 }
0x1076   : > { %2990 = vrsqrt.f32 %v2394_v48 }
0x1078   : > { %v2387_v50 = vpop.xlane.xlu1 %2386  ;;  %v2381_v35 = vpop.xlane.xlu2 %2380 }
0x1079   : > { %v2391_v52 = vmul.f32 %v2387_v50, %v3293_v40  ;;  %v2389_v53 = vmul.f32 %v2381_v35, %v3293_v40 }
0x107b   : > { %v2989_v57 = vpop.eup %2988  ;;  %v2395_v58 = vadd.f32 1e-05, %v2391_v52  ;;  %v2393_v4 = vadd.f32 1e-05, %v2389_v53 }
0x107c   : > { %v2991_v60 = vpop.eup %2990  ;;  %v2397_v33 = vmul.f32 %v2989_v57, %v2392_v19  ;;  %vm2403_vm2 = vweird.f32 %v2989_v57 }
0x107d   : > { %v2417_v61 = vmul.f32 %v2991_v60, %v2394_v48  ;;  %2992 = vrsqrt.f32 %v2395_v58  ;;  %vm2423_vm4 = vweird.f32 %v2991_v60  ;;  %vm3746_vm11 = vmor %vm2402_vm5, %vm2403_vm2  ;;  %vm2432_vm9 = vweird.f32 %v2395_v58 }
0x107e   : > { %v2398_v54 = vmul.f32 %v2989_v57, %v2397_v33  ;;  %2994 = vrsqrt.f32 %v2393_v4  ;;  %vm2424_vm7 = vmor %vm2422_vm12, %vm2423_vm4  ;;  %vm2412_vm13 = vweird.f32 %v2393_v4 }
0x107f   : > { %v2418_v62 = vmul.f32 %v2991_v60, %v2417_v61  ;;  %2996 = vrcp.f32 %v3066_v21 }
0x1080   : > { %v2399_v59 = vmul.f32 0.5, %v2398_v54 }
0x1081   : > { %v2419_v11 = vmul.f32 0.5, %v2418_v62 }
0x1082   : > { %v2400_v1 = vsub.f32 1.5, %v2399_v59 }
0x1083   : > { %v2993_v2 = vpop.eup %2992  ;;  %v2420_v28 = vsub.f32 1.5, %v2419_v11 }
0x1084   : > { %v2995_v25 = vpop.eup %2994  ;;  %v2401_v55 = vmul.f32 %v2989_v57, %v2400_v1  ;;  %v2427_v40 = vmul.f32 %v2993_v2, %v2395_v58  ;;  %vm2433_vm8 = vweird.f32 %v2993_v2 }
0x1085   : > { %v2421_v43 = vmul.f32 %v2991_v60, %v2420_v28  ;;  %v2407_v3 = vmul.f32 %v2995_v25, %v2393_v4  ;;  %vm2413_vm6 = vweird.f32 %v2995_v25  ;;  %vm2434_vm10 = vmor %vm2432_vm9, %vm2433_vm8  ;;  %v2997_v20 = vpop.eup %2996  ;;  %v2987_v28 = vld [vmem:[%s3858_s8] ss:$0 sm:$0xff] }
0x1086   : > { %v2428_v18 = vmul.f32 %v2993_v2, %v2427_v40  ;;  %v2405_v15 = vsel %vm3746_vm11, %v2989_v57, %v2401_v55  ;;  %vm2414_vm14 = vmor %vm2412_vm13, %vm2413_vm6  ;;  %v2464_v27 = vmul.f32 16.0, %v2997_v20  ;;  %vm2468_vm15 = vweird.f32 %v2997_v20 }
0x1087   : > { %v2425_v51 = vsel %vm2424_vm7, %v2991_v60, %v2421_v43  ;;  %v2408_v12 = vmul.f32 %v2995_v25, %v2407_v3  ;;  %v2436_v10 = vmul.f32 %v2405_v15, %v3722_v0 }
0x1088   : > { %v2429_v47 = vmul.f32 0.5, %v2428_v18  ;;  %v2438_v7 = vmul.f32 %v2425_v51, %v3720_v22  ;;  %v2465_v29 = vsub.f32 1.0, %v2464_v27 }
0x1089   : > { %v2409_v56 = vmul.f32 0.5, %v2408_v12  ;;  %v2443_v22 = vmul.f32 %v2985_v63, %v2436_v10 }
0x108a   : > { %v2430_v8 = vsub.f32 1.5, %v2429_v47  ;;  %v2445_v17 = vmul.f32 %v2985_v63, %v2438_v7 }
0x108b   : > { %v2410_v14 = vsub.f32 1.5, %v2409_v56  ;;  %v2450_v31 = vadd.f32 %v2986_v16, %v2443_v22 }
0x108c   : > { %v2431_v13 = vmul.f32 %v2993_v2, %v2430_v8  ;;  %v2452_v24 = vadd.f32 %v2986_v16, %v2445_v17 }
0x108d   : > { %v2411_v26 = vmul.f32 %v2995_v25, %v2410_v14  ;;  %v2454_v44 = vsel %vm921_vm3, %v2450_v31, 0.0 }
0x108e   : > { %v2435_v9 = vsel %vm2434_vm10, %v2993_v2, %v2431_v13  ;;  %v2473_v41 = vsel %vm921_vm3, %v2452_v24, 0.0 }
0x108f   : > { %v2439_v0 = vmul.f32 %v2435_v9, %v3732_v34  ;;  %v2415_v6 = vsel %vm2414_vm14, %v2995_v25, %v2411_v26 }
0x1090   : > { %v2437_v23 = vmul.f32 %v2415_v6, %v3734_v37  ;;  %v2466_v37 = vmul.f32 %v2997_v20, %v2465_v29 }
0x1091   : > { %v2446_v30 = vmul.f32 %v2985_v63, %v2439_v0 }
0x1092   : > { %v2444_v32 = vmul.f32 %v2985_v63, %v2437_v23  ;;  %v2467_v53 = vadd.f32 %v2997_v20, %v2466_v37 }
0x1093   : > { %v2453_v38 = vadd.f32 %v2986_v16, %v2446_v30 }
0x1094   : > { %v2451_v39 = vadd.f32 %v2986_v16, %v2444_v32  ;;  %v2469_v33 = vsel %vm2468_vm15, %v2997_v20, %v2467_v53 }
0x1095   : > { %v2474_v42 = vsel %vm921_vm3, %v2453_v38, 0.0 }
0x1096   : > { %v2475_v46 = vadd.f32 %v2474_v42, %v2473_v41  ;;  %v2455_v34 = vsel %vm921_vm3, %v2451_v39, 0.0 }
0x1097   : > { %v2456_v49 = vadd.f32 %v2455_v34, %v2454_v44 }
0x1098   : > { %v2476_v19 = vrot.slane %v2475_v46, 4 }
0x1099   : > { %v2457_v48 = vrot.slane %v2456_v49, 4 }
0x109a   : > { %v2477_v50 = vadd.f32 %v2476_v19, %v2475_v46 }
0x109b   : > { %v2458_v35 = vadd.f32 %v2457_v48, %v2456_v49 }
0x109c   : > { %v2478_v52 = vrot.slane %v2477_v50, 2 }
0x109d   : > { %v2459_v57 = vrot.slane %v2458_v35, 2 }
0x109e   : > { %v2479_v58 = vadd.f32 %v2478_v52, %v2477_v50 }
0x109f   : > { %v2460_v4 = vadd.f32 %v2459_v57, %v2458_v35 }
0x10a0   : > { %v2480_v60 = vrot.slane %v2479_v58, 1 }
0x10a1   : > { %v2461_v61 = vrot.slane %v2460_v4, 1 }
0x10a2   : > { %v2481_v54 = vadd.f32 %v2480_v60, %v2479_v58 }
0x10a3   : > { %v2462_v62 = vadd.f32 %v2461_v61, %v2460_v4 }
0x10a4   : > { %v2482_v59 = vmul.f32 %v2481_v54, %v2469_v33 }
0x10a5   : > { %v2470_v11 = vmul.f32 %v2469_v33, %v2462_v62 }
0x10a6   : > { %2483 = vst.msk [vmem:[#allocation5 + $0x1] sm:$0x1] %vm2471_vm0, %v2482_v59 }
0x10a7   : > { %2472 = vst.msk [vmem:[#allocation5] sm:$0x1] %vm2471_vm0, %v2470_v11 }
0x10ae   : > { %v2484_v1 = vld [vmem:[#allocation5] sm:$0x3] }
0x10af   : > { %v2485_v2 = vpack.c.bf16 %v2484_v1, %v2484_v1 }
0x10b1   : > { %2814 = vmatmul.msk.bf16.vlgmr.msra.gmra.mxu0 %vm921_vm3, %v2485_v2 }
0x112e   : > { %v2518_v25 = vpop.f32.mrf.mxu0 }
0x112f   : > { %v2519_v55 = vadd.f32 %v2987_v28, %v2518_v25 }
0x1131   : > { %2522 = vst [vmem:[#allocation6] sm:$0x3] %v2519_v55 }
0x1136   : > { %v2520_v40 = vpop.f32.mrf.mxu0 }
0x1137 PF: > { %s3859_s19 = sld [smem:[#allocation10_spill]]  ;;  %s3067_s27 = smov [#allocation6]  }
0x1138   : > { %s3861_s1 = sld [smem:[#allocation22_spill]]  ;;  %s2531_s30 = sshll.u32 %s3067_s27, 4  ;;  %s2532_s30 = int_to_ptr.vmem [resolvable:$true] %s2531_s30 }
0x113d   : > { %s3860_s20 = sadd.s32 4294967295, %s3859_s19  }
0x113e   : > { %p2841_p10 = scmp.eq.s32.totalorder %s3860_s20, 3  ;;  %s2533_s25 = sshll.u32 %s3861_s1, 4  ;;  %s2534_s25 = int_to_ptr.hbm [resolvable:$true] %s2533_s25 }
0x1140   : > { %2838 = dma.vmem_to_hbm [thread:$0]  (%p2841_p10), %s2532_s30, 32, %s2534_s25, [#allocation7]  }
0x1141   : > { %3039 = dma.done.wait (%p2841_p10), [#allocation7], 32  }
0x1142   : > { %3041 = vsyncadd (%p2841_p10), [#allocation7], 4294967264 }
0x1143 PF: > { %s3862_s24 = sld [smem:[#allocation10_spill]] }
0x1144   : > { %s3863_s1 = sld [smem:[#allocation9_spill]] }
0x1145   : > { %s3864_s22 = sld [smem:[#allocation11_spill]] }
0x1149   : > { %s31_s23 = sadd.s32 1, %s3862_s24  }
0x114a   : > { %p28_p11 = scmp.ge.s32.totalorder %s31_s23, 6  }
0x114c   :  { %30 = sbr.rel (!%p28_p11) target bundleno = 14 (0xe), region = 177 }
0x1151   :  { %2547 = vsyncpa [#allocation7], 1 }
0x1152   :  { %2549 = vsyncpa [#allocation7 + $0x1], 1 }

</bundles_post_ra>
